<compile_context>
chip_gen: v7x
topology: tpu7x:2x2x1
jax: 0.10.0
libtpu: 0.0.40
codegen_flags: <defaults>
</compile_context>

<pallas_src>
import functools

import jax
import jax.numpy as jnp
from jax.experimental import pallas as pl
from jax.experimental.pallas import tpu as pltpu

_VMEM = pl.BlockSpec(memory_space=pltpu.MemorySpace.VMEM)
_EPS = 1e-5
_GEMM_DTYPE = jnp.bfloat16  # MXU operand dtype; accumulation stays float32.


# ---------------------------------------------------------------------------
# Pallas kernels
# ---------------------------------------------------------------------------
def _bn_input_fold_kernel(x_ref, g_ref, b_ref, s_ref, t_ref):
    """Batch stats of the (C, N*H*W) input; emits affine fold (s, t) such that
    BN(x) = x * s + t  (training mode, biased variance, eps=1e-5)."""
    x = x_ref[...]                                   # (C, M) f32, lane-dense
    mean = jnp.mean(x, axis=1, keepdims=True)        # (C, 1)
    d = x - mean
    var = jnp.mean(d * d, axis=1, keepdims=True)     # biased variance
    s = g_ref[...] * jax.lax.rsqrt(var + _EPS)
    s_ref[...] = s
    t_ref[...] = b_ref[...] - mean * s


def bn_input_fold(x_cm_flat, gamma, beta):
    C = x_cm_flat.shape[0]
    return pl.pallas_call(
        _bn_input_fold_kernel,
        out_shape=(jax.ShapeDtypeStruct((C, 1), jnp.float32),
                   jax.ShapeDtypeStruct((C, 1), jnp.float32)),
        in_specs=[_VMEM, _VMEM, _VMEM],
        out_specs=(_VMEM, _VMEM),
    )(x_cm_flat.astype(jnp.float32),
      gamma.reshape(C, 1).astype(jnp.float32),
      beta.reshape(C, 1).astype(jnp.float32))


def _conv_stage_kernel(cols_ref, w_ref, b_ref, *refs, batchnorm):
    """out = [BN](relu(W @ colsT + b)); channel-major (Cout, M) lane-dense."""
    o_ref = refs[-1]
    acc = jnp.dot(w_ref[...], cols_ref[...],
                  preferred_element_type=jnp.float32)        # (Cout, M) f32
    acc = jnp.maximum(acc + b_ref[...], 0.0)                 # bias + ReLU
    if batchnorm:                                            # following BN
        g_ref, bb_ref = refs[0], refs[1]
        mean = jnp.mean(acc, axis=1, keepdims=True)          # per-channel
        d = acc - mean
        var = jnp.mean(d * d, axis=1, keepdims=True)         # biased variance
        acc = d * jax.lax.rsqrt(var + _EPS) * g_ref[...] + bb_ref[...]
    o_ref[...] = acc.astype(o_ref.dtype)


def conv_stage(cols, w, bias, gamma=None, beta=None):
    Cout, K = w.shape
    K2, M = cols.shape
    assert K == K2
    has_bn = gamma is not None
    args = [cols.astype(_GEMM_DTYPE), w.astype(_GEMM_DTYPE),
            bias.reshape(Cout, 1).astype(jnp.float32)]
    if has_bn:
        args += [gamma.reshape(Cout, 1).astype(jnp.float32),
                 beta.reshape(Cout, 1).astype(jnp.float32)]
    return pl.pallas_call(
        functools.partial(_conv_stage_kernel, batchnorm=has_bn),
        out_shape=jax.ShapeDtypeStruct((Cout, M), _GEMM_DTYPE),
        in_specs=[_VMEM] * len(args),
        out_specs=_VMEM,
    )(*args)


def _fc_head_kernel(flat_ref, sc_ref, g4a_ref, b4a_ref, g4s_ref, b4s_ref,
                    w1a_ref, w1s_ref, b1_ref, g5_ref, b5_ref, w2_ref, b2_ref,
                    o_ref):
    """b_4 -> fc1 + relu -> b_5 -> fc2 -> softmax, all in one kernel."""

    def bn(v, g, b):
        mean = jnp.mean(v, axis=0, keepdims=True)
        d = v - mean
        var = jnp.mean(d * d, axis=0, keepdims=True)
        return d * jax.lax.rsqrt(var + _EPS) * g + b

    # b_4 applied to the 1280 conv features and the 4 scalars separately
    # (per-feature stats are separable), keeping the big GEMM K = 1280.
    fa = bn(flat_ref[...].astype(jnp.float32), g4a_ref[...], b4a_ref[...])
    fs = bn(sc_ref[...].astype(jnp.float32), g4s_ref[...], b4s_ref[...])
    h = (jnp.dot(fa.astype(_GEMM_DTYPE), w1a_ref[...],
                 preferred_element_type=jnp.float32)
         + jnp.dot(fs.astype(_GEMM_DTYPE), w1s_ref[...],
                   preferred_element_type=jnp.float32)
         + b1_ref[...])
    h = bn(jnp.maximum(h, 0.0), g5_ref[...], b5_ref[...])
    z = jnp.dot(h.astype(_GEMM_DTYPE), w2_ref[...],
                preferred_element_type=jnp.float32) + b2_ref[...]
    z = z - jnp.max(z, axis=-1, keepdims=True)
    e = jnp.exp(z)
    # single reciprocal then multiply (exact, keeps row sums == 1 in f32)
    o_ref[...] = e * pl.reciprocal(jnp.sum(e, axis=-1, keepdims=True))


def fc_head(flat, scalar, p):
    N = flat.shape[0]
    n_out = p["w_fc2"].shape[1]
    args = [
        flat.astype(_GEMM_DTYPE), scalar.astype(jnp.float32),
        p["bn4a_g"].reshape(1, -1).astype(jnp.float32),
        p["bn4a_b"].reshape(1, -1).astype(jnp.float32),
        p["bn4s_g"].reshape(1, -1).astype(jnp.float32),
        p["bn4s_b"].reshape(1, -1).astype(jnp.float32),
        p["w_fc1a"].astype(_GEMM_DTYPE), p["w_fc1s"].astype(_GEMM_DTYPE),
        p["b_fc1"].reshape(1, -1).astype(jnp.float32),
        p["bn5_g"].reshape(1, -1).astype(jnp.float32),
        p["bn5_b"].reshape(1, -1).astype(jnp.float32),
        p["w_fc2"].astype(_GEMM_DTYPE),
        p["b_fc2"].reshape(1, -1).astype(jnp.float32),
    ]
    return pl.pallas_call(
        _fc_head_kernel,
        out_shape=jax.ShapeDtypeStruct((N, n_out), jnp.float32),
        in_specs=[_VMEM] * len(args),
        out_specs=_VMEM,
    )(*args)


# ---------------------------------------------------------------------------
# Glue: channel-major im2col (static strided slicing only, no transposes)
# ---------------------------------------------------------------------------
def im2col_cm(a, kh, kw, stride):
    """a: (C, N, H, W) -> colsT (C*kh*kw, N*Ho*Wo).

    Row order is (c, i, j), i.e. torch's Conv2d weight.reshape(Cout, Cin*kh*kw);
    column order is (n, oh, ow)."""
    C, N, H, W = a.shape
    Ho = (H - kh) // stride + 1
    Wo = (W - kw) // stride + 1
    patches = [a[:, :, i:i + stride * Ho:stride, j:j + stride * Wo:stride]
               for i in range(kh) for j in range(kw)]
    cols = jnp.stack(patches, axis=1)            # (C, kh*kw, N, Ho, Wo)
    return cols.reshape(C * kh * kw, N * Ho * Wo), (N, Ho, Wo)


# ---------------------------------------------------------------------------
# Parameter construction (deterministic, synthetic)
# ---------------------------------------------------------------------------
def init_params(key):
    ks = iter(jax.random.split(key, 16))

    def normal(shape, scale):
        return scale * jax.random.normal(next(ks), shape, jnp.float32)

    p = {}
    # conv1 weight stays in torch (Cout, Cin, kh, kw) layout so the b_1 fold can
    # scale per input channel; conv2/conv3 are pre-flattened to (Cout, Cin*kh*kw).
    p["w1"] = normal((8, 4, 8, 8), 1.0 / 16.0)                  # fan_in = 256
    p["b1"] = normal((8,), 0.01)
    p["w2"] = normal((16, 8 * 4 * 4), 1.0 / jnp.sqrt(128.0))
    p["b2"] = normal((16,), 0.01)
    p["w3"] = normal((32, 16 * 3 * 3), 1.0 / 12.0)
    p["b3"] = normal((32,), 0.01)
    # fc1 split: 1280 conv features (K aligned to 128) + 4 scalar features.
    # Stored (in, out) = torch weight transposed.
    p["w_fc1a"] = normal((1280, 256), 1.0 / jnp.sqrt(1284.0))
    p["w_fc1s"] = normal((4, 256), 1.0 / jnp.sqrt(1284.0))
    p["b_fc1"] = normal((256,), 0.01)
    p["w_fc2"] = normal((256, 19), 1.0 / 16.0)
    p["b_fc2"] = normal((19,), 0.01)
    # BatchNorm affine params (torch default init: gamma=1, beta=0); b_4 split
    # to match the fc1 split.
    for name, c in (("bn1", 4), ("bn2", 8), ("bn3", 16),
                    ("bn4a", 1280), ("bn4s", 4), ("bn5", 256)):
        p[name + "_g"] = jnp.ones((c,), jnp.float32)
        p[name + "_b"] = jnp.zeros((c,), jnp.float32)
    return p


# ---------------------------------------------------------------------------
# Forward pass
# ---------------------------------------------------------------------------
@jax.jit
def actor_forward(params, x, scalar):
    # x: (N, 92, 68, 4) NHWC float-castable; scalar: (N, 4)
    x = x.astype(jnp.float32)
    scalar = scalar.astype(jnp.float32)
    N, H, W, C = x.shape

    # Channel-major (C, N, H, W): mirrors torch's permute and keeps the big
    # spatial extent on the lane axis everywhere downstream.
    x_cm = jnp.transpose(x, (3, 0, 1, 2))

    # b_1 folded into conv1: lane-dense stats kernel -> affine fold on w1/b1.
    s, t = bn_input_fold(x_cm.reshape(C, -1), params["bn1_g"], params["bn1_b"])
    s = s.reshape(C)
    t = t.reshape(C)
    w1_eff = (params["w1"] * s[None, :, None, None]).reshape(8, -1)
    b1_eff = params["b1"] + jnp.einsum("ocij,c->o", params["w1"], t)

    # conv1 (4->8, k8, s4) + relu + b_2   (one fused kernel, channel-major out)
    cols, (N, Ho, Wo) = im2col_cm(x_cm.astype(_GEMM_DTYPE), 8, 8, 4)
    a = conv_stage(cols, w1_eff, b1_eff,
                   params["bn2_g"], params["bn2_b"]).reshape(8, N, Ho, Wo)

    # conv2 (8->16, k4, s2) + relu + b_3
    cols, (N, Ho, Wo) = im2col_cm(a, 4, 4, 2)
    a = conv_stage(cols, params["w2"], params["b2"],
                   params["bn3_g"], params["bn3_b"]).reshape(16, N, Ho, Wo)

    # conv3 (16->32, k3, s1) + relu
    cols, (N, Ho, Wo) = im2col_cm(a, 3, 3, 1)
    a = conv_stage(cols, params["w3"], params["b3"]).reshape(32, N, Ho, Wo)

    # NCHW flatten: only the tiny leading (Cout, N) axes swap (matches torch's
    # reshape(N, -1) on NCHW), then the whole FC head in one kernel.
    flat = jnp.transpose(a, (1, 0, 2, 3)).reshape(N, -1)       # (N, 1280)
    return fc_head(flat, scalar, params)                       # (N, 19)


# ---------------------------------------------------------------------------
if __name__ == "__main__":
    key = jax.random.PRNGKey(0)
    kp, kx, ks = jax.random.split(key, 3)

    params = init_params(kp)
    # Board input must be (N, 92, 68, 4) NHWC so the flatten yields 1280 feats.
    x = jax.random.uniform(kx, (2, 92, 68, 4), jnp.float32)
    scalar = jax.random.normal(ks, (2, 4), jnp.float32)

    out = jax.block_until_ready(actor_forward(params, x, scalar))

    assert out.shape == (2, 19), out.shape
    assert bool(jnp.all(jnp.isfinite(out)))
    row_sums = jnp.sum(out, axis=-1)
    assert bool(jnp.all(jnp.abs(row_sums - 1.0) < 1e-4)), row_sums
    print("KERNEL_OK")
</pallas_src>

<mosaic_0001>
module attributes {stable_mosaic.version = 11 : i64} {
  func.func @_bn_input_fold_kernel(%arg0: memref<4x12512xf32, #tpu.memory_space<vmem>>, %arg1: memref<4x1xf32, #tpu.memory_space<vmem>>, %arg2: memref<4x1xf32, #tpu.memory_space<vmem>>, %arg3: memref<4x1xf32, #tpu.memory_space<vmem>>, %arg4: memref<4x1xf32, #tpu.memory_space<vmem>>) attributes {dimension_semantics = [], scalar_prefetch = 0 : i64, scratch_operands = 0 : i64, tpu.core_type = #tpu.core_type<tc>} {
    %c0 = arith.constant 0 : index
    %c0_0 = arith.constant 0 : index
    %0 = vector.load %arg0[%c0, %c0_0] : memref<4x12512xf32, #tpu.memory_space<vmem>>, vector<4x12512xf32>
    %cst = arith.constant dense<0.000000e+00> : vector<4xf32>
    %1 = vector.multi_reduction <add>, %0, %cst [1] : vector<4x12512xf32> to vector<4xf32>
    %2 = vector.shape_cast %1 : vector<4xf32> to vector<4x1xf32>
    %cst_1 = arith.constant 1.251200e+04 : f32
    %3 = vector.broadcast %cst_1 : f32 to vector<4x1xf32>
    %4 = arith.divf %2, %3 : vector<4x1xf32>
    %5 = vector.broadcast %4 : vector<4x1xf32> to vector<4x12512xf32>
    %6 = arith.subf %0, %5 : vector<4x12512xf32>
    %7 = arith.mulf %6, %6 : vector<4x12512xf32>
    %cst_2 = arith.constant dense<0.000000e+00> : vector<4xf32>
    %8 = vector.multi_reduction <add>, %7, %cst_2 [1] : vector<4x12512xf32> to vector<4xf32>
    %9 = vector.shape_cast %8 : vector<4xf32> to vector<4x1xf32>
    %cst_3 = arith.constant 1.251200e+04 : f32
    %10 = vector.broadcast %cst_3 : f32 to vector<4x1xf32>
    %11 = arith.divf %9, %10 : vector<4x1xf32>
    %c0_4 = arith.constant 0 : index
    %c0_5 = arith.constant 0 : index
    %12 = vector.load %arg1[%c0_4, %c0_5] : memref<4x1xf32, #tpu.memory_space<vmem>>, vector<4x1xf32>
    %cst_6 = arith.constant 9.99999974E-6 : f32
    %13 = vector.broadcast %cst_6 : f32 to vector<4x1xf32>
    %14 = arith.addf %11, %13 : vector<4x1xf32>
    %15 = math.rsqrt %14 : vector<4x1xf32>
    %16 = arith.mulf %12, %15 : vector<4x1xf32>
    %c0_7 = arith.constant 0 : index
    %c0_8 = arith.constant 0 : index
    %17 = vector.load %arg3[%c0_7, %c0_8] : memref<4x1xf32, #tpu.memory_space<vmem>>, vector<4x1xf32>
    tpu.vector_store %arg3[%c0_7, %c0_8], %16 {strides = array<i32>} : memref<4x1xf32, #tpu.memory_space<vmem>>, vector<4x1xf32>,
    %c0_9 = arith.constant 0 : index
    %c0_10 = arith.constant 0 : index
    %18 = vector.load %arg2[%c0_9, %c0_10] : memref<4x1xf32, #tpu.memory_space<vmem>>, vector<4x1xf32>
    %19 = arith.mulf %4, %16 : vector<4x1xf32>
    %20 = arith.subf %18, %19 : vector<4x1xf32>
    %c0_11 = arith.constant 0 : index
    %c0_12 = arith.constant 0 : index
    %21 = vector.load %arg4[%c0_11, %c0_12] : memref<4x1xf32, #tpu.memory_space<vmem>>, vector<4x1xf32>
    tpu.vector_store %arg4[%c0_11, %c0_12], %20 {strides = array<i32>} : memref<4x1xf32, #tpu.memory_space<vmem>>, vector<4x1xf32>,
    return
  }
}

module attributes {stable_mosaic.version = 11 : i64} {
  func.func @_conv_stage_kernel(%arg0: memref<256x704xbf16, #tpu.memory_space<vmem>>, %arg1: memref<8x256xbf16, #tpu.memory_space<vmem>>, %arg2: memref<8x1xf32, #tpu.memory_space<vmem>>, %arg3: memref<8x1xf32, #tpu.memory_space<vmem>>, %arg4: memref<8x1xf32, #tpu.memory_space<vmem>>, %arg5: memref<8x704xbf16, #tpu.memory_space<vmem>>) attributes {dimension_semantics = [], scalar_prefetch = 0 : i64, scratch_operands = 0 : i64, tpu.core_type = #tpu.core_type<tc>} {
    %c0 = arith.constant 0 : index
    %c0_0 = arith.constant 0 : index
    %0 = vector.load %arg1[%c0, %c0_0] : memref<8x256xbf16, #tpu.memory_space<vmem>>, vector<8x256xbf16>
    %c0_1 = arith.constant 0 : index
    %c0_2 = arith.constant 0 : index
    %1 = vector.load %arg0[%c0_1, %c0_2] : memref<256x704xbf16, #tpu.memory_space<vmem>>, vector<256x704xbf16>
    %cst = arith.constant dense<0.000000e+00> : vector<8x704xf32>
    %2 = tpu.matmul %0, %1, %cst {dimension_numbers = #tpu.dot_dimension_numbers<[1], [0], [0], [1], [0, 0, 1, 1], [], []>} : vector<8x256xbf16>, vector<256x704xbf16>, vector<8x704xf32> -> vector<8x704xf32>
    %c0_3 = arith.constant 0 : index
    %c0_4 = arith.constant 0 : index
    %3 = vector.load %arg2[%c0_3, %c0_4] : memref<8x1xf32, #tpu.memory_space<vmem>>, vector<8x1xf32>
    %4 = vector.broadcast %3 : vector<8x1xf32> to vector<8x704xf32>
    %5 = arith.addf %2, %4 : vector<8x704xf32>
    %cst_5 = arith.constant 0.000000e+00 : f32
    %6 = vector.broadcast %cst_5 : f32 to vector<8x704xf32>
    %7 = arith.maximumf %5, %6 : vector<8x704xf32>
    %cst_6 = arith.constant dense<0.000000e+00> : vector<8xf32>
    %8 = vector.multi_reduction <add>, %7, %cst_6 [1] : vector<8x704xf32> to vector<8xf32>
    %9 = vector.shape_cast %8 : vector<8xf32> to vector<8x1xf32>
    %cst_7 = arith.constant 7.040000e+02 : f32
    %10 = vector.broadcast %cst_7 : f32 to vector<8x1xf32>
    %11 = arith.divf %9, %10 : vector<8x1xf32>
    %12 = vector.broadcast %11 : vector<8x1xf32> to vector<8x704xf32>
    %13 = arith.subf %7, %12 : vector<8x704xf32>
    %14 = arith.mulf %13, %13 : vector<8x704xf32>
    %cst_8 = arith.constant dense<0.000000e+00> : vector<8xf32>
    %15 = vector.multi_reduction <add>, %14, %cst_8 [1] : vector<8x704xf32> to vector<8xf32>
    %16 = vector.shape_cast %15 : vector<8xf32> to vector<8x1xf32>
    %cst_9 = arith.constant 7.040000e+02 : f32
    %17 = vector.broadcast %cst_9 : f32 to vector<8x1xf32>
    %18 = arith.divf %16, %17 : vector<8x1xf32>
    %cst_10 = arith.constant 9.99999974E-6 : f32
    %19 = vector.broadcast %cst_10 : f32 to vector<8x1xf32>
    %20 = arith.addf %18, %19 : vector<8x1xf32>
    %21 = math.rsqrt %20 : vector<8x1xf32>
    %22 = vector.broadcast %21 : vector<8x1xf32> to vector<8x704xf32>
    %23 = arith.mulf %13, %22 : vector<8x704xf32>
    %c0_11 = arith.constant 0 : index
    %c0_12 = arith.constant 0 : index
    %24 = vector.load %arg3[%c0_11, %c0_12] : memref<8x1xf32, #tpu.memory_space<vmem>>, vector<8x1xf32>
    %25 = vector.broadcast %24 : vector<8x1xf32> to vector<8x704xf32>
    %26 = arith.mulf %23, %25 : vector<8x704xf32>
    %c0_13 = arith.constant 0 : index
    %c0_14 = arith.constant 0 : index
    %27 = vector.load %arg4[%c0_13, %c0_14] : memref<8x1xf32, #tpu.memory_space<vmem>>, vector<8x1xf32>
    %28 = vector.broadcast %27 : vector<8x1xf32> to vector<8x704xf32>
    %29 = arith.addf %26, %28 : vector<8x704xf32>
    %30 = arith.truncf %29 : vector<8x704xf32> to vector<8x704xbf16>
    %c0_15 = arith.constant 0 : index
    %c0_16 = arith.constant 0 : index
    %31 = vector.load %arg5[%c0_15, %c0_16] : memref<8x704xbf16, #tpu.memory_space<vmem>>, vector<8x704xbf16>
    tpu.vector_store %arg5[%c0_15, %c0_16], %30 {strides = array<i32>} : memref<8x704xbf16, #tpu.memory_space<vmem>>, vector<8x704xbf16>,
    return
  }
}

module attributes {stable_mosaic.version = 11 : i64} {
  func.func @_conv_stage_kernel(%arg0: memref<128x140xbf16, #tpu.memory_space<vmem>>, %arg1: memref<16x128xbf16, #tpu.memory_space<vmem>>, %arg2: memref<16x1xf32, #tpu.memory_space<vmem>>, %arg3: memref<16x1xf32, #tpu.memory_space<vmem>>, %arg4: memref<16x1xf32, #tpu.memory_space<vmem>>, %arg5: memref<16x140xbf16, #tpu.memory_space<vmem>>) attributes {dimension_semantics = [], scalar_prefetch = 0 : i64, scratch_operands = 0 : i64, tpu.core_type = #tpu.core_type<tc>} {
    %c0 = arith.constant 0 : index
    %c0_0 = arith.constant 0 : index
    %0 = vector.load %arg1[%c0, %c0_0] : memref<16x128xbf16, #tpu.memory_space<vmem>>, vector<16x128xbf16>
    %c0_1 = arith.constant 0 : index
    %c0_2 = arith.constant 0 : index
    %1 = vector.load %arg0[%c0_1, %c0_2] : memref<128x140xbf16, #tpu.memory_space<vmem>>, vector<128x140xbf16>
    %cst = arith.constant dense<0.000000e+00> : vector<16x140xf32>
    %2 = tpu.matmul %0, %1, %cst {dimension_numbers = #tpu.dot_dimension_numbers<[1], [0], [0], [1], [0, 0, 1, 1], [], []>} : vector<16x128xbf16>, vector<128x140xbf16>, vector<16x140xf32> -> vector<16x140xf32>
    %c0_3 = arith.constant 0 : index
    %c0_4 = arith.constant 0 : index
    %3 = vector.load %arg2[%c0_3, %c0_4] : memref<16x1xf32, #tpu.memory_space<vmem>>, vector<16x1xf32>
    %4 = vector.broadcast %3 : vector<16x1xf32> to vector<16x140xf32>
    %5 = arith.addf %2, %4 : vector<16x140xf32>
    %cst_5 = arith.constant 0.000000e+00 : f32
    %6 = vector.broadcast %cst_5 : f32 to vector<16x140xf32>
    %7 = arith.maximumf %5, %6 : vector<16x140xf32>
    %cst_6 = arith.constant dense<0.000000e+00> : vector<16xf32>
    %8 = vector.multi_reduction <add>, %7, %cst_6 [1] : vector<16x140xf32> to vector<16xf32>
    %9 = vector.shape_cast %8 : vector<16xf32> to vector<16x1xf32>
    %cst_7 = arith.constant 1.400000e+02 : f32
    %10 = vector.broadcast %cst_7 : f32 to vector<16x1xf32>
    %11 = arith.divf %9, %10 : vector<16x1xf32>
    %12 = vector.broadcast %11 : vector<16x1xf32> to vector<16x140xf32>
    %13 = arith.subf %7, %12 : vector<16x140xf32>
    %14 = arith.mulf %13, %13 : vector<16x140xf32>
    %cst_8 = arith.constant dense<0.000000e+00> : vector<16xf32>
    %15 = vector.multi_reduction <add>, %14, %cst_8 [1] : vector<16x140xf32> to vector<16xf32>
    %16 = vector.shape_cast %15 : vector<16xf32> to vector<16x1xf32>
    %cst_9 = arith.constant 1.400000e+02 : f32
    %17 = vector.broadcast %cst_9 : f32 to vector<16x1xf32>
    %18 = arith.divf %16, %17 : vector<16x1xf32>
    %cst_10 = arith.constant 9.99999974E-6 : f32
    %19 = vector.broadcast %cst_10 : f32 to vector<16x1xf32>
    %20 = arith.addf %18, %19 : vector<16x1xf32>
    %21 = math.rsqrt %20 : vector<16x1xf32>
    %22 = vector.broadcast %21 : vector<16x1xf32> to vector<16x140xf32>
    %23 = arith.mulf %13, %22 : vector<16x140xf32>
    %c0_11 = arith.constant 0 : index
    %c0_12 = arith.constant 0 : index
    %24 = vector.load %arg3[%c0_11, %c0_12] : memref<16x1xf32, #tpu.memory_space<vmem>>, vector<16x1xf32>
    %25 = vector.broadcast %24 : vector<16x1xf32> to vector<16x140xf32>
    %26 = arith.mulf %23, %25 : vector<16x140xf32>
    %c0_13 = arith.constant 0 : index
    %c0_14 = arith.constant 0 : index
    %27 = vector.load %arg4[%c0_13, %c0_14] : memref<16x1xf32, #tpu.memory_space<vmem>>, vector<16x1xf32>
    %28 = vector.broadcast %27 : vector<16x1xf32> to vector<16x140xf32>
    %29 = arith.addf %26, %28 : vector<16x140xf32>
    %30 = arith.truncf %29 : vector<16x140xf32> to vector<16x140xbf16>
    %c0_15 = arith.constant 0 : index
    %c0_16 = arith.constant 0 : index
    %31 = vector.load %arg5[%c0_15, %c0_16] : memref<16x140xbf16, #tpu.memory_space<vmem>>, vector<16x140xbf16>
    tpu.vector_store %arg5[%c0_15, %c0_16], %30 {strides = array<i32>} : memref<16x140xbf16, #tpu.memory_space<vmem>>, vector<16x140xbf16>,
    return
  }
}

module attributes {stable_mosaic.version = 11 : i64} {
  func.func @_conv_stage_kernel(%arg0: memref<144x80xbf16, #tpu.memory_space<vmem>>, %arg1: memref<32x144xbf16, #tpu.memory_space<vmem>>, %arg2: memref<32x1xf32, #tpu.memory_space<vmem>>, %arg3: memref<32x80xbf16, #tpu.memory_space<vmem>>) attributes {dimension_semantics = [], scalar_prefetch = 0 : i64, scratch_operands = 0 : i64, tpu.core_type = #tpu.core_type<tc>} {
    %c0 = arith.constant 0 : index
    %c0_0 = arith.constant 0 : index
    %0 = vector.load %arg1[%c0, %c0_0] : memref<32x144xbf16, #tpu.memory_space<vmem>>, vector<32x144xbf16>
    %c0_1 = arith.constant 0 : index
    %c0_2 = arith.constant 0 : index
    %1 = vector.load %arg0[%c0_1, %c0_2] : memref<144x80xbf16, #tpu.memory_space<vmem>>, vector<144x80xbf16>
    %cst = arith.constant dense<0.000000e+00> : vector<32x80xf32>
    %2 = tpu.matmul %0, %1, %cst {dimension_numbers = #tpu.dot_dimension_numbers<[1], [0], [0], [1], [0, 0, 1, 1], [], []>} : vector<32x144xbf16>, vector<144x80xbf16>, vector<32x80xf32> -> vector<32x80xf32>
    %c0_3 = arith.constant 0 : index
    %c0_4 = arith.constant 0 : index
    %3 = vector.load %arg2[%c0_3, %c0_4] : memref<32x1xf32, #tpu.memory_space<vmem>>, vector<32x1xf32>
    %4 = vector.broadcast %3 : vector<32x1xf32> to vector<32x80xf32>
    %5 = arith.addf %2, %4 : vector<32x80xf32>
    %cst_5 = arith.constant 0.000000e+00 : f32
    %6 = vector.broadcast %cst_5 : f32 to vector<32x80xf32>
    %7 = arith.maximumf %5, %6 : vector<32x80xf32>
    %8 = arith.truncf %7 : vector<32x80xf32> to vector<32x80xbf16>
    %c0_6 = arith.constant 0 : index
    %c0_7 = arith.constant 0 : index
    %9 = vector.load %arg3[%c0_6, %c0_7] : memref<32x80xbf16, #tpu.memory_space<vmem>>, vector<32x80xbf16>
    tpu.vector_store %arg3[%c0_6, %c0_7], %8 {strides = array<i32>} : memref<32x80xbf16, #tpu.memory_space<vmem>>, vector<32x80xbf16>,
    return
  }
}

module attributes {stable_mosaic.version = 11 : i64} {
  func.func @_fc_head_kernel(%arg0: memref<2x1280xbf16, #tpu.memory_space<vmem>>, %arg1: memref<2x4xf32, #tpu.memory_space<vmem>>, %arg2: memref<1x1280xf32, #tpu.memory_space<vmem>>, %arg3: memref<1x1280xf32, #tpu.memory_space<vmem>>, %arg4: memref<1x4xf32, #tpu.memory_space<vmem>>, %arg5: memref<1x4xf32, #tpu.memory_space<vmem>>, %arg6: memref<1280x256xbf16, #tpu.memory_space<vmem>>, %arg7: memref<4x256xbf16, #tpu.memory_space<vmem>>, %arg8: memref<1x256xf32, #tpu.memory_space<vmem>>, %arg9: memref<1x256xf32, #tpu.memory_space<vmem>>, %arg10: memref<1x256xf32, #tpu.memory_space<vmem>>, %arg11: memref<256x19xbf16, #tpu.memory_space<vmem>>, %arg12: memref<1x19xf32, #tpu.memory_space<vmem>>, %arg13: memref<2x19xf32, #tpu.memory_space<vmem>>) attributes {dimension_semantics = [], scalar_prefetch = 0 : i64, scratch_operands = 0 : i64, tpu.core_type = #tpu.core_type<tc>} {
    %c0 = arith.constant 0 : index
    %c0_0 = arith.constant 0 : index
    %0 = vector.load %arg0[%c0, %c0_0] : memref<2x1280xbf16, #tpu.memory_space<vmem>>, vector<2x1280xbf16>
    %1 = arith.extf %0 : vector<2x1280xbf16> to vector<2x1280xf32>
    %c0_1 = arith.constant 0 : index
    %c0_2 = arith.constant 0 : index
    %2 = vector.load %arg2[%c0_1, %c0_2] : memref<1x1280xf32, #tpu.memory_space<vmem>>, vector<1x1280xf32>
    %c0_3 = arith.constant 0 : index
    %c0_4 = arith.constant 0 : index
    %3 = vector.load %arg3[%c0_3, %c0_4] : memref<1x1280xf32, #tpu.memory_space<vmem>>, vector<1x1280xf32>
    %cst = arith.constant dense<0.000000e+00> : vector<1280xf32>
    %4 = vector.multi_reduction <add>, %1, %cst [0] : vector<2x1280xf32> to vector<1280xf32>
    %5 = vector.shape_cast %4 : vector<1280xf32> to vector<1x1280xf32>
    %cst_5 = arith.constant 2.000000e+00 : f32
    %6 = vector.broadcast %cst_5 : f32 to vector<1x1280xf32>
    %7 = arith.divf %5, %6 : vector<1x1280xf32>
    %8 = vector.broadcast %7 : vector<1x1280xf32> to vector<2x1280xf32>
    %9 = arith.subf %1, %8 : vector<2x1280xf32>
    %10 = arith.mulf %9, %9 : vector<2x1280xf32>
    %cst_6 = arith.constant dense<0.000000e+00> : vector<1280xf32>
    %11 = vector.multi_reduction <add>, %10, %cst_6 [0] : vector<2x1280xf32> to vector<1280xf32>
    %12 = vector.shape_cast %11 : vector<1280xf32> to vector<1x1280xf32>
    %cst_7 = arith.constant 2.000000e+00 : f32
    %13 = vector.broadcast %cst_7 : f32 to vector<1x1280xf32>
    %14 = arith.divf %12, %13 : vector<1x1280xf32>
    %cst_8 = arith.constant 9.99999974E-6 : f32
    %15 = vector.broadcast %cst_8 : f32 to vector<1x1280xf32>
    %16 = arith.addf %14, %15 : vector<1x1280xf32>
    %17 = math.rsqrt %16 : vector<1x1280xf32>
    %18 = vector.broadcast %17 : vector<1x1280xf32> to vector<2x1280xf32>
    %19 = arith.mulf %9, %18 : vector<2x1280xf32>
    %20 = vector.broadcast %2 : vector<1x1280xf32> to vector<2x1280xf32>
    %21 = arith.mulf %19, %20 : vector<2x1280xf32>
    %22 = vector.broadcast %3 : vector<1x1280xf32> to vector<2x1280xf32>
    %23 = arith.addf %21, %22 : vector<2x1280xf32>
    %c0_9 = arith.constant 0 : index
    %c0_10 = arith.constant 0 : index
    %24 = vector.load %arg1[%c0_9, %c0_10] : memref<2x4xf32, #tpu.memory_space<vmem>>, vector<2x4xf32>
    %c0_11 = arith.constant 0 : index
    %c0_12 = arith.constant 0 : index
    %25 = vector.load %arg4[%c0_11, %c0_12] : memref<1x4xf32, #tpu.memory_space<vmem>>, vector<1x4xf32>
    %c0_13 = arith.constant 0 : index
    %c0_14 = arith.constant 0 : index
    %26 = vector.load %arg5[%c0_13, %c0_14] : memref<1x4xf32, #tpu.memory_space<vmem>>, vector<1x4xf32>
    %cst_15 = arith.constant dense<0.000000e+00> : vector<4xf32>
    %27 = vector.multi_reduction <add>, %24, %cst_15 [0] : vector<2x4xf32> to vector<4xf32>
    %28 = vector.shape_cast %27 : vector<4xf32> to vector<1x4xf32>
    %cst_16 = arith.constant 2.000000e+00 : f32
    %29 = vector.broadcast %cst_16 : f32 to vector<1x4xf32>
    %30 = arith.divf %28, %29 : vector<1x4xf32>
    %31 = vector.broadcast %30 : vector<1x4xf32> to vector<2x4xf32>
    %32 = arith.subf %24, %31 : vector<2x4xf32>
    %33 = arith.mulf %32, %32 : vector<2x4xf32>
    %cst_17 = arith.constant dense<0.000000e+00> : vector<4xf32>
    %34 = vector.multi_reduction <add>, %33, %cst_17 [0] : vector<2x4xf32> to vector<4xf32>
    %35 = vector.shape_cast %34 : vector<4xf32> to vector<1x4xf32>
    %cst_18 = arith.constant 2.000000e+00 : f32
    %36 = vector.broadcast %cst_18 : f32 to vector<1x4xf32>
    %37 = arith.divf %35, %36 : vector<1x4xf32>
    %cst_19 = arith.constant 9.99999974E-6 : f32
    %38 = vector.broadcast %cst_19 : f32 to vector<1x4xf32>
    %39 = arith.addf %37, %38 : vector<1x4xf32>
    %40 = math.rsqrt %39 : vector<1x4xf32>
    %41 = vector.broadcast %40 : vector<1x4xf32> to vector<2x4xf32>
    %42 = arith.mulf %32, %41 : vector<2x4xf32>
    %43 = vector.broadcast %25 : vector<1x4xf32> to vector<2x4xf32>
    %44 = arith.mulf %42, %43 : vector<2x4xf32>
    %45 = vector.broadcast %26 : vector<1x4xf32> to vector<2x4xf32>
    %46 = arith.addf %44, %45 : vector<2x4xf32>
    %47 = arith.truncf %23 : vector<2x1280xf32> to vector<2x1280xbf16>
    %c0_20 = arith.constant 0 : index
    %c0_21 = arith.constant 0 : index
    %48 = vector.load %arg6[%c0_20, %c0_21] : memref<1280x256xbf16, #tpu.memory_space<vmem>>, vector<1280x256xbf16>
    %cst_22 = arith.constant dense<0.000000e+00> : vector<2x256xf32>
    %49 = tpu.matmul %47, %48, %cst_22 {dimension_numbers = #tpu.dot_dimension_numbers<[1], [0], [0], [1], [0, 0, 1, 1], [], []>} : vector<2x1280xbf16>, vector<1280x256xbf16>, vector<2x256xf32> -> vector<2x256xf32>
    %50 = arith.truncf %46 : vector<2x4xf32> to vector<2x4xbf16>
    %c0_23 = arith.constant 0 : index
    %c0_24 = arith.constant 0 : index
    %51 = vector.load %arg7[%c0_23, %c0_24] : memref<4x256xbf16, #tpu.memory_space<vmem>>, vector<4x256xbf16>
    %cst_25 = arith.constant dense<0.000000e+00> : vector<2x256xf32>
    %52 = tpu.matmul %50, %51, %cst_25 {dimension_numbers = #tpu.dot_dimension_numbers<[1], [0], [0], [1], [0, 0, 1, 1], [], []>} : vector<2x4xbf16>, vector<4x256xbf16>, vector<2x256xf32> -> vector<2x256xf32>
    %53 = arith.addf %49, %52 : vector<2x256xf32>
    %c0_26 = arith.constant 0 : index
    %c0_27 = arith.constant 0 : index
    %54 = vector.load %arg8[%c0_26, %c0_27] : memref<1x256xf32, #tpu.memory_space<vmem>>, vector<1x256xf32>
    %55 = vector.broadcast %54 : vector<1x256xf32> to vector<2x256xf32>
    %56 = arith.addf %53, %55 : vector<2x256xf32>
    %cst_28 = arith.constant 0.000000e+00 : f32
    %57 = vector.broadcast %cst_28 : f32 to vector<2x256xf32>
    %58 = arith.maximumf %56, %57 : vector<2x256xf32>
    %c0_29 = arith.constant 0 : index
    %c0_30 = arith.constant 0 : index
    %59 = vector.load %arg9[%c0_29, %c0_30] : memref<1x256xf32, #tpu.memory_space<vmem>>, vector<1x256xf32>
    %c0_31 = arith.constant 0 : index
    %c0_32 = arith.constant 0 : index
    %60 = vector.load %arg10[%c0_31, %c0_32] : memref<1x256xf32, #tpu.memory_space<vmem>>, vector<1x256xf32>
    %cst_33 = arith.constant dense<0.000000e+00> : vector<256xf32>
    %61 = vector.multi_reduction <add>, %58, %cst_33 [0] : vector<2x256xf32> to vector<256xf32>
    %62 = vector.shape_cast %61 : vector<256xf32> to vector<1x256xf32>
    %cst_34 = arith.constant 2.000000e+00 : f32
    %63 = vector.broadcast %cst_34 : f32 to vector<1x256xf32>
    %64 = arith.divf %62, %63 : vector<1x256xf32>
    %65 = vector.broadcast %64 : vector<1x256xf32> to vector<2x256xf32>
    %66 = arith.subf %58, %65 : vector<2x256xf32>
    %67 = arith.mulf %66, %66 : vector<2x256xf32>
    %cst_35 = arith.constant dense<0.000000e+00> : vector<256xf32>
    %68 = vector.multi_reduction <add>, %67, %cst_35 [0] : vector<2x256xf32> to vector<256xf32>
    %69 = vector.shape_cast %68 : vector<256xf32> to vector<1x256xf32>
    %cst_36 = arith.constant 2.000000e+00 : f32
    %70 = vector.broadcast %cst_36 : f32 to vector<1x256xf32>
    %71 = arith.divf %69, %70 : vector<1x256xf32>
    %cst_37 = arith.constant 9.99999974E-6 : f32
    %72 = vector.broadcast %cst_37 : f32 to vector<1x256xf32>
    %73 = arith.addf %71, %72 : vector<1x256xf32>
    %74 = math.rsqrt %73 : vector<1x256xf32>
    %75 = vector.broadcast %74 : vector<1x256xf32> to vector<2x256xf32>
    %76 = arith.mulf %66, %75 : vector<2x256xf32>
    %77 = vector.broadcast %59 : vector<1x256xf32> to vector<2x256xf32>
    %78 = arith.mulf %76, %77 : vector<2x256xf32>
    %79 = vector.broadcast %60 : vector<1x256xf32> to vector<2x256xf32>
    %80 = arith.addf %78, %79 : vector<2x256xf32>
    %81 = arith.truncf %80 : vector<2x256xf32> to vector<2x256xbf16>
    %c0_38 = arith.constant 0 : index
    %c0_39 = arith.constant 0 : index
    %82 = vector.load %arg11[%c0_38, %c0_39] : memref<256x19xbf16, #tpu.memory_space<vmem>>, vector<256x19xbf16>
    %cst_40 = arith.constant dense<0.000000e+00> : vector<2x19xf32>
    %83 = tpu.matmul %81, %82, %cst_40 {dimension_numbers = #tpu.dot_dimension_numbers<[1], [0], [0], [1], [0, 0, 1, 1], [], []>} : vector<2x256xbf16>, vector<256x19xbf16>, vector<2x19xf32> -> vector<2x19xf32>
    %c0_41 = arith.constant 0 : index
    %c0_42 = arith.constant 0 : index
    %84 = vector.load %arg12[%c0_41, %c0_42] : memref<1x19xf32, #tpu.memory_space<vmem>>, vector<1x19xf32>
    %85 = vector.broadcast %84 : vector<1x19xf32> to vector<2x19xf32>
    %86 = arith.addf %83, %85 : vector<2x19xf32>
    %cst_43 = arith.constant dense<0xFF800000> : vector<2xf32>
    %87 = vector.multi_reduction <maximumf>, %86, %cst_43 [1] : vector<2x19xf32> to vector<2xf32>
    %88 = vector.shape_cast %87 : vector<2xf32> to vector<2x1xf32>
    %89 = vector.broadcast %88 : vector<2x1xf32> to vector<2x19xf32>
    %90 = arith.subf %86, %89 : vector<2x19xf32>
    %91 = math.exp %90 : vector<2x19xf32>
    %cst_44 = arith.constant dense<0.000000e+00> : vector<2xf32>
    %92 = vector.multi_reduction <add>, %91, %cst_44 [1] : vector<2x19xf32> to vector<2xf32>
    %93 = vector.shape_cast %92 : vector<2xf32> to vector<2x1xf32>
    %94 = tpu.reciprocal %93 : vector<2x1xf32> -> vector<2x1xf32>
    %95 = vector.broadcast %94 : vector<2x1xf32> to vector<2x19xf32>
    %96 = arith.mulf %91, %95 : vector<2x19xf32>
    %c0_45 = arith.constant 0 : index
    %c0_46 = arith.constant 0 : index
    %97 = vector.load %arg13[%c0_45, %c0_46] : memref<2x19xf32, #tpu.memory_space<vmem>>, vector<2x19xf32>
    tpu.vector_store %arg13[%c0_45, %c0_46], %96 {strides = array<i32>} : memref<2x19xf32, #tpu.memory_space<vmem>>, vector<2x19xf32>,
    return
  }
}

</mosaic_0001>

<bundles_post_ra>
// kernel: actor_forward.5
= control target key start
LH: loop header
LB: loop body
LE: loop exit
PB: predicated region body
PF: predicated region fallthrough
CT: control target
= control target key end

     0   :  { %vm212_vm0 = vcmask 1043456   ;;  %vm406_vm1 = vcmask 781312   ;;  %vm869_vm2 = vcmask 3072   ;;  %s1665_s0 = inlined_call_operand.vmem [shape: f32[4,12512], index: 0, kind: input, shape index: {}]   ;;  %s1666_s1 = inlined_call_operand.vmem [shape: f32[4,1], index: 1, kind: input, shape index: {}]   ;;  %s1667_s2 = inlined_call_operand.vmem [shape: f32[4,1], index: 2, kind: input, shape index: {}]   ;;  %s1668_s3 = inlined_call_operand.vmem [shape: f32[4,1], index: 3, kind: output, shape index: {0}]   ;;  %s1669_s4 = inlined_call_operand.vmem [shape: f32[4,1], index: 4, kind: output, shape index: {1}]  }
   0x1   :  { %v964_v0 = vld [vmem:[%s1665_s0] sm:$0xff]  ;;  %v969_v1 = vld [vmem:[%s1665_s0 + $0x8] sm:$0xff]  ;;  %v980_v5 = vld [vmem:[%s1665_s0 + $0x10] sm:$0xff] }
   0x2   :  { %v114_v2 = vcombine.high %v964_v0, %v964_v0  ;;  %v115_v3 = vcombine.high %v969_v1, %v969_v1  ;;  %v213_v4 = vsel %vm212_vm0, %v964_v0, 0.0  ;;  %v216_v7 = vsel %vm212_vm0, %v969_v1, 0.0  ;;  %v991_v11 = vld [vmem:[%s1665_s0 + $0x18] sm:$0xff]  ;;  %v1001_v17 = vld [vmem:[%s1665_s0 + $0x20] sm:$0xff]  ;;  %v1011_v23 = vld [vmem:[%s1665_s0 + $0x28] sm:$0xff] }
   0x3   :  { %v116_v9 = vcombine.high %v980_v5, %v980_v5  ;;  %v220_v13 = vsel %vm212_vm0, %v980_v5, 0.0  ;;  %v117_v15 = vcombine.high %v991_v11, %v991_v11  ;;  %v224_v19 = vsel %vm212_vm0, %v991_v11, 0.0  ;;  %v1021_v29 = vld [vmem:[%s1665_s0 + $0x30] sm:$0xff]  ;;  %v1031_v35 = vld [vmem:[%s1665_s0 + $0x38] sm:$0xff]  ;;  %v1041_v41 = vld [vmem:[%s1665_s0 + $0x40] sm:$0xff] }
   0x4   :  { %v214_v6 = vsel %vm212_vm0, %v114_v2, 0.0  ;;  %v218_v10 = vsel %vm212_vm0, %v115_v3, 0.0  ;;  %v118_v21 = vcombine.high %v1001_v17, %v1001_v17  ;;  %v228_v25 = vsel %vm212_vm0, %v1001_v17, 0.0  ;;  %v1051_v47 = vld [vmem:[%s1665_s0 + $0x48] sm:$0xff]  ;;  %v1061_v53 = vld [vmem:[%s1665_s0 + $0x50] sm:$0xff]  ;;  %v1071_v59 = vld [vmem:[%s1665_s0 + $0x58] sm:$0xff] }
   0x5   :  { %v215_v8 = vadd.f32 %v214_v6, %v213_v4  ;;  %v222_v16 = vsel %vm212_vm0, %v116_v9, 0.0  ;;  %v226_v22 = vsel %vm212_vm0, %v117_v15, 0.0  ;;  %v119_v27 = vcombine.high %v1011_v23, %v1011_v23  ;;  %v1081_v3 = vld [vmem:[%s1665_s0 + $0x60] sm:$0xff] }
   0x6   :  { %v230_v28 = vsel %vm212_vm0, %v118_v21, 0.0  ;;  %v232_v31 = vsel %vm212_vm0, %v1011_v23, 0.0  ;;  %v120_v33 = vcombine.high %v1021_v29, %v1021_v29  ;;  %v236_v37 = vsel %vm212_vm0, %v1021_v29, 0.0 }
   0x7   :  { %v217_v12 = vadd.f32 %v216_v7, %v215_v8  ;;  %v234_v34 = vsel %vm212_vm0, %v119_v27, 0.0  ;;  %v121_v39 = vcombine.high %v1031_v35, %v1031_v35  ;;  %v240_v43 = vsel %vm212_vm0, %v1031_v35, 0.0 }
   0x8   :  { %v238_v40 = vsel %vm212_vm0, %v120_v33, 0.0  ;;  %v122_v45 = vcombine.high %v1041_v41, %v1041_v41  ;;  %v244_v49 = vsel %vm212_vm0, %v1041_v41, 0.0  ;;  %v123_v51 = vcombine.high %v1051_v47, %v1051_v47 }
   0x9   :  { %v219_v14 = vadd.f32 %v218_v10, %v217_v12  ;;  %v242_v46 = vsel %vm212_vm0, %v121_v39, 0.0  ;;  %v248_v55 = vsel %vm212_vm0, %v1051_v47, 0.0  ;;  %v124_v57 = vcombine.high %v1061_v53, %v1061_v53  ;;  %v1091_v10 = vld [vmem:[%s1665_s0 + $0x68] sm:$0xff] }
   0xa   :  { %v246_v52 = vsel %vm212_vm0, %v122_v45, 0.0  ;;  %v250_v58 = vsel %vm212_vm0, %v123_v51, 0.0  ;;  %v252_v61 = vsel %vm212_vm0, %v1061_v53, 0.0  ;;  %v125_v63 = vcombine.high %v1071_v59, %v1071_v59  ;;  %v1131_v39 = vld [vmem:[%s1665_s0 + $0x88] sm:$0xff] }
   0xb   :  { %v221_v18 = vadd.f32 %v220_v13, %v219_v14  ;;  %v254_v2 = vsel %vm212_vm0, %v124_v57, 0.0  ;;  %v256_v6 = vsel %vm212_vm0, %v1071_v59, 0.0  ;;  %v126_v8 = vcombine.high %v1081_v3, %v1081_v3 }
   0xc   :  { %v258_v9 = vsel %vm212_vm0, %v125_v63, 0.0  ;;  %v260_v13 = vsel %vm212_vm0, %v1081_v3, 0.0  ;;  %v127_v15 = vcombine.high %v1091_v10, %v1091_v10 }
   0xd   :  { %v223_v20 = vadd.f32 %v222_v16, %v221_v18  ;;  %v262_v16 = vsel %vm212_vm0, %v126_v8, 0.0  ;;  %v1101_v18 = vld [vmem:[%s1665_s0 + $0x70] sm:$0xff] }
   0xe   :  { %v268_v27 = vsel %vm212_vm0, %v1101_v18, 0.0 }
   0xf   :  { %v225_v24 = vadd.f32 %v224_v19, %v223_v20  ;;  %v264_v20 = vsel %vm212_vm0, %v1091_v10, 0.0 }
  0x11   :  { %v227_v26 = vadd.f32 %v226_v22, %v225_v24  ;;  %v128_v22 = vcombine.high %v1101_v18, %v1101_v18  ;;  %v266_v24 = vsel %vm212_vm0, %v127_v15, 0.0  ;;  %v1181_v15 = vld [vmem:[%s1665_s0 + $0xb0] sm:$0xff] }
  0x13   :  { %v229_v30 = vadd.f32 %v228_v25, %v227_v26  ;;  %v1111_v25 = vld [vmem:[%s1665_s0 + $0x78] sm:$0xff] }
  0x15   :  { %v231_v32 = vadd.f32 %v230_v28, %v229_v30  ;;  %v129_v30 = vcombine.high %v1111_v25, %v1111_v25 }
  0x17   :  { %v233_v36 = vadd.f32 %v232_v31, %v231_v32  ;;  %v270_v31 = vsel %vm212_vm0, %v128_v22, 0.0  ;;  %v1121_v32 = vld [vmem:[%s1665_s0 + $0x80] sm:$0xff] }
  0x19   :  { %v235_v38 = vadd.f32 %v234_v34, %v233_v36  ;;  %v272_v34 = vsel %vm212_vm0, %v1111_v25, 0.0 }
  0x1b   :  { %v237_v42 = vadd.f32 %v236_v37, %v235_v38  ;;  %v130_v37 = vcombine.high %v1121_v32, %v1121_v32  ;;  %v274_v38 = vsel %vm212_vm0, %v129_v30, 0.0 }
  0x1d   :  { %v239_v44 = vadd.f32 %v238_v40, %v237_v42  ;;  %v276_v42 = vsel %vm212_vm0, %v1121_v32, 0.0  ;;  %v278_v45 = vsel %vm212_vm0, %v130_v37, 0.0 }
  0x1f   :  { %v241_v48 = vadd.f32 %v240_v43, %v239_v44  ;;  %v131_v44 = vcombine.high %v1131_v39, %v1131_v39 }
  0x21   :  { %v243_v50 = vadd.f32 %v242_v46, %v241_v48  ;;  %v1141_v46 = vld [vmem:[%s1665_s0 + $0x90] sm:$0xff] }
  0x22   :  { %v132_v51 = vcombine.high %v1141_v46, %v1141_v46 }
  0x23   :  { %v245_v54 = vadd.f32 %v244_v49, %v243_v50  ;;  %v280_v49 = vsel %vm212_vm0, %v1131_v39, 0.0 }
  0x25   :  { %v247_v56 = vadd.f32 %v246_v52, %v245_v54  ;;  %v282_v52 = vsel %vm212_vm0, %v131_v44, 0.0  ;;  %v1151_v54 = vld [vmem:[%s1665_s0 + $0x98] sm:$0xff] }
  0x26   :  { %v288_v63 = vsel %vm212_vm0, %v1151_v54, 0.0 }
  0x27   :  { %v249_v60 = vadd.f32 %v248_v55, %v247_v56  ;;  %v284_v56 = vsel %vm212_vm0, %v1141_v46, 0.0 }
  0x29   :  { %v251_v62 = vadd.f32 %v250_v58, %v249_v60  ;;  %v133_v58 = vcombine.high %v1151_v54, %v1151_v54  ;;  %v286_v60 = vsel %vm212_vm0, %v132_v51, 0.0 }
  0x2b   :  { %v253_v4 = vadd.f32 %v252_v61, %v251_v62  ;;  %v1161_v61 = vld [vmem:[%s1665_s0 + $0xa0] sm:$0xff] }
  0x2d   :  { %v255_v7 = vadd.f32 %v254_v2, %v253_v4  ;;  %v134_v4 = vcombine.high %v1161_v61, %v1161_v61 }
  0x2f   :  { %v257_v12 = vadd.f32 %v256_v6, %v255_v7  ;;  %v290_v6 = vsel %vm212_vm0, %v133_v58, 0.0  ;;  %v1171_v7 = vld [vmem:[%s1665_s0 + $0xa8] sm:$0xff]  ;;  %v1231_v58 = vld [vmem:[%s1665_s0 + $0xd8] sm:$0xff] }
  0x31   :  { %v259_v14 = vadd.f32 %v258_v9, %v257_v12  ;;  %v292_v9 = vsel %vm212_vm0, %v1161_v61, 0.0 }
  0x33   :  { %v261_v19 = vadd.f32 %v260_v13, %v259_v14  ;;  %v135_v13 = vcombine.high %v1171_v7, %v1171_v7  ;;  %v294_v14 = vsel %vm212_vm0, %v134_v4, 0.0 }
  0x35   :  { %v263_v21 = vadd.f32 %v262_v16, %v261_v19  ;;  %v296_v19 = vsel %vm212_vm0, %v1171_v7, 0.0  ;;  %v298_v22 = vsel %vm212_vm0, %v135_v13, 0.0 }
  0x37   :  { %v265_v26 = vadd.f32 %v264_v20, %v263_v21  ;;  %v136_v21 = vcombine.high %v1181_v15, %v1181_v15 }
  0x39   :  { %v267_v28 = vadd.f32 %v266_v24, %v265_v26  ;;  %v1191_v24 = vld [vmem:[%s1665_s0 + $0xb8] sm:$0xff] }
  0x3a   :  { %v137_v30 = vcombine.high %v1191_v24, %v1191_v24 }
  0x3b   :  { %v269_v33 = vadd.f32 %v268_v27, %v267_v28  ;;  %v300_v27 = vsel %vm212_vm0, %v1181_v15, 0.0 }
  0x3d   :  { %v271_v36 = vadd.f32 %v270_v31, %v269_v33  ;;  %v302_v31 = vsel %vm212_vm0, %v136_v21, 0.0  ;;  %v1201_v33 = vld [vmem:[%s1665_s0 + $0xc0] sm:$0xff] }
  0x3e   :  { %v308_v44 = vsel %vm212_vm0, %v1201_v33, 0.0 }
  0x3f   :  { %v273_v40 = vadd.f32 %v272_v34, %v271_v36  ;;  %v304_v36 = vsel %vm212_vm0, %v1191_v24, 0.0 }
  0x41   :  { %v275_v43 = vadd.f32 %v274_v38, %v273_v40  ;;  %v138_v38 = vcombine.high %v1201_v33, %v1201_v33  ;;  %v306_v40 = vsel %vm212_vm0, %v137_v30, 0.0 }
  0x43   :  { %v277_v48 = vadd.f32 %v276_v42, %v275_v43  ;;  %v1211_v42 = vld [vmem:[%s1665_s0 + $0xc8] sm:$0xff] }
  0x45   :  { %v279_v50 = vadd.f32 %v278_v45, %v277_v48  ;;  %v139_v48 = vcombine.high %v1211_v42, %v1211_v42 }
  0x47   :  { %v281_v55 = vadd.f32 %v280_v49, %v279_v50  ;;  %v310_v49 = vsel %vm212_vm0, %v138_v38, 0.0  ;;  %v1221_v50 = vld [vmem:[%s1665_s0 + $0xd0] sm:$0xff] }
  0x49   :  { %v283_v57 = vadd.f32 %v282_v52, %v281_v55  ;;  %v312_v52 = vsel %vm212_vm0, %v1211_v42, 0.0 }
  0x4b   :  { %v285_v62 = vadd.f32 %v284_v56, %v283_v57  ;;  %v140_v56 = vcombine.high %v1221_v50, %v1221_v50  ;;  %v314_v57 = vsel %vm212_vm0, %v139_v48, 0.0  ;;  %v1281_v48 = vld [vmem:[%s1665_s0 + $0x100] sm:$0xff] }
  0x4d   :  { %v287_v2 = vadd.f32 %v286_v60, %v285_v62  ;;  %v316_v62 = vsel %vm212_vm0, %v1221_v50, 0.0  ;;  %v318_v4 = vsel %vm212_vm0, %v140_v56, 0.0 }
  0x4f   :  { %v289_v8 = vadd.f32 %v288_v63, %v287_v2  ;;  %v141_v2 = vcombine.high %v1231_v58, %v1231_v58 }
  0x51   :  { %v291_v12 = vadd.f32 %v290_v6, %v289_v8  ;;  %v1241_v6 = vld [vmem:[%s1665_s0 + $0xe0] sm:$0xff] }
  0x52   :  { %v142_v13 = vcombine.high %v1241_v6, %v1241_v6 }
  0x53   :  { %v293_v16 = vadd.f32 %v292_v9, %v291_v12  ;;  %v320_v9 = vsel %vm212_vm0, %v1231_v58, 0.0 }
  0x55   :  { %v295_v20 = vadd.f32 %v294_v14, %v293_v16  ;;  %v322_v14 = vsel %vm212_vm0, %v141_v2, 0.0  ;;  %v1251_v16 = vld [vmem:[%s1665_s0 + $0xe8] sm:$0xff] }
  0x56   :  { %v328_v30 = vsel %vm212_vm0, %v1251_v16, 0.0 }
  0x57   :  { %v297_v26 = vadd.f32 %v296_v19, %v295_v20  ;;  %v324_v20 = vsel %vm212_vm0, %v1241_v6, 0.0 }
  0x59   :  { %v299_v28 = vadd.f32 %v298_v22, %v297_v26  ;;  %v143_v22 = vcombine.high %v1251_v16, %v1251_v16  ;;  %v326_v26 = vsel %vm212_vm0, %v142_v13, 0.0 }
  0x5b   :  { %v301_v34 = vadd.f32 %v300_v27, %v299_v28  ;;  %v1261_v27 = vld [vmem:[%s1665_s0 + $0xf0] sm:$0xff] }
  0x5d   :  { %v303_v37 = vadd.f32 %v302_v31, %v301_v34  ;;  %v144_v34 = vcombine.high %v1261_v27, %v1261_v27 }
  0x5f   :  { %v305_v43 = vadd.f32 %v304_v36, %v303_v37  ;;  %v330_v36 = vsel %vm212_vm0, %v143_v22, 0.0  ;;  %v1271_v37 = vld [vmem:[%s1665_s0 + $0xf8] sm:$0xff] }
  0x61   :  { %v307_v45 = vadd.f32 %v306_v40, %v305_v43  ;;  %v332_v40 = vsel %vm212_vm0, %v1261_v27, 0.0 }
  0x63   :  { %v309_v51 = vadd.f32 %v308_v44, %v307_v45  ;;  %v145_v44 = vcombine.high %v1271_v37, %v1271_v37  ;;  %v334_v45 = vsel %vm212_vm0, %v144_v34, 0.0 }
  0x65   :  { %v311_v55 = vadd.f32 %v310_v49, %v309_v51  ;;  %v336_v51 = vsel %vm212_vm0, %v1271_v37, 0.0  ;;  %v338_v56 = vsel %vm212_vm0, %v145_v44, 0.0  ;;  %v1331_v44 = vld [vmem:[%s1665_s0 + $0x128] sm:$0xff] }
  0x67   :  { %v313_v60 = vadd.f32 %v312_v52, %v311_v55  ;;  %v146_v55 = vcombine.high %v1281_v48, %v1281_v48 }
  0x69   :  { %v315_v63 = vadd.f32 %v314_v57, %v313_v60  ;;  %v1291_v57 = vld [vmem:[%s1665_s0 + $0x108] sm:$0xff] }
  0x6a   :  { %v147_v2 = vcombine.high %v1291_v57, %v1291_v57 }
  0x6b   :  { %v317_v8 = vadd.f32 %v316_v62, %v315_v63  ;;  %v340_v62 = vsel %vm212_vm0, %v1281_v48, 0.0 }
  0x6d   :  { %v319_v12 = vadd.f32 %v318_v4, %v317_v8  ;;  %v342_v4 = vsel %vm212_vm0, %v146_v55, 0.0  ;;  %v1301_v8 = vld [vmem:[%s1665_s0 + $0x110] sm:$0xff] }
  0x6e   :  { %v348_v22 = vsel %vm212_vm0, %v1301_v8, 0.0 }
  0x6f   :  { %v321_v19 = vadd.f32 %v320_v9, %v319_v12  ;;  %v344_v12 = vsel %vm212_vm0, %v1291_v57, 0.0 }
  0x71   :  { %v323_v21 = vadd.f32 %v322_v14, %v321_v19  ;;  %v148_v14 = vcombine.high %v1301_v8, %v1301_v8  ;;  %v346_v19 = vsel %vm212_vm0, %v147_v2, 0.0 }
  0x73   :  { %v325_v28 = vadd.f32 %v324_v20, %v323_v21  ;;  %v1311_v20 = vld [vmem:[%s1665_s0 + $0x118] sm:$0xff] }
  0x75   :  { %v327_v31 = vadd.f32 %v326_v26, %v325_v28  ;;  %v149_v28 = vcombine.high %v1311_v20, %v1311_v20 }
  0x77   :  { %v329_v38 = vadd.f32 %v328_v30, %v327_v31  ;;  %v350_v30 = vsel %vm212_vm0, %v148_v14, 0.0  ;;  %v1321_v31 = vld [vmem:[%s1665_s0 + $0x120] sm:$0xff] }
  0x79   :  { %v331_v43 = vadd.f32 %v330_v36, %v329_v38  ;;  %v352_v36 = vsel %vm212_vm0, %v1311_v20, 0.0 }
  0x7b   :  { %v333_v49 = vadd.f32 %v332_v40, %v331_v43  ;;  %v150_v40 = vcombine.high %v1321_v31, %v1321_v31  ;;  %v354_v43 = vsel %vm212_vm0, %v149_v28, 0.0 }
  0x7d   :  { %v335_v52 = vadd.f32 %v334_v45, %v333_v49  ;;  %v356_v49 = vsel %vm212_vm0, %v1321_v31, 0.0  ;;  %v358_v55 = vsel %vm212_vm0, %v150_v40, 0.0 }
  0x7f   :  { %v337_v60 = vadd.f32 %v336_v51, %v335_v52  ;;  %v151_v52 = vcombine.high %v1331_v44, %v1331_v44 }
  0x81   :  { %v339_v63 = vadd.f32 %v338_v56, %v337_v60  ;;  %v1341_v56 = vld [vmem:[%s1665_s0 + $0x130] sm:$0xff] }
  0x82   :  { %v152_v2 = vcombine.high %v1341_v56, %v1341_v56 }
  0x83   :  { %v341_v9 = vadd.f32 %v340_v62, %v339_v63  ;;  %v360_v62 = vsel %vm212_vm0, %v1331_v44, 0.0 }
  0x85   :  { %v343_v13 = vadd.f32 %v342_v4, %v341_v9  ;;  %v362_v4 = vsel %vm212_vm0, %v151_v52, 0.0  ;;  %v1351_v9 = vld [vmem:[%s1665_s0 + $0x138] sm:$0xff]  ;;  %v1381_v52 = vld [vmem:[%s1665_s0 + $0x150] sm:$0xff] }
  0x86   :  { %v368_v28 = vsel %vm212_vm0, %v1351_v9, 0.0 }
  0x87   :  { %v345_v21 = vadd.f32 %v344_v12, %v343_v13  ;;  %v364_v13 = vsel %vm212_vm0, %v1341_v56, 0.0 }
  0x89   :  { %v347_v26 = vadd.f32 %v346_v19, %v345_v21  ;;  %v153_v19 = vcombine.high %v1351_v9, %v1351_v9  ;;  %v366_v21 = vsel %vm212_vm0, %v152_v2, 0.0 }
  0x8b   :  { %v349_v34 = vadd.f32 %v348_v22, %v347_v26  ;;  %v1361_v22 = vld [vmem:[%s1665_s0 + $0x140] sm:$0xff] }
  0x8d   :  { %v351_v38 = vadd.f32 %v350_v30, %v349_v34  ;;  %v154_v34 = vcombine.high %v1361_v22, %v1361_v22 }
  0x8f   :  { %v353_v45 = vadd.f32 %v352_v36, %v351_v38  ;;  %v370_v36 = vsel %vm212_vm0, %v153_v19, 0.0  ;;  %v1371_v38 = vld [vmem:[%s1665_s0 + $0x148] sm:$0xff] }
  0x91   :  { %v355_v51 = vadd.f32 %v354_v43, %v353_v45  ;;  %v372_v43 = vsel %vm212_vm0, %v1361_v22, 0.0 }
  0x93   :  { %v357_v60 = vadd.f32 %v356_v49, %v355_v51  ;;  %v155_v49 = vcombine.high %v1371_v38, %v1371_v38  ;;  %v374_v51 = vsel %vm212_vm0, %v154_v34, 0.0 }
  0x95   :  { %v359_v63 = vadd.f32 %v358_v55, %v357_v60  ;;  %v376_v60 = vsel %vm212_vm0, %v1371_v38, 0.0  ;;  %v378_v2 = vsel %vm212_vm0, %v155_v49, 0.0 }
  0x97   :  { %v361_v12 = vadd.f32 %v360_v62, %v359_v63  ;;  %v156_v63 = vcombine.high %v1381_v52, %v1381_v52 }
  0x99   :  { %v363_v14 = vadd.f32 %v362_v4, %v361_v12  ;;  %v1391_v4 = vld [vmem:[%s1665_s0 + $0x158] sm:$0xff] }
  0x9a   :  { %v157_v19 = vcombine.high %v1391_v4, %v1391_v4 }
  0x9b   :  { %v365_v26 = vadd.f32 %v364_v13, %v363_v14  ;;  %v380_v13 = vsel %vm212_vm0, %v1381_v52, 0.0 }
  0x9d   :  { %v367_v30 = vadd.f32 %v366_v21, %v365_v26  ;;  %v382_v21 = vsel %vm212_vm0, %v156_v63, 0.0  ;;  %v1401_v26 = vld [vmem:[%s1665_s0 + $0x160] sm:$0xff] }
  0x9e   :  { %v388_v49 = vsel %vm212_vm0, %v1401_v26, 0.0 }
  0x9f   :  { %v369_v40 = vadd.f32 %v368_v28, %v367_v30  ;;  %v384_v30 = vsel %vm212_vm0, %v1391_v4, 0.0 }
  0xa1   :  { %v371_v45 = vadd.f32 %v370_v36, %v369_v40  ;;  %v158_v36 = vcombine.high %v1401_v26, %v1401_v26  ;;  %v386_v40 = vsel %vm212_vm0, %v157_v19, 0.0  ;;  %v1431_v19 = vld [vmem:[%s1665_s0 + $0x178] sm:$0xff] }
  0xa2   :  { %1675 = vst [vmem:[#allocation4_spill] sm:$0xff] %v1431_v19 }
  0xa3   :  { %v373_v55 = vadd.f32 %v372_v43, %v371_v45  ;;  %v1411_v43 = vld [vmem:[%s1665_s0 + $0x168] sm:$0xff] }
  0xa4   :  { %1673 = vst [vmem:[#allocation2_spill] sm:$0xff] %v1411_v43 }
  0xa5   :  { %v375_v62 = vadd.f32 %v374_v51, %v373_v55  ;;  %v159_v55 = vcombine.high %v1411_v43, %v1411_v43 }
  0xa7   :  { %v377_v12 = vadd.f32 %v376_v60, %v375_v62  ;;  %v390_v60 = vsel %vm212_vm0, %v158_v36, 0.0  ;;  %v1421_v62 = vld [vmem:[%s1665_s0 + $0x170] sm:$0xff] }
  0xa8   :  { %1674 = vst [vmem:[#allocation3_spill] sm:$0xff] %v1421_v62 }
  0xa9   :  { %v379_v14 = vadd.f32 %v378_v2, %v377_v12  ;;  %v392_v2 = vsel %vm212_vm0, %v1411_v43, 0.0 }
  0xab   :  { %v381_v28 = vadd.f32 %v380_v13, %v379_v14  ;;  %v160_v13 = vcombine.high %v1421_v62, %v1421_v62  ;;  %v394_v14 = vsel %vm212_vm0, %v159_v55, 0.0 }
  0xad   :  { %v383_v34 = vadd.f32 %v382_v21, %v381_v28  ;;  %v396_v28 = vsel %vm212_vm0, %v1421_v62, 0.0  ;;  %v398_v36 = vsel %vm212_vm0, %v160_v13, 0.0 }
  0xaf   :  { %v385_v45 = vadd.f32 %v384_v30, %v383_v34  ;;  %v161_v34 = vcombine.high %v1431_v19, %v1431_v19 }
  0xb1   :  { %v387_v51 = vadd.f32 %v386_v40, %v385_v45  ;;  %v1441_v40 = vld [vmem:[%s1665_s0 + $0x180] sm:$0xff] }
  0xb2   :  { %v162_v55 = vcombine.high %v1441_v40, %v1441_v40 }
  0xb3   :  { %v389_v63 = vadd.f32 %v388_v49, %v387_v51  ;;  %v400_v49 = vsel %vm212_vm0, %v1431_v19, 0.0  ;;  %v417_v19 = vlaneseq }
  0xb4   :  { %v407_v13 = vsel %vm406_vm1, %v162_v55, 0.0 }
  0xb5   :  { %v391_v12 = vadd.f32 %v390_v60, %v389_v63  ;;  %v402_v60 = vsel %vm212_vm0, %v161_v34, 0.0 }
  0xb7   :  { %v393_v21 = vadd.f32 %v392_v2, %v391_v12  ;;  %v404_v2 = vsel %vm212_vm0, %v1441_v40, 0.0 }
  0xb9   :  { %v395_v30 = vadd.f32 %v394_v14, %v393_v21 }
  0xbb   :  { %v397_v45 = vadd.f32 %v396_v28, %v395_v30  ;;  %v935_v28 = vmov 839922192  }
  0xbc   :  { %v415_v30 = vunpack.c.l.s4 %v935_v28 }
  0xbd   :  { %v399_v51 = vadd.f32 %v398_v36, %v397_v45  ;;  %v418_v45 = vshrl.u32 %v417_v19, 7 }
  0xbe   :  { %v416_v36 = vunpack.c.0.s8 %v415_v30 }
  0xbf   :  { %v401_v63 = vadd.f32 %v400_v49, %v399_v51 }
  0xc0   :  { %v419_v34 = vsub.s32 %v416_v36, %v418_v45 }
  0xc1   :  { %v403_v12 = vadd.f32 %v402_v60, %v401_v63 }
  0xc3   :  { %v405_v14 = vadd.f32 %v404_v2, %v403_v12 }
  0xc5   :  { %v408_v21 = vadd.f32 %v407_v13, %v405_v14 }
  0xc7   :  { %409 = vadd.xlane.f32.xlu0 %v408_v21 }
 0x154   :  { %v410_v62 = vpop.xlane.xlu0 %409 }
 0x155   :  { %v1451_v43 = vmul.f32 7.992327e-05, %v410_v62 }
 0x157   :  { %v1454_v49 = vrot.slane %v1451_v43, %v419_v34 }
 0x159   :  { %v422_v51 = vsub.f32 %v964_v0, %v1454_v49  ;;  %v423_v55 = vsub.f32 %v969_v1, %v1454_v49  ;;  %v424_v63 = vsub.f32 %v980_v5, %v1454_v49  ;;  %v425_v62 = vsub.f32 %v991_v11, %v1454_v49 }
 0x15a   :  { %v426_v1 = vsub.f32 %v1001_v17, %v1454_v49  ;;  %v428_v17 = vsub.f32 %v1021_v29, %v1454_v49  ;;  %v430_v29 = vsub.f32 %v1041_v41, %v1454_v49  ;;  %v432_v41 = vsub.f32 %v1061_v53, %v1454_v49 }
 0x15b   :  { %v471_v60 = vmul.f32 %v422_v51, %v422_v51  ;;  %v472_v2 = vmul.f32 %v423_v55, %v423_v55  ;;  %v473_v19 = vmul.f32 %v424_v63, %v424_v63  ;;  %v474_v36 = vmul.f32 %v425_v62, %v425_v62 }
 0x15c   :  { %v427_v55 = vsub.f32 %v1011_v23, %v1454_v49  ;;  %v429_v23 = vsub.f32 %v1031_v35, %v1454_v49  ;;  %v431_v35 = vsub.f32 %v1051_v47, %v1454_v49  ;;  %v433_v47 = vsub.f32 %v1071_v59, %v1454_v49 }
 0x15d   :  { %v569_v12 = vcombine.high %v471_v60, %v471_v60  ;;  %v570_v13 = vcombine.high %v472_v2, %v472_v2  ;;  %v667_v14 = vsel %vm212_vm0, %v471_v60, 0.0  ;;  %v670_v0 = vsel %vm212_vm0, %v472_v2, 0.0 }
 0x15e   :  { %v571_v5 = vcombine.high %v473_v19, %v473_v19  ;;  %v674_v11 = vsel %vm212_vm0, %v473_v19, 0.0  ;;  %v475_v60 = vmul.f32 %v426_v1, %v426_v1  ;;  %v572_v63 = vcombine.high %v474_v36, %v474_v36 }
 0x15f   :  { %v668_v21 = vsel %vm212_vm0, %v569_v12, 0.0  ;;  %v672_v45 = vsel %vm212_vm0, %v570_v13, 0.0  ;;  %v476_v62 = vmul.f32 %v427_v55, %v427_v55  ;;  %v477_v1 = vmul.f32 %v428_v17, %v428_v17 }
 0x160   :  { %v669_v28 = vadd.f32 %v668_v21, %v667_v14  ;;  %v676_v12 = vsel %vm212_vm0, %v571_v5, 0.0  ;;  %v678_v14 = vsel %vm212_vm0, %v474_v36, 0.0  ;;  %v573_v13 = vcombine.high %v475_v60, %v475_v60 }
 0x161   :  { %v574_v5 = vcombine.high %v476_v62, %v476_v62  ;;  %v575_v55 = vcombine.high %v477_v1, %v477_v1  ;;  %v434_v53 = vsub.f32 %v1081_v3, %v1454_v49  ;;  %v435_v59 = vsub.f32 %v1091_v10, %v1454_v49 }
 0x162   :  { %v671_v30 = vadd.f32 %v670_v0, %v669_v28  ;;  %v680_v28 = vsel %vm212_vm0, %v572_v63, 0.0  ;;  %v682_v0 = vsel %vm212_vm0, %v475_v60, 0.0  ;;  %v436_v3 = vsub.f32 %v1101_v18, %v1454_v49 }
 0x163   :  { %v688_v63 = vsel %vm212_vm0, %v574_v5, 0.0  ;;  %v692_v17 = vsel %vm212_vm0, %v575_v55, 0.0  ;;  %v482_v55 = vmul.f32 %v433_v47, %v433_v47  ;;  %v437_v10 = vsub.f32 %v1111_v25, %v1454_v49 }
 0x164   :  { %v673_v34 = vadd.f32 %v672_v45, %v671_v30  ;;  %v684_v45 = vsel %vm212_vm0, %v573_v13, 0.0  ;;  %v438_v18 = vsub.f32 %v1121_v32, %v1454_v49  ;;  %v439_v25 = vsub.f32 %v1131_v39, %v1454_v49 }
 0x165   :  { %v440_v32 = vsub.f32 %v1141_v46, %v1454_v49  ;;  %v441_v39 = vsub.f32 %v1151_v54, %v1454_v49  ;;  %v442_v46 = vsub.f32 %v1161_v61, %v1454_v49  ;;  %v443_v54 = vsub.f32 %v1171_v7, %v1454_v49 }
 0x166   :  { %v675_v51 = vadd.f32 %v674_v11, %v673_v34  ;;  %v686_v34 = vsel %vm212_vm0, %v476_v62, 0.0  ;;  %v444_v61 = vsub.f32 %v1181_v15, %v1454_v49  ;;  %v445_v7 = vsub.f32 %v1191_v24, %v1454_v49 }
 0x167   :  { %v446_v15 = vsub.f32 %v1201_v33, %v1454_v49  ;;  %v447_v24 = vsub.f32 %v1211_v42, %v1454_v49  ;;  %v448_v33 = vsub.f32 %v1221_v50, %v1454_v49  ;;  %v449_v42 = vsub.f32 %v1231_v58, %v1454_v49 }
 0x168   :  { %v677_v2 = vadd.f32 %v676_v12, %v675_v51  ;;  %v478_v51 = vmul.f32 %v429_v23, %v429_v23  ;;  %v690_v12 = vsel %vm212_vm0, %v477_v1, 0.0  ;;  %v450_v50 = vsub.f32 %v1241_v6, %v1454_v49 }
 0x169   :  { %v451_v58 = vsub.f32 %v1251_v16, %v1454_v49  ;;  %v452_v6 = vsub.f32 %v1261_v27, %v1454_v49  ;;  %v453_v16 = vsub.f32 %v1271_v37, %v1454_v49  ;;  %v454_v27 = vsub.f32 %v1281_v48, %v1454_v49 }
 0x16a   :  { %v679_v21 = vadd.f32 %v678_v14, %v677_v2  ;;  %v479_v14 = vmul.f32 %v430_v29, %v430_v29  ;;  %v694_v13 = vsel %vm212_vm0, %v478_v51, 0.0  ;;  %v455_v37 = vsub.f32 %v1291_v57, %v1454_v49 }
 0x16b   :  { %v456_v48 = vsub.f32 %v1301_v8, %v1454_v49  ;;  %v457_v57 = vsub.f32 %v1311_v20, %v1454_v49  ;;  %v458_v8 = vsub.f32 %v1321_v31, %v1454_v49  ;;  %v459_v20 = vsub.f32 %v1331_v44, %v1454_v49 }
 0x16c   :  { %v681_v19 = vadd.f32 %v680_v28, %v679_v21  ;;  %v576_v21 = vcombine.high %v478_v51, %v478_v51  ;;  %v698_v1 = vsel %vm212_vm0, %v479_v14, 0.0  ;;  %v460_v31 = vsub.f32 %v1341_v56, %v1454_v49 }
 0x16d   :  { %v461_v44 = vsub.f32 %v1351_v9, %v1454_v49  ;;  %v462_v56 = vsub.f32 %v1361_v22, %v1454_v49  ;;  %v463_v9 = vsub.f32 %v1371_v38, %v1454_v49  ;;  %v464_v22 = vsub.f32 %v1381_v52, %v1454_v49 }
 0x16e   :  { %v683_v30 = vadd.f32 %v682_v0, %v681_v19  ;;  %v480_v19 = vmul.f32 %v431_v35, %v431_v35  ;;  %v577_v0 = vcombine.high %v479_v14, %v479_v14  ;;  %v483_v14 = vmul.f32 %v434_v53, %v434_v53 }
 0x16f   :  { %v465_v38 = vsub.f32 %v1391_v4, %v1454_v49  ;;  %v466_v52 = vsub.f32 %v1401_v26, %v1454_v49  ;;  %v1676_v4 = vld [vmem:[#allocation2_spill] sm:$0xff]  ;;  %v1677_v26 = vld [vmem:[#allocation3_spill] sm:$0xff] }
 0x170   :  { %v685_v36 = vadd.f32 %v684_v45, %v683_v30  ;;  %v696_v30 = vsel %vm212_vm0, %v576_v21, 0.0  ;;  %v481_v45 = vmul.f32 %v432_v41, %v432_v41  ;;  %v702_v29 = vsel %vm212_vm0, %v480_v19, 0.0 }
 0x171   :  { %v580_v21 = vcombine.high %v482_v55, %v482_v55  ;;  %v484_v41 = vmul.f32 %v435_v59, %v435_v59 }
 0x172   :  { %v687_v11 = vadd.f32 %v686_v34, %v685_v36  ;;  %v578_v36 = vcombine.high %v480_v19, %v480_v19  ;;  %v700_v34 = vsel %vm212_vm0, %v577_v0, 0.0  ;;  %v581_v19 = vcombine.high %v483_v14, %v483_v14 }
 0x173   :  { %v712_v0 = vsel %vm212_vm0, %v580_v21, 0.0  ;;  %v582_v47 = vcombine.high %v484_v41, %v484_v41 }
 0x174   :  { %v689_v60 = vadd.f32 %v688_v63, %v687_v11  ;;  %v579_v63 = vcombine.high %v481_v45, %v481_v45 }
 0x175   :  { %v720_v53 = vsel %vm212_vm0, %v582_v47, 0.0 }
 0x176   :  { %v691_v2 = vadd.f32 %v690_v12, %v689_v60  ;;  %v704_v60 = vsel %vm212_vm0, %v578_v36, 0.0 }
 0x178   :  { %v693_v62 = vadd.f32 %v692_v17, %v691_v2  ;;  %v706_v2 = vsel %vm212_vm0, %v481_v45, 0.0  ;;  %v708_v17 = vsel %vm212_vm0, %v579_v63, 0.0  ;;  %v716_v45 = vsel %vm212_vm0, %v581_v19, 0.0 }
 0x179   :  { %v489_v19 = vmul.f32 %v440_v32, %v440_v32 }
 0x17a   :  { %v695_v28 = vadd.f32 %v694_v13, %v693_v62  ;;  %v710_v13 = vsel %vm212_vm0, %v482_v55, 0.0 }
 0x17b   :  { %v587_v47 = vcombine.high %v489_v19, %v489_v19 }
 0x17c   :  { %v697_v23 = vadd.f32 %v696_v30, %v695_v28 }
 0x17e   :  { %v699_v5 = vadd.f32 %v698_v1, %v697_v23  ;;  %v714_v23 = vsel %vm212_vm0, %v483_v14, 0.0 }
 0x180   :  { %v701_v11 = vadd.f32 %v700_v34, %v699_v5  ;;  %v485_v5 = vmul.f32 %v436_v3, %v436_v3  ;;  %v718_v34 = vsel %vm212_vm0, %v484_v41, 0.0 }
 0x182   :  { %v703_v51 = vadd.f32 %v702_v29, %v701_v11  ;;  %v486_v29 = vmul.f32 %v437_v10, %v437_v10  ;;  %v722_v63 = vsel %vm212_vm0, %v485_v5, 0.0 }
 0x184   :  { %v705_v12 = vadd.f32 %v704_v60, %v703_v51  ;;  %v583_v51 = vcombine.high %v485_v5, %v485_v5  ;;  %v726_v14 = vsel %vm212_vm0, %v486_v29, 0.0  ;;  %v490_v5 = vmul.f32 %v441_v39, %v441_v39 }
 0x186   :  { %v707_v35 = vadd.f32 %v706_v2, %v705_v12  ;;  %v487_v12 = vmul.f32 %v438_v18, %v438_v18  ;;  %v584_v2 = vcombine.high %v486_v29, %v486_v29  ;;  %v491_v18 = vmul.f32 %v442_v46, %v442_v46 }
 0x187   :  { %v588_v29 = vcombine.high %v490_v5, %v490_v5 }
 0x188   :  { %v709_v62 = vadd.f32 %v708_v17, %v707_v35  ;;  %v724_v35 = vsel %vm212_vm0, %v583_v51, 0.0  ;;  %v488_v17 = vmul.f32 %v439_v25, %v439_v25  ;;  %v730_v3 = vsel %vm212_vm0, %v487_v12, 0.0 }
 0x189   :  { %v740_v51 = vsel %vm212_vm0, %v587_v47, 0.0  ;;  %v589_v25 = vcombine.high %v491_v18, %v491_v18  ;;  %v496_v47 = vmul.f32 %v447_v24, %v447_v24 }
 0x18a   :  { %v711_v28 = vadd.f32 %v710_v13, %v709_v62  ;;  %v585_v62 = vcombine.high %v487_v12, %v487_v12  ;;  %v728_v13 = vsel %vm212_vm0, %v584_v2, 0.0  ;;  %v744_v12 = vsel %vm212_vm0, %v588_v29, 0.0 }
 0x18b   :  { %v748_v32 = vsel %vm212_vm0, %v589_v25, 0.0  ;;  %v594_v29 = vcombine.high %v496_v47, %v496_v47 }
 0x18c   :  { %v713_v30 = vadd.f32 %v712_v0, %v711_v28  ;;  %v586_v0 = vcombine.high %v488_v17, %v488_v17 }
 0x18d   :  { %v768_v25 = vsel %vm212_vm0, %v594_v29, 0.0 }
 0x18e   :  { %v715_v1 = vadd.f32 %v714_v23, %v713_v30  ;;  %v732_v30 = vsel %vm212_vm0, %v585_v62, 0.0 }
 0x190   :  { %v717_v36 = vadd.f32 %v716_v45, %v715_v1  ;;  %v734_v1 = vsel %vm212_vm0, %v488_v17, 0.0  ;;  %v736_v45 = vsel %vm212_vm0, %v586_v0, 0.0 }
 0x192   :  { %v719_v11 = vadd.f32 %v718_v34, %v717_v36  ;;  %v738_v34 = vsel %vm212_vm0, %v489_v19, 0.0 }
 0x194   :  { %v721_v55 = vadd.f32 %v720_v53, %v719_v11 }
 0x196   :  { %v723_v60 = vadd.f32 %v722_v63, %v721_v55  ;;  %v742_v55 = vsel %vm212_vm0, %v490_v5, 0.0 }
 0x198   :  { %v725_v59 = vadd.f32 %v724_v35, %v723_v60  ;;  %v492_v60 = vmul.f32 %v443_v54, %v443_v54  ;;  %v746_v35 = vsel %vm212_vm0, %v491_v18, 0.0  ;;  %v497_v18 = vmul.f32 %v448_v33, %v448_v33 }
 0x19a   :  { %v727_v21 = vadd.f32 %v726_v14, %v725_v59  ;;  %v493_v14 = vmul.f32 %v444_v61, %v444_v61  ;;  %v750_v62 = vsel %vm212_vm0, %v492_v60, 0.0  ;;  %v498_v61 = vmul.f32 %v449_v42, %v449_v42 }
 0x19c   :  { %v729_v28 = vadd.f32 %v728_v13, %v727_v21  ;;  %v590_v21 = vcombine.high %v492_v60, %v492_v60  ;;  %v754_v19 = vsel %vm212_vm0, %v493_v14, 0.0  ;;  %v595_v60 = vcombine.high %v497_v18, %v497_v18 }
 0x19e   :  { %v731_v41 = vadd.f32 %v730_v3, %v729_v28  ;;  %v494_v28 = vmul.f32 %v445_v7, %v445_v7  ;;  %v591_v3 = vcombine.high %v493_v14, %v493_v14  ;;  %v596_v7 = vcombine.high %v498_v61, %v498_v61 }
 0x19f   :  { %v772_v14 = vsel %vm212_vm0, %v595_v60, 0.0 }
 0x1a0   :  { %v733_v23 = vadd.f32 %v732_v30, %v731_v41  ;;  %v752_v41 = vsel %vm212_vm0, %v590_v21, 0.0  ;;  %v495_v30 = vmul.f32 %v446_v15, %v446_v15  ;;  %v758_v46 = vsel %vm212_vm0, %v494_v28, 0.0 }
 0x1a1   :  { %v776_v15 = vsel %vm212_vm0, %v596_v7, 0.0 }
 0x1a2   :  { %v735_v10 = vadd.f32 %v734_v1, %v733_v23  ;;  %v592_v23 = vcombine.high %v494_v28, %v494_v28  ;;  %v756_v1 = vsel %vm212_vm0, %v591_v3, 0.0 }
 0x1a4   :  { %v737_v36 = vadd.f32 %v736_v45, %v735_v10  ;;  %v593_v45 = vcombine.high %v495_v30, %v495_v30 }
 0x1a6   :  { %v739_v11 = vadd.f32 %v738_v34, %v737_v36  ;;  %v760_v36 = vsel %vm212_vm0, %v592_v23, 0.0 }
 0x1a8   :  { %v741_v53 = vadd.f32 %v740_v51, %v739_v11  ;;  %v762_v11 = vsel %vm212_vm0, %v495_v30, 0.0  ;;  %v764_v51 = vsel %vm212_vm0, %v593_v45, 0.0  ;;  %v503_v45 = vmul.f32 %v454_v27, %v454_v27 }
 0x1aa   :  { %v743_v63 = vadd.f32 %v742_v55, %v741_v53  ;;  %v766_v55 = vsel %vm212_vm0, %v496_v47, 0.0  ;;  %v601_v29 = vcombine.high %v503_v45, %v503_v45 }
 0x1ac   :  { %v745_v2 = vadd.f32 %v744_v12, %v743_v63  ;;  %v796_v60 = vsel %vm212_vm0, %v601_v29, 0.0 }
 0x1ae   :  { %v747_v59 = vadd.f32 %v746_v35, %v745_v2  ;;  %v770_v2 = vsel %vm212_vm0, %v497_v18, 0.0  ;;  %v504_v18 = vmul.f32 %v455_v37, %v455_v37 }
 0x1b0   :  { %v749_v17 = vadd.f32 %v748_v32, %v747_v59  ;;  %v499_v59 = vmul.f32 %v450_v50, %v450_v50  ;;  %v774_v32 = vsel %vm212_vm0, %v498_v61, 0.0  ;;  %v505_v50 = vmul.f32 %v456_v48, %v456_v48 }
 0x1b1   :  { %v602_v61 = vcombine.high %v504_v18, %v504_v18  ;;  %v512_v48 = vmul.f32 %v463_v9, %v463_v9 }
 0x1b2   :  { %v751_v13 = vadd.f32 %v750_v62, %v749_v17  ;;  %v500_v62 = vmul.f32 %v451_v58, %v451_v58  ;;  %v778_v3 = vsel %vm212_vm0, %v499_v59, 0.0  ;;  %v603_v58 = vcombine.high %v505_v50, %v505_v50 }
 0x1b4   :  { %v753_v39 = vadd.f32 %v752_v41, %v751_v13  ;;  %v597_v13 = vcombine.high %v499_v59, %v499_v59  ;;  %v782_v30 = vsel %vm212_vm0, %v500_v62, 0.0  ;;  %v800_v59 = vsel %vm212_vm0, %v602_v61, 0.0 }
 0x1b6   :  { %v755_v0 = vadd.f32 %v754_v19, %v753_v39  ;;  %v501_v39 = vmul.f32 %v452_v6, %v452_v6  ;;  %v598_v19 = vcombine.high %v500_v62, %v500_v62  ;;  %v804_v6 = vsel %vm212_vm0, %v603_v58, 0.0 }
 0x1b8   :  { %v757_v10 = vadd.f32 %v756_v1, %v755_v0  ;;  %v780_v0 = vsel %vm212_vm0, %v597_v13, 0.0  ;;  %v502_v1 = vmul.f32 %v453_v16, %v453_v16  ;;  %v786_v33 = vsel %vm212_vm0, %v501_v39, 0.0 }
 0x1ba   :  { %v759_v5 = vadd.f32 %v758_v46, %v757_v10  ;;  %v599_v10 = vcombine.high %v501_v39, %v501_v39  ;;  %v784_v46 = vsel %vm212_vm0, %v598_v19, 0.0 }
 0x1bc   :  { %v761_v34 = vadd.f32 %v760_v36, %v759_v5  ;;  %v600_v36 = vcombine.high %v502_v1, %v502_v1 }
 0x1be   :  { %v763_v54 = vadd.f32 %v762_v11, %v761_v34  ;;  %v788_v34 = vsel %vm212_vm0, %v599_v10, 0.0  ;;  %v510_v10 = vmul.f32 %v461_v44, %v461_v44 }
 0x1c0   :  { %v765_v53 = vadd.f32 %v764_v51, %v763_v54  ;;  %v790_v54 = vsel %vm212_vm0, %v502_v1, 0.0  ;;  %v792_v51 = vsel %vm212_vm0, %v600_v36, 0.0  ;;  %v608_v36 = vcombine.high %v510_v10, %v510_v10 }
 0x1c2   :  { %v767_v63 = vadd.f32 %v766_v55, %v765_v53  ;;  %v794_v55 = vsel %vm212_vm0, %v503_v45, 0.0  ;;  %v511_v45 = vmul.f32 %v462_v56, %v462_v56  ;;  %v824_v29 = vsel %vm212_vm0, %v608_v36, 0.0 }
 0x1c4   :  { %v769_v12 = vadd.f32 %v768_v25, %v767_v63 }
 0x1c6   :  { %v771_v35 = vadd.f32 %v770_v2, %v769_v12  ;;  %v798_v12 = vsel %vm212_vm0, %v504_v18, 0.0  ;;  %v609_v18 = vcombine.high %v511_v45, %v511_v45 }
 0x1c8   :  { %v773_v21 = vadd.f32 %v772_v14, %v771_v35  ;;  %v506_v35 = vmul.f32 %v457_v57, %v457_v57  ;;  %v802_v14 = vsel %vm212_vm0, %v505_v50, 0.0  ;;  %v610_v57 = vcombine.high %v512_v48, %v512_v48 }
 0x1c9   :  { %v828_v50 = vsel %vm212_vm0, %v609_v18, 0.0 }
 0x1ca   :  { %v775_v17 = vadd.f32 %v774_v32, %v773_v21  ;;  %v507_v32 = vmul.f32 %v458_v8, %v458_v8  ;;  %v806_v13 = vsel %vm212_vm0, %v506_v35, 0.0  ;;  %v832_v8 = vsel %vm212_vm0, %v610_v57, 0.0 }
 0x1cc   :  { %v777_v28 = vadd.f32 %v776_v15, %v775_v17  ;;  %v604_v17 = vcombine.high %v506_v35, %v506_v35  ;;  %v810_v39 = vsel %vm212_vm0, %v507_v32, 0.0 }
 0x1ce   :  { %v779_v41 = vadd.f32 %v778_v3, %v777_v28  ;;  %v508_v28 = vmul.f32 %v459_v20, %v459_v20  ;;  %v605_v3 = vcombine.high %v507_v32, %v507_v32 }
 0x1d0   :  { %v781_v24 = vadd.f32 %v780_v0, %v779_v41  ;;  %v808_v41 = vsel %vm212_vm0, %v604_v17, 0.0  ;;  %v509_v0 = vmul.f32 %v460_v31, %v460_v31  ;;  %v814_v27 = vsel %vm212_vm0, %v508_v28, 0.0 }
 0x1d2   :  { %v783_v23 = vadd.f32 %v782_v30, %v781_v24  ;;  %v606_v24 = vcombine.high %v508_v28, %v508_v28  ;;  %v812_v30 = vsel %vm212_vm0, %v605_v3, 0.0 }
 0x1d4   :  { %v785_v5 = vadd.f32 %v784_v46, %v783_v23  ;;  %v607_v46 = vcombine.high %v509_v0, %v509_v0 }
 0x1d6   :  { %v787_v47 = vadd.f32 %v786_v33, %v785_v5  ;;  %v816_v5 = vsel %vm212_vm0, %v606_v24, 0.0 }
 0x1d8   :  { %v789_v11 = vadd.f32 %v788_v34, %v787_v47  ;;  %v818_v47 = vsel %vm212_vm0, %v509_v0, 0.0  ;;  %v820_v34 = vsel %vm212_vm0, %v607_v46, 0.0 }
 0x1da   :  { %v791_v42 = vadd.f32 %v790_v54, %v789_v11  ;;  %v822_v54 = vsel %vm212_vm0, %v510_v10, 0.0 }
 0x1dc   :  { %v793_v53 = vadd.f32 %v792_v51, %v791_v42 }
 0x1de   :  { %v795_v63 = vadd.f32 %v794_v55, %v793_v53  ;;  %v826_v53 = vsel %vm212_vm0, %v511_v45, 0.0 }
 0x1e0   :  { %v797_v25 = vadd.f32 %v796_v60, %v795_v63  ;;  %v513_v63 = vmul.f32 %v464_v22, %v464_v22  ;;  %v830_v60 = vsel %vm212_vm0, %v512_v48, 0.0 }
 0x1e2   :  { %v799_v2 = vadd.f32 %v798_v12, %v797_v25  ;;  %v514_v12 = vmul.f32 %v465_v38, %v465_v38  ;;  %v834_v58 = vsel %vm212_vm0, %v513_v63, 0.0 }
 0x1e4   :  { %v801_v7 = vadd.f32 %v800_v59, %v799_v2  ;;  %v611_v2 = vcombine.high %v513_v63, %v513_v63  ;;  %v838_v17 = vsel %vm212_vm0, %v514_v12, 0.0  ;;  %v871_v63 = vld [vmem:[%s1667_s2] sm:$0xf] }
 0x1e6   :  { %v803_v21 = vadd.f32 %v802_v14, %v801_v7  ;;  %v467_v7 = vsub.f32 %v1676_v4, %v1454_v49  ;;  %v515_v14 = vmul.f32 %v466_v52, %v466_v52  ;;  %v836_v20 = vsel %vm212_vm0, %v611_v2, 0.0 }
 0x1e8   :  { %v805_v62 = vadd.f32 %v804_v6, %v803_v21  ;;  %v612_v21 = vcombine.high %v514_v12, %v514_v12  ;;  %v842_v3 = vsel %vm212_vm0, %v515_v14, 0.0 }
 0x1ea   :  { %v807_v15 = vadd.f32 %v806_v13, %v805_v62  ;;  %v468_v62 = vsub.f32 %v1677_v26, %v1454_v49  ;;  %v516_v13 = vmul.f32 %v467_v7, %v467_v7  ;;  %v840_v31 = vsel %vm212_vm0, %v612_v21, 0.0 }
 0x1ec   :  { %v809_v16 = vadd.f32 %v808_v41, %v807_v15  ;;  %v613_v15 = vcombine.high %v515_v14, %v515_v14  ;;  %v614_v44 = vcombine.high %v516_v13, %v516_v13 }
 0x1ee   :  { %v811_v19 = vadd.f32 %v810_v39, %v809_v16  ;;  %v1678_v16 = vld [vmem:[#allocation4_spill] sm:$0xff]  ;;  %v844_v0 = vsel %vm212_vm0, %v613_v15, 0.0  ;;  %v848_v10 = vsel %vm212_vm0, %v614_v44, 0.0 }
 0x1ef   :  { %v469_v39 = vsub.f32 %v1678_v16, %v1454_v49 }
 0x1f0   :  { %v813_v23 = vadd.f32 %v812_v30, %v811_v19  ;;  %v517_v19 = vmul.f32 %v468_v62, %v468_v62  ;;  %v846_v30 = vsel %vm212_vm0, %v516_v13, 0.0 }
 0x1f2   :  { %v815_v1 = vadd.f32 %v814_v27, %v813_v23  ;;  %v470_v27 = vsub.f32 %v1441_v40, %v1454_v49  ;;  %v615_v56 = vcombine.high %v517_v19, %v517_v19 }
 0x1f4   :  { %v817_v33 = vadd.f32 %v816_v5, %v815_v1  ;;  %v518_v1 = vmul.f32 %v469_v39, %v469_v39  ;;  %v850_v5 = vsel %vm212_vm0, %v517_v19, 0.0  ;;  %v852_v9 = vsel %vm212_vm0, %v615_v56, 0.0 }
 0x1f6   :  { %v819_v37 = vadd.f32 %v818_v47, %v817_v33  ;;  %v519_v47 = vmul.f32 %v470_v27, %v470_v27  ;;  %v854_v36 = vsel %vm212_vm0, %v518_v1, 0.0 }
 0x1f8   :  { %v821_v11 = vadd.f32 %v820_v34, %v819_v37  ;;  %v616_v37 = vcombine.high %v518_v1, %v518_v1  ;;  %v858_v49 = vsel %vm212_vm0, %v519_v47, 0.0 }
 0x1fa   :  { %v823_v42 = vadd.f32 %v822_v54, %v821_v11  ;;  %v617_v11 = vcombine.high %v519_v47, %v519_v47  ;;  %v856_v54 = vsel %vm212_vm0, %v616_v37, 0.0 }
 0x1fc   :  { %v825_v51 = vadd.f32 %v824_v29, %v823_v42  ;;  %v860_v22 = vsel %vm406_vm1, %v617_v11, 0.0 }
 0x1fe   :  { %v827_v55 = vadd.f32 %v826_v53, %v825_v51  ;;  %v865_v53 = vld [vmem:[%s1666_s1] sm:$0xf] }
 0x200   :  { %v829_v61 = vadd.f32 %v828_v50, %v827_v55 }
 0x202   :  { %v831_v25 = vadd.f32 %v830_v60, %v829_v61 }
 0x204   :  { %v833_v35 = vadd.f32 %v832_v8, %v831_v25 }
 0x206   :  { %v835_v59 = vadd.f32 %v834_v58, %v833_v35 }
 0x208   :  { %v837_v32 = vadd.f32 %v836_v20, %v835_v59 }
 0x20a   :  { %v839_v6 = vadd.f32 %v838_v17, %v837_v32 }
 0x20c   :  { %v841_v28 = vadd.f32 %v840_v31, %v839_v6 }
 0x20e   :  { %v843_v41 = vadd.f32 %v842_v3, %v841_v28 }
 0x210   :  { %v845_v24 = vadd.f32 %v844_v0, %v843_v41 }
 0x212   :  { %v847_v23 = vadd.f32 %v846_v30, %v845_v24 }
 0x214   :  { %v849_v46 = vadd.f32 %v848_v10, %v847_v23 }
 0x216   :  { %v851_v33 = vadd.f32 %v850_v5, %v849_v46 }
 0x218   :  { %v853_v45 = vadd.f32 %v852_v9, %v851_v33 }
 0x21a   :  { %v855_v34 = vadd.f32 %v854_v36, %v853_v45 }
 0x21c   :  { %v857_v40 = vadd.f32 %v856_v54, %v855_v34 }
 0x21e   :  { %v859_v42 = vadd.f32 %v858_v49, %v857_v40 }
 0x220   :  { %v861_v48 = vadd.f32 %v860_v22, %v859_v42 }
 0x222   :  { %862 = vadd.xlane.f32.xlu0 %v861_v48 }
 0x2af   :  { %v863_v18 = vpop.xlane.xlu0 %862 }
 0x2b0   :  { %v864_v29 = vmul.f32 7.992327e-05, %v863_v18 }
 0x2b2   :  { %v866_v51 = vadd.f32 1e-05, %v864_v29 }
 0x2b4   :  { %933 = vrsqrt.f32 %v866_v51 }
 0x2be   :  { %v934_v55 = vpop.eup %933 }
 0x2bf   :  { %v868_v38 = vmul.f32 %v934_v55, %v865_v53 }
 0x2c1   :  { %870 = vst.msk [vmem:[%s1668_s3] sm:$0xf] %vm869_vm2, %v868_v38  ;;  %v872_v57 = vmul.f32 %v868_v38, %v1451_v43 }
 0x2c3   :  { %v873_v50 = vsub.f32 %v871_v63, %v872_v57 }
 0x2c5   :  { %874 = vst.msk [vmem:[%s1669_s4] sm:$0xf] %vm869_vm2, %v873_v50 }

// kernel: actor_forward.6
= control target key start
LH: loop header
LB: loop body
LE: loop exit
PB: predicated region body
PF: predicated region fallthrough
CT: control target
= control target key end

     0   :  { %v1092_v6 = vmov 0   ;;  %vm743_vm0 = vcmask 523264   ;;  %vm829_vm1 = vcmask 1043456   ;;  %vm830_vm2 = vcmask 523268   ;;  %s1439_s0 = inlined_call_operand.vmem [shape: bf16[256,704], index: 0, kind: input, shape index: {}]   ;;  %s1440_s1 = inlined_call_operand.vmem [shape: bf16[8,256], index: 1, kind: input, shape index: {}]   ;;  %s1441_s2 = inlined_call_operand.vmem [shape: f32[8,1], index: 2, kind: input, shape index: {}]   ;;  %s1442_s3 = inlined_call_operand.vmem [shape: f32[8,1], index: 3, kind: input, shape index: {}]   ;;  %s1443_s4 = inlined_call_operand.vmem [shape: f32[8,1], index: 4, kind: input, shape index: {}]   ;;  %s1444_s5 = inlined_call_operand.vmem [shape: bf16[8,704], index: 5, kind: output, shape index: {}]  }
   0x1   :  { %v944_v0 = vld [vmem:[%s1439_s0 + $0x4] ss:$24 sps:$4 sm:$0xff]   ;;  %v946_v1 = vld [vmem:[%s1439_s0] ss:$24 sps:$4 sm:$0xff]   ;;  %v949_v3 = vld [vmem:[%s1439_s0 + $0x34] ss:$24 sps:$4 sm:$0xff]   ;;  %942 = vset.pattern.permute.xlu0 %v1092_v6  ;;  %943 = vset.pattern.permute.xlu1 %v1092_v6 }
   0x2   :  { %610 = vmatprep.subr.bf16.mxu0 %v944_v0  ;;  %v947_v2 = vld [vmem:[%s1439_s0 + $0xc] ss:$24 sps:$4 sm:$0xff]   ;;  %v951_v4 = vld [vmem:[%s1439_s0 + $0x8] ss:$24 sps:$4 sm:$0xff]   ;;  %v953_v7 = vld [vmem:[%s1439_s0 + $0x3c] ss:$24 sps:$4 sm:$0xff]  }
   0x3   :  { %611 = vmatpush1.bf16.msra.mxu0 %v946_v1  ;;  %v952_v5 = vld [vmem:[%s1439_s0 + $0x30] ss:$24 sps:$4 sm:$0xff]   ;;  %651 = vmatprep.subr.bf16.mxu1 %v947_v2  ;;  %v955_v8 = vld [vmem:[%s1439_s0 + $0x64] ss:$24 sps:$4 sm:$0xff]   ;;  %v958_v10 = vld [vmem:[%s1439_s0 + $0x60] ss:$24 sps:$4 sm:$0xff]  }
   0x4   :  { %612 = vmatprep.subr.bf16.mxu0 %v949_v3  ;;  %652 = vmatpush1.bf16.msra.mxu1 %v951_v4  ;;  %v957_v9 = vld [vmem:[%s1439_s0 + $0x38] ss:$24 sps:$4 sm:$0xff]   ;;  %v959_v11 = vld [vmem:[%s1439_s0 + $0x6c] ss:$24 sps:$4 sm:$0xff]   ;;  %v963_v13 = vld [vmem:[%s1439_s0 + $0x68] ss:$24 sps:$4 sm:$0xff]  }
   0x5   :  { %653 = vmatprep.subr.bf16.mxu1 %v953_v7  ;;  %v961_v12 = vld [vmem:[%s1439_s0 + $0x94] ss:$24 sps:$4 sm:$0xff]   ;;  %v964_v15 = vld [vmem:[%s1439_s0 + $0x90] ss:$24 sps:$4 sm:$0xff]   ;;  %v967_v16 = vld [vmem:[%s1439_s0 + $0xc4] ss:$24 sps:$4 sm:$0xff]  }
   0x6   :  { %v965_v14 = vld [vmem:[%s1439_s0 + $0x9c] ss:$24 sps:$4 sm:$0xff]   ;;  %v969_v17 = vld [vmem:[%s1439_s0 + $0x98] ss:$24 sps:$4 sm:$0xff]   ;;  %v971_v18 = vld [vmem:[%s1439_s0 + $0xcc] ss:$24 sps:$4 sm:$0xff]  }
   0x7   :  { %613 = vmatpush1.bf16.msra.mxu0 %v952_v5  ;;  %v970_v19 = vld [vmem:[%s1439_s0 + $0xc0] ss:$24 sps:$4 sm:$0xff]   ;;  %v973_v20 = vld [vmem:[%s1439_s0 + $0xf4] ss:$24 sps:$4 sm:$0xff]   ;;  %v976_v23 = vld [vmem:[%s1439_s0 + $0xf0] ss:$24 sps:$4 sm:$0xff]  }
   0x8   :  { %614 = vmatprep.subr.bf16.mxu0 %v955_v8  ;;  %654 = vmatpush1.bf16.msra.mxu1 %v957_v9  ;;  %v975_v21 = vld [vmem:[%s1439_s0 + $0xc8] ss:$24 sps:$4 sm:$0xff]   ;;  %v977_v22 = vld [vmem:[%s1439_s0 + $0xfc] ss:$24 sps:$4 sm:$0xff]   ;;  %v981_v25 = vld [vmem:[%s1439_s0 + $0xf8] ss:$24 sps:$4 sm:$0xff]  }
   0x9   :  { %655 = vmatprep.subr.bf16.mxu1 %v959_v11  ;;  %v979_v24 = vld [vmem:[%s1439_s0 + $0x124] ss:$24 sps:$4 sm:$0xff]   ;;  %v982_v27 = vld [vmem:[%s1439_s0 + $0x120] ss:$24 sps:$4 sm:$0xff]   ;;  %v985_v28 = vld [vmem:[%s1439_s0 + $0x154] ss:$24 sps:$4 sm:$0xff]  }
   0xa   :  { %v983_v26 = vld [vmem:[%s1439_s0 + $0x12c] ss:$24 sps:$4 sm:$0xff]   ;;  %v987_v29 = vld [vmem:[%s1439_s0 + $0x128] ss:$24 sps:$4 sm:$0xff]   ;;  %v989_v30 = vld [vmem:[%s1439_s0 + $0x15c] ss:$24 sps:$4 sm:$0xff]  }
   0xb   :  { %615 = vmatpush1.bf16.msra.mxu0 %v958_v10  ;;  %v988_v31 = vld [vmem:[%s1439_s0 + $0x150] ss:$24 sps:$4 sm:$0xff]   ;;  %v991_v32 = vld [vmem:[%s1439_s0 + $0x184] ss:$24 sps:$4 sm:$0xff]   ;;  %v994_v35 = vld [vmem:[%s1439_s0 + $0x180] ss:$24 sps:$4 sm:$0xff]  }
   0xc   :  { %616 = vmatprep.subr.bf16.mxu0 %v961_v12  ;;  %656 = vmatpush1.bf16.msra.mxu1 %v963_v13  ;;  %v993_v33 = vld [vmem:[%s1439_s0 + $0x158] ss:$24 sps:$4 sm:$0xff]   ;;  %v995_v34 = vld [vmem:[%s1439_s0 + $0x18c] ss:$24 sps:$4 sm:$0xff]   ;;  %v999_v37 = vld [vmem:[%s1439_s0 + $0x188] ss:$24 sps:$4 sm:$0xff]  }
   0xd   :  { %657 = vmatprep.subr.bf16.mxu1 %v965_v14  ;;  %v997_v36 = vld [vmem:[%s1439_s0 + $0x1b4] ss:$24 sps:$4 sm:$0xff]   ;;  %v1000_v39 = vld [vmem:[%s1439_s0 + $0x1b0] ss:$24 sps:$4 sm:$0xff]   ;;  %v1003_v40 = vld [vmem:[%s1439_s0 + $0x1e4] ss:$24 sps:$4 sm:$0xff]  }
   0xe   :  { %v1001_v38 = vld [vmem:[%s1439_s0 + $0x1bc] ss:$24 sps:$4 sm:$0xff]   ;;  %v1005_v41 = vld [vmem:[%s1439_s0 + $0x1b8] ss:$24 sps:$4 sm:$0xff]   ;;  %v1007_v42 = vld [vmem:[%s1439_s0 + $0x1ec] ss:$24 sps:$4 sm:$0xff]  }
   0xf   :  { %617 = vmatpush1.bf16.msra.mxu0 %v964_v15  ;;  %v1006_v43 = vld [vmem:[%s1439_s0 + $0x1e0] ss:$24 sps:$4 sm:$0xff]   ;;  %v1009_v44 = vld [vmem:[%s1439_s0 + $0x214] ss:$24 sps:$4 sm:$0xff]   ;;  %v1012_v49 = vld [vmem:[%s1439_s0 + $0x210] ss:$24 sps:$4 sm:$0xff]  }
  0x10   :  { %618 = vmatprep.subr.bf16.mxu0 %v967_v16  ;;  %658 = vmatpush1.bf16.msra.mxu1 %v969_v17  ;;  %v1011_v45 = vld [vmem:[%s1439_s0 + $0x1e8] ss:$24 sps:$4 sm:$0xff]   ;;  %v1013_v47 = vld [vmem:[%s1439_s0 + $0x21c] ss:$24 sps:$4 sm:$0xff]   ;;  %v1017_v51 = vld [vmem:[%s1439_s0 + $0x218] ss:$24 sps:$4 sm:$0xff]  }
  0x11   :  { %659 = vmatprep.subr.bf16.mxu1 %v971_v18  ;;  %v20_v46 = vld [vmem:[%s1440_s1] sm:$0xff]  ;;  %v1021_v54 = vld [vmem:[%s1439_s0 + $0x274] ss:$24 sps:$4 sm:$0xff]   ;;  %v1024_v57 = vld [vmem:[%s1439_s0 + $0x270] ss:$24 sps:$4 sm:$0xff]  }
  0x12   :  { %v838_v48 = vcombine.high %v20_v46, %v20_v46  ;;  %v1015_v50 = vld [vmem:[%s1439_s0 + $0x244] ss:$24 sps:$4 sm:$0xff]   ;;  %v1018_v53 = vld [vmem:[%s1439_s0 + $0x240] ss:$24 sps:$4 sm:$0xff]   ;;  %v1033_v62 = vld [vmem:[%s1439_s0 + $0x2d4] ss:$24 sps:$4 sm:$0xff]   ;;  %v1321_v4 = vcombine.low %v20_v46, %v20_v46 }
  0x13   :  { %619 = vmatpush1.bf16.msra.mxu0 %v970_v19  ;;  %v1019_v52 = vld [vmem:[%s1439_s0 + $0x24c] ss:$24 sps:$4 sm:$0xff]   ;;  %v1023_v55 = vld [vmem:[%s1439_s0 + $0x248] ss:$24 sps:$4 sm:$0xff]   ;;  %v1025_v56 = vld [vmem:[%s1439_s0 + $0x27c] ss:$24 sps:$4 sm:$0xff]  }
  0x14   :  { %620 = vmatprep.subr.bf16.mxu0 %v973_v20  ;;  %660 = vmatpush1.bf16.msra.mxu1 %v975_v21  ;;  %v1027_v58 = vld [vmem:[%s1439_s0 + $0x2a4] ss:$24 sps:$4 sm:$0xff]   ;;  %v1029_v59 = vld [vmem:[%s1439_s0 + $0x278] ss:$24 sps:$4 sm:$0xff]   ;;  %v1035_v63 = vld [vmem:[%s1439_s0 + $0x2a8] ss:$24 sps:$4 sm:$0xff]  }
  0x15   :  { %661 = vmatprep.subr.bf16.mxu1 %v977_v22  ;;  %642 = vmatprep.mubr.bf16.mxu0 %v838_v48  ;;  %v1031_v60 = vld [vmem:[%s1439_s0 + $0x2ac] ss:$24 sps:$4 sm:$0xff]   ;;  %v1030_v61 = vld [vmem:[%s1439_s0 + $0x2a0] ss:$24 sps:$4 sm:$0xff]   ;;  %v1038_v0 = vld [vmem:[%s1439_s0 + $0x2dc] ss:$24 sps:$4 sm:$0xff]  }
  0x16   :  { %683 = vmatprep.mubr.bf16.mxu1 %v838_v48  ;;  %v1036_v1 = vld [vmem:[%s1439_s0 + $0x2d0] ss:$24 sps:$4 sm:$0xff]   ;;  %v1044_v2 = vld [vmem:[%s1439_s0 + $0x14] ss:$24 sps:$4 sm:$0xff]   ;;  %v1047_v6 = vld [vmem:[%s1439_s0 + $0x44] ss:$24 sps:$4 sm:$0xff]  }
  0x17   :  { %621 = vmatpush1.bf16.msra.mxu0 %v976_v23  ;;  %v1041_v3 = vld [vmem:[%s1439_s0 + $0x2d8] ss:$24 sps:$4 sm:$0xff]   ;;  %v117_v7 = vld [vmem:[%s1441_s2] sm:$0xff]  ;;  %v1050_v9 = vld [vmem:[%s1439_s0 + $0x74] ss:$24 sps:$4 sm:$0xff]  }
  0x18   :  { %622 = vmatprep.subr.bf16.mxu0 %v979_v24  ;;  %662 = vmatpush1.bf16.msra.mxu1 %v981_v25  ;;  %v1042_v5 = vld [vmem:[%s1439_s0 + $0x10] ss:$24 sps:$4 sm:$0xff]   ;;  %v1045_v8 = vld [vmem:[%s1439_s0 + $0x40] ss:$24 sps:$4 sm:$0xff]   ;;  %v1053_v11 = vld [vmem:[%s1439_s0 + $0xa4] ss:$24 sps:$4 sm:$0xff]  }
  0x19   :  { %663 = vmatprep.subr.bf16.mxu1 %v983_v26  ;;  %120 = vperm.xlu0 %942, %v117_v7   ;;  %v1048_v10 = vld [vmem:[%s1439_s0 + $0x70] ss:$24 sps:$4 sm:$0xff]   ;;  %v1051_v12 = vld [vmem:[%s1439_s0 + $0xa0] ss:$24 sps:$4 sm:$0xff]   ;;  %v1056_v13 = vld [vmem:[%s1439_s0 + $0xd4] ss:$24 sps:$4 sm:$0xff]  }
  0x1a   :  { %v1054_v14 = vld [vmem:[%s1439_s0 + $0xd0] ss:$24 sps:$4 sm:$0xff]   ;;  %v1059_v15 = vld [vmem:[%s1439_s0 + $0x104] ss:$24 sps:$4 sm:$0xff]   ;;  %v1057_v16 = vld [vmem:[%s1439_s0 + $0x100] ss:$24 sps:$4 sm:$0xff]  }
  0x1b   :  { %623 = vmatpush1.bf16.msra.mxu0 %v982_v27  ;;  %v1062_v17 = vld [vmem:[%s1439_s0 + $0x134] ss:$24 sps:$4 sm:$0xff]   ;;  %v1060_v18 = vld [vmem:[%s1439_s0 + $0x130] ss:$24 sps:$4 sm:$0xff]   ;;  %v1065_v19 = vld [vmem:[%s1439_s0 + $0x164] ss:$24 sps:$4 sm:$0xff]  }
  0x1c   :  { %624 = vmatprep.subr.bf16.mxu0 %v985_v28  ;;  %664 = vmatpush1.bf16.msra.mxu1 %v987_v29  ;;  %v1063_v20 = vld [vmem:[%s1439_s0 + $0x160] ss:$24 sps:$4 sm:$0xff]   ;;  %v1068_v21 = vld [vmem:[%s1439_s0 + $0x194] ss:$24 sps:$4 sm:$0xff]   ;;  %v1066_v22 = vld [vmem:[%s1439_s0 + $0x190] ss:$24 sps:$4 sm:$0xff]  }
  0x1d   :  { %665 = vmatprep.subr.bf16.mxu1 %v989_v30  ;;  %v1071_v23 = vld [vmem:[%s1439_s0 + $0x1c4] ss:$24 sps:$4 sm:$0xff]   ;;  %v1069_v24 = vld [vmem:[%s1439_s0 + $0x1c0] ss:$24 sps:$4 sm:$0xff]   ;;  %v1074_v25 = vld [vmem:[%s1439_s0 + $0x1f4] ss:$24 sps:$4 sm:$0xff]  }
  0x1e   :  { %v1072_v26 = vld [vmem:[%s1439_s0 + $0x1f0] ss:$24 sps:$4 sm:$0xff]   ;;  %v1077_v27 = vld [vmem:[%s1439_s0 + $0x224] ss:$24 sps:$4 sm:$0xff]   ;;  %v1075_v28 = vld [vmem:[%s1439_s0 + $0x220] ss:$24 sps:$4 sm:$0xff]  }
  0x1f   :  { %625 = vmatpush1.bf16.msra.mxu0 %v988_v31  ;;  %v1080_v29 = vld [vmem:[%s1439_s0 + $0x254] ss:$24 sps:$4 sm:$0xff]   ;;  %v1078_v30 = vld [vmem:[%s1439_s0 + $0x250] ss:$24 sps:$4 sm:$0xff]   ;;  %v1083_v31 = vld [vmem:[%s1439_s0 + $0x284] ss:$24 sps:$4 sm:$0xff]  }
  0x20   :  { %626 = vmatprep.subr.bf16.mxu0 %v991_v32  ;;  %666 = vmatpush1.bf16.msra.mxu1 %v993_v33  ;;  %v1081_v32 = vld [vmem:[%s1439_s0 + $0x280] ss:$24 sps:$4 sm:$0xff]   ;;  %v1086_v33 = vld [vmem:[%s1439_s0 + $0x2b4] ss:$24 sps:$4 sm:$0xff]   ;;  %vm831_vm3 = vmor %vm830_vm2, %vm829_vm1 }
  0x21   :  { %667 = vmatprep.subr.bf16.mxu1 %v995_v34  ;;  %v1084_v34 = vld [vmem:[%s1439_s0 + $0x2b0] ss:$24 sps:$4 sm:$0xff]  }
  0x23   :  { %627 = vmatpush1.bf16.msra.mxu0 %v994_v35  ;;  %v1089_v35 = vld [vmem:[%s1439_s0 + $0x2e4] ss:$24 sps:$4 sm:$0xff]  }
  0x24   :  { %628 = vmatprep.subr.bf16.mxu0 %v997_v36  ;;  %668 = vmatpush1.bf16.msra.mxu1 %v999_v37  ;;  %v1087_v36 = vld [vmem:[%s1439_s0 + $0x2e0] ss:$24 sps:$4 sm:$0xff]  }
  0x25   :  { %669 = vmatprep.subr.bf16.mxu1 %v1001_v38  ;;  %v779_v37 = vld [vmem:[%s1442_s3] sm:$0xff] }
  0x26   :  { %782 = vperm.xlu1 %943, %v779_v37  }
  0x27   :  { %629 = vmatpush1.bf16.msra.mxu0 %v1000_v39 }
  0x28   :  { %630 = vmatprep.subr.bf16.mxu0 %v1003_v40  ;;  %670 = vmatpush1.bf16.msra.mxu1 %v1005_v41 }
  0x29   :  { %671 = vmatprep.subr.bf16.mxu1 %v1007_v42 }
  0x2b   :  { %631 = vmatpush1.bf16.msra.mxu0 %v1006_v43 }
  0x2c   :  { %632 = vmatprep.subr.bf16.mxu0 %v1009_v44  ;;  %672 = vmatpush1.bf16.msra.mxu1 %v1011_v45 }
  0x2d   :  { %673 = vmatprep.subr.bf16.mxu1 %v1013_v47 }
  0x2f   :  { %633 = vmatpush1.bf16.msra.mxu0 %v1012_v49 }
  0x30   :  { %634 = vmatprep.subr.bf16.mxu0 %v1015_v50  ;;  %674 = vmatpush1.bf16.msra.mxu1 %v1017_v51 }
  0x31   :  { %675 = vmatprep.subr.bf16.mxu1 %v1019_v52 }
  0x33   :  { %635 = vmatpush1.bf16.msra.mxu0 %v1018_v53 }
  0x34   :  { %636 = vmatprep.subr.bf16.mxu0 %v1021_v54  ;;  %676 = vmatpush1.bf16.msra.mxu1 %v1023_v55 }
  0x35   :  { %677 = vmatprep.subr.bf16.mxu1 %v1025_v56 }
  0x37   :  { %637 = vmatpush1.bf16.msra.mxu0 %v1024_v57 }
  0x38   :  { %638 = vmatprep.subr.bf16.mxu0 %v1027_v58  ;;  %678 = vmatpush1.bf16.msra.mxu1 %v1029_v59 }
  0x39   :  { %679 = vmatprep.subr.bf16.mxu1 %v1031_v60 }
  0x3b   :  { %639 = vmatpush1.bf16.msra.mxu0 %v1030_v61 }
  0x3c   :  { %640 = vmatprep.subr.bf16.mxu0 %v1033_v62  ;;  %680 = vmatpush1.bf16.msra.mxu1 %v1035_v63 }
  0x3d   :  { %681 = vmatprep.subr.bf16.mxu1 %v1038_v0 }
  0x3f   :  { %641 = vmatpush1.bf16.msra.mxu0 %v1036_v1 }
  0x40   :  { %692 = vmatprep.subr.bf16.mxu0 %v1044_v2  ;;  %682 = vmatpush1.bf16.msra.mxu1 %v1041_v3 }
  0x42   :  { %643 = vmatmul.mubr.bf16.vlgmr.msra.gmra.mrb[0].mxu0 %v1321_v4 }
  0x43   :  { %693 = vmatpush1.bf16.msra.mxu0 %v1042_v5  ;;  %724 = vmatprep.mubr.bf16.mxu0 %v838_v48 }
  0x44   :  { %684 = vmatmul.mubr.bf16.vlgmr.msra.gmra.mrb[0].mxu1 %v1321_v4  ;;  %694 = vmatprep.subr.bf16.mxu0 %v1047_v6 }
  0x47   :  { %695 = vmatpush1.bf16.msra.mxu0 %v1045_v8 }
  0x48   :  { %696 = vmatprep.subr.bf16.mxu0 %v1050_v9 }
  0x4b   :  { %697 = vmatpush1.bf16.msra.mxu0 %v1048_v10 }
  0x4c   :  { %698 = vmatprep.subr.bf16.mxu0 %v1053_v11 }
  0x4f   :  { %699 = vmatpush1.bf16.msra.mxu0 %v1051_v12 }
  0x50   :  { %700 = vmatprep.subr.bf16.mxu0 %v1056_v13 }
  0x53   :  { %701 = vmatpush1.bf16.msra.mxu0 %v1054_v14 }
  0x54   :  { %702 = vmatprep.subr.bf16.mxu0 %v1059_v15 }
  0x57   :  { %703 = vmatpush1.bf16.msra.mxu0 %v1057_v16 }
  0x58   :  { %704 = vmatprep.subr.bf16.mxu0 %v1062_v17 }
  0x5b   :  { %705 = vmatpush1.bf16.msra.mxu0 %v1060_v18 }
  0x5c   :  { %706 = vmatprep.subr.bf16.mxu0 %v1065_v19 }
  0x5f   :  { %707 = vmatpush1.bf16.msra.mxu0 %v1063_v20 }
  0x60   :  { %708 = vmatprep.subr.bf16.mxu0 %v1068_v21 }
  0x63   :  { %709 = vmatpush1.bf16.msra.mxu0 %v1066_v22 }
  0x64   :  { %710 = vmatprep.subr.bf16.mxu0 %v1071_v23 }
  0x67   :  { %711 = vmatpush1.bf16.msra.mxu0 %v1069_v24 }
  0x68   :  { %712 = vmatprep.subr.bf16.mxu0 %v1074_v25  ;;  %v791_v25 = vld [vmem:[%s1443_s4] sm:$0xff] }
  0x6b   :  { %713 = vmatpush1.bf16.msra.mxu0 %v1072_v26 }
  0x6c   :  { %714 = vmatprep.subr.bf16.mxu0 %v1077_v27 }
  0x6f   :  { %715 = vmatpush1.bf16.msra.mxu0 %v1075_v28 }
  0x70   :  { %716 = vmatprep.subr.bf16.mxu0 %v1080_v29 }
  0x73   :  { %717 = vmatpush1.bf16.msra.mxu0 %v1078_v30 }
  0x74   :  { %718 = vmatprep.subr.bf16.mxu0 %v1083_v31 }
  0x77   :  { %719 = vmatpush1.bf16.msra.mxu0 %v1081_v32 }
  0x78   :  { %720 = vmatprep.subr.bf16.mxu0 %v1086_v33 }
  0x7b   :  { %721 = vmatpush1.bf16.msra.mxu0 %v1084_v34 }
  0x7c   :  { %722 = vmatprep.subr.bf16.mxu0 %v1089_v35 }
  0x7f   :  { %723 = vmatpush1.bf16.msra.mxu0 %v1087_v36 }
  0x82   :  { %725 = vmatmul.mubr.bf16.vlgmr.msra.gmra.mrb[4].mxu0 %v1321_v4 }
  0x98   :  { %v121_v46 = vpop.permute.xlu0 %120 }
  0xa5   :  { %v783_v26 = vpop.permute.xlu1 %782 }
 0x115   :  { %v644_v38 = vpop.f32.mrb[0].mxu0 }
 0x116   :  { %v646_v39 = vpop.f32.mrb[1].mxu0  ;;  %v645_v47 = vadd.f32 %v644_v38, %v121_v46 }
 0x117   :  { %v648_v40 = vpop.f32.mrb[2].mxu0  ;;  %v685_v41 = vpop.f32.mrb[0].mxu1  ;;  %v647_v48 = vadd.f32 %v646_v39, %v121_v46 }
 0x118   :  { %v649_v42 = vpop.f32.mrb[3].mxu0  ;;  %v687_v43 = vpop.f32.mrb[1].mxu1  ;;  %v733_v49 = vmax.f32 %v645_v47, 0.0  ;;  %v686_v51 = vadd.f32 %v685_v41, %v121_v46 }
 0x119   :  { %v689_v44 = vpop.f32.mrb[2].mxu1  ;;  %v734_v50 = vmax.f32 %v647_v48, 0.0  ;;  %v688_v54 = vadd.f32 %v687_v43, %v121_v46 }
 0x11a   :  { %v690_v45 = vpop.f32.mrb[3].mxu1  ;;  %v735_v53 = vmax.f32 %v686_v51, 0.0 }
 0x11b   :  { %v739_v52 = vadd.f32 %v734_v50, %v733_v49  ;;  %v736_v56 = vmax.f32 %v688_v54, 0.0 }
 0x11d   :  { %v740_v55 = vadd.f32 %v739_v52, %v735_v53 }
 0x11f   :  { %v741_v62 = vadd.f32 %v740_v55, %v736_v56 }
 0x155   :  { %v726_v57 = vpop.f32.mrb[4].mxu0 }
 0x156   :  { %v727_v58 = vadd.f32 %v726_v57, %v121_v46  ;;  %v728_v59 = vpop.f32.mrb[5].mxu0 }
 0x157   :  { %v729_v60 = vadd.f32 %v728_v59, %v121_v46  ;;  %v730_v61 = vpop.f32.mrb[6].mxu0 }
 0x158   :  { %v737_v63 = vmax.f32 %v727_v58, 0.0  ;;  %v731_v0 = vpop.f32.mrb[7].mxu0 }
 0x159   :  { %v738_v1 = vmax.f32 %v729_v60, 0.0 }
 0x15a   :  { %v742_v2 = vadd.f32 %v741_v62, %v737_v63 }
 0x15b   :  { %v744_v3 = vsel %vm743_vm0, %v738_v1, 0.0 }
 0x15c   :  { %v745_v4 = vadd.f32 %v744_v3, %v742_v2 }
 0x15e   :  { %746 = vadd.xlane.f32.xlu0 %v745_v4 }
 0x1eb   :  { %v747_v5 = vpop.xlane.xlu0 %746 }
 0x1ec   :  { %v749_v6 = vmul.f32 0.0014204546, %v747_v5 }
 0x1ee   :  { %v750_v7 = vsub.f32 %v733_v49, %v749_v6  ;;  %v751_v8 = vsub.f32 %v734_v50, %v749_v6  ;;  %v752_v9 = vsub.f32 %v735_v53, %v749_v6  ;;  %v753_v10 = vsub.f32 %v736_v56, %v749_v6 }
 0x1ef   :  { %v755_v13 = vsub.f32 %v738_v1, %v749_v6  ;;  %v754_v14 = vsub.f32 %v737_v63, %v749_v6 }
 0x1f0   :  { %v756_v11 = vmul.f32 %v750_v7, %v750_v7  ;;  %v757_v12 = vmul.f32 %v751_v8, %v751_v8  ;;  %v758_v15 = vmul.f32 %v752_v9, %v752_v9  ;;  %v759_v17 = vmul.f32 %v753_v10, %v753_v10 }
 0x1f1   :  { %v761_v19 = vmul.f32 %v755_v13, %v755_v13  ;;  %v760_v20 = vmul.f32 %v754_v14, %v754_v14 }
 0x1f2   :  { %v762_v16 = vadd.f32 %v757_v12, %v756_v11 }
 0x1f3   :  { %v766_v23 = vsel %vm743_vm0, %v761_v19, 0.0 }
 0x1f4   :  { %v763_v18 = vadd.f32 %v762_v16, %v758_v15 }
 0x1f6   :  { %v764_v21 = vadd.f32 %v763_v18, %v759_v17 }
 0x1f8   :  { %v765_v22 = vadd.f32 %v764_v21, %v760_v20 }
 0x1fa   :  { %v767_v24 = vadd.f32 %v766_v23, %v765_v22 }
 0x1fc   :  { %768 = vadd.xlane.f32.xlu1 %v767_v24 }
 0x20d   :  { %794 = vperm.xlu1 %943, %v791_v25  }
 0x289   :  { %v769_v27 = vpop.xlane.xlu1 %768 }
 0x28a   :  { %v770_v28 = vmul.f32 0.0014204546, %v769_v27 }
 0x28c   :  { %v771_v29 = vadd.f32 1e-05, %v770_v28 }
 0x28d   :  { %v795_v43 = vpop.permute.xlu1 %794 }
 0x28e   :  { %1090 = vrsqrt.f32 %v771_v29 }
 0x298   :  { %v1091_v30 = vpop.eup %1090 }
 0x299   :  { %v773_v31 = vmul.f32 %v1091_v30, %v750_v7  ;;  %v774_v32 = vmul.f32 %v1091_v30, %v751_v8  ;;  %v775_v33 = vmul.f32 %v1091_v30, %v752_v9  ;;  %v776_v34 = vmul.f32 %v1091_v30, %v753_v10 }
 0x29a   :  { %v777_v35 = vmul.f32 %v1091_v30, %v754_v14  ;;  %v778_v36 = vmul.f32 %v1091_v30, %v755_v13 }
 0x29b   :  { %v785_v37 = vmul.f32 %v783_v26, %v773_v31  ;;  %v786_v38 = vmul.f32 %v783_v26, %v774_v32  ;;  %v787_v39 = vmul.f32 %v783_v26, %v775_v33  ;;  %v788_v40 = vmul.f32 %v783_v26, %v776_v34 }
 0x29c   :  { %v789_v41 = vmul.f32 %v783_v26, %v777_v35  ;;  %v790_v42 = vmul.f32 %v783_v26, %v778_v36 }
 0x29d   :  { %v797_v44 = vadd.f32 %v795_v43, %v785_v37  ;;  %v798_v45 = vadd.f32 %v795_v43, %v786_v38  ;;  %v799_v46 = vadd.f32 %v795_v43, %v787_v39  ;;  %v800_v47 = vadd.f32 %v795_v43, %v788_v40 }
 0x29e   :  { %v801_v48 = vadd.f32 %v795_v43, %v789_v41  ;;  %v802_v49 = vadd.f32 %v795_v43, %v790_v42 }
 0x29f   :  { %v938_v50 = vpack.c.bf16 %v798_v45, %v797_v44  ;;  %v939_v51 = vpack.c.bf16 %v800_v47, %v799_v46 }
 0x2a0   :  { %v940_v52 = vpack.c.bf16 %v802_v49, %v801_v48 }
 0x2a1   :  { %827 = vst [vmem:[%s1444_s5] sm:$0xff] %v938_v50  ;;  %828 = vst [vmem:[%s1444_s5 + $0x8] sm:$0xff] %v939_v51 }
 0x2a2   :  { %832 = vst.msk [vmem:[%s1444_s5 + $0x10] sm:$0xff] %vm831_vm3, %v940_v52 }

// kernel: actor_forward.7
= control target key start
LH: loop header
LB: loop body
LE: loop exit
PB: predicated region body
PF: predicated region fallthrough
CT: control target
= control target key end

     0   :  { %v328_v1 = vmov 0   ;;  %vm184_vm0 = vcmask 97280   ;;  %vm266_vm1 = vcmask 1043456   ;;  %vm267_vm2 = vcmask 97284   ;;  %s438_s0 = inlined_call_operand.vmem [shape: bf16[128,140], index: 0, kind: input, shape index: {}]   ;;  %s439_s2 = inlined_call_operand.vmem [shape: f32[16,1], index: 2, kind: input, shape index: {}]   ;;  %s440_s1 = inlined_call_operand.vmem [shape: bf16[16,128], index: 1, kind: input, shape index: {}]   ;;  %s441_s3 = inlined_call_operand.vmem [shape: f32[16,1], index: 3, kind: input, shape index: {}]   ;;  %s442_s4 = inlined_call_operand.vmem [shape: f32[16,1], index: 4, kind: input, shape index: {}]   ;;  %s443_s5 = inlined_call_operand.vmem [shape: bf16[16,140], index: 5, kind: output, shape index: {}]  }
   0x1   :  { %v299_v0 = vld [vmem:[%s438_s0 + $0x4] ss:$8 sps:$4 sm:$0xff]   ;;  %169 = vmatprep.mubr.bf16.mxu0 %v328_v1  ;;  %297 = vset.pattern.permute.xlu0 %v328_v1  ;;  %v301_v2 = vld [vmem:[%s438_s0] ss:$8 sps:$4 sm:$0xff]   ;;  %v302_v3 = vld [vmem:[%s438_s0 + $0x14] ss:$8 sps:$4 sm:$0xff]  }
   0x2   :  { %298 = vset.pattern.permute.xlu1 %v328_v1  ;;  %137 = vmatprep.subr.bf16.mxu0 %v299_v0  ;;  %v304_v4 = vld [vmem:[%s438_s0 + $0x10] ss:$8 sps:$4 sm:$0xff]   ;;  %v305_v5 = vld [vmem:[%s438_s0 + $0x24] ss:$8 sps:$4 sm:$0xff]   ;;  %v307_v6 = vld [vmem:[%s438_s0 + $0x20] ss:$8 sps:$4 sm:$0xff]  }
   0x3   :  { %138 = vmatpush1.bf16.msra.mxu0 %v301_v2  ;;  %v308_v7 = vld [vmem:[%s438_s0 + $0x34] ss:$8 sps:$4 sm:$0xff]   ;;  %v310_v8 = vld [vmem:[%s438_s0 + $0x30] ss:$8 sps:$4 sm:$0xff]   ;;  %v39_v9 = vld [vmem:[%s439_s2] sm:$0xff] }
   0x4   :  { %139 = vmatprep.subr.bf16.mxu0 %v302_v3  ;;  %v311_v10 = vld [vmem:[%s438_s0 + $0x44] ss:$8 sps:$4 sm:$0xff]   ;;  %43 = vperm.xlu0 %297, %v39_v9   ;;  %v313_v12 = vld [vmem:[%s438_s0 + $0x40] ss:$8 sps:$4 sm:$0xff]   ;;  %v314_v13 = vld [vmem:[%s438_s0 + $0x54] ss:$8 sps:$4 sm:$0xff]  }
   0x5   :  { %v40_v11 = vld [vmem:[%s439_s2 + $0x8] sm:$0xff]  ;;  %v316_v14 = vld [vmem:[%s438_s0 + $0x50] ss:$8 sps:$4 sm:$0xff]   ;;  %v320_v17 = vld [vmem:[%s438_s0 + $0x74] ss:$8 sps:$4 sm:$0xff]  }
   0x6   :  { %v317_v15 = vld [vmem:[%s438_s0 + $0x64] ss:$8 sps:$4 sm:$0xff]   ;;  %v319_v16 = vld [vmem:[%s438_s0 + $0x60] ss:$8 sps:$4 sm:$0xff]   ;;  %v322_v18 = vld [vmem:[%s438_s0 + $0x70] ss:$8 sps:$4 sm:$0xff]  }
   0x7   :  { %140 = vmatpush1.bf16.msra.mxu0 %v304_v4  ;;  %v323_v19 = vld [vmem:[%s440_s1] sm:$0xff]   ;;  %v223_v39 = vld [vmem:[%s441_s3 + $0x8] sm:$0xff]  ;;  %vm268_vm3 = vmor %vm267_vm2, %vm266_vm1 }
   0x8   :  { %141 = vmatprep.subr.bf16.mxu0 %v305_v5  ;;  %48 = vperm.xlu0 %297, %v40_v11   ;;  %v222_v38 = vld [vmem:[%s441_s3] sm:$0xff]  ;;  %v239_v57 = vld [vmem:[%s442_s4 + $0x8] sm:$0xff] }
   0x9   :  { %v238_v40 = vld [vmem:[%s442_s4] sm:$0xff] }
   0xb   :  { %142 = vmatpush1.bf16.msra.mxu0 %v307_v6 }
   0xc   :  { %143 = vmatprep.subr.bf16.mxu0 %v308_v7 }
   0xf   :  { %144 = vmatpush1.bf16.msra.mxu0 %v310_v8 }
  0x10   :  { %145 = vmatprep.subr.bf16.mxu0 %v311_v10 }
  0x13   :  { %146 = vmatpush1.bf16.msra.mxu0 %v313_v12 }
  0x14   :  { %147 = vmatprep.subr.bf16.mxu0 %v314_v13 }
  0x17   :  { %148 = vmatpush1.bf16.msra.mxu0 %v316_v14 }
  0x18   :  { %149 = vmatprep.subr.bf16.mxu0 %v317_v15 }
  0x1b   :  { %150 = vmatpush1.bf16.msra.mxu0 %v319_v16 }
  0x1c   :  { %151 = vmatprep.subr.bf16.mxu0 %v320_v17 }
  0x1f   :  { %152 = vmatpush1.bf16.msra.mxu0 %v322_v18 }
  0x22   :  { %170 = vmatmul.mubr.bf16.vlgmr.msra.gmra.mrb[0].mxu0 %v323_v19 }
  0x83   :  { %v44_v20 = vpop.permute.xlu0 %43 }
  0x87   :  { %v49_v24 = vpop.permute.xlu0 %48 }
  0xf5   :  { %v171_v21 = vpop.f32.mrb[0].mxu0 }
  0xf6   :  { %v172_v22 = vadd.f32 %v171_v21, %v44_v20  ;;  %v173_v23 = vpop.f32.mrb[1].mxu0 }
  0xf7   :  { %v174_v25 = vadd.f32 %v173_v23, %v44_v20  ;;  %v175_v26 = vpop.f32.mrb[2].mxu0 }
  0xf8   :  { %v177_v27 = vpop.f32.mrb[3].mxu0  ;;  %v180_v30 = vmax.f32 %v172_v22, 0.0  ;;  %v176_v31 = vadd.f32 %v175_v26, %v49_v24 }
  0xf9   :  { %v181_v28 = vmax.f32 %v174_v25, 0.0  ;;  %v178_v29 = vadd.f32 %v177_v27, %v49_v24 }
  0xfa   :  { %v182_v36 = vmax.f32 %v176_v31, 0.0 }
  0xfb   :  { %v183_v32 = vmax.f32 %v178_v29, 0.0  ;;  %v185_v33 = vsel %vm184_vm0, %v181_v28, 0.0 }
  0xfc   :  { %v186_v34 = vadd.f32 %v185_v33, %v180_v30 }
  0xfd   :  { %v189_v35 = vsel %vm184_vm0, %v183_v32, 0.0 }
  0xfe   :  { %187 = vadd.xlane.f32.xlu1 %v186_v34  ;;  %v190_v37 = vadd.f32 %v189_v35, %v182_v36 }
 0x102   :  { %191 = vadd.xlane.f32.xlu1 %v190_v37 }
 0x113   :  { %226 = vperm.xlu1 %298, %v222_v38  }
 0x117   :  { %231 = vperm.xlu1 %298, %v223_v39  }
 0x11b   :  { %242 = vperm.xlu1 %298, %v238_v40  }
 0x18b   :  { %v188_v41 = vpop.xlane.xlu1 %187 }
 0x18c   :  { %v194_v42 = vmul.f32 0.007142857, %v188_v41 }
 0x18e   :  { %v196_v43 = vsub.f32 %v180_v30, %v194_v42  ;;  %v197_v44 = vsub.f32 %v181_v28, %v194_v42 }
 0x18f   :  { %v192_v45 = vpop.xlane.xlu1 %191 }
 0x190   :  { %v195_v46 = vmul.f32 0.007142857, %v192_v45  ;;  %v200_v47 = vmul.f32 %v196_v43, %v196_v43  ;;  %v201_v48 = vmul.f32 %v197_v44, %v197_v44 }
 0x192   :  { %v198_v49 = vsub.f32 %v182_v36, %v195_v46  ;;  %v199_v50 = vsub.f32 %v183_v32, %v195_v46  ;;  %v204_v51 = vsel %vm184_vm0, %v201_v48, 0.0 }
 0x193   :  { %v205_v52 = vadd.f32 %v204_v51, %v200_v47  ;;  %v227_v58 = vpop.permute.xlu1 %226 }
 0x194   :  { %v202_v53 = vmul.f32 %v198_v49, %v198_v49  ;;  %v203_v54 = vmul.f32 %v199_v50, %v199_v50 }
 0x195   :  { %206 = vadd.xlane.f32.xlu0 %v205_v52 }
 0x196   :  { %v208_v55 = vsel %vm184_vm0, %v203_v54, 0.0 }
 0x197   :  { %v209_v56 = vadd.f32 %v208_v55, %v202_v53  ;;  %v232_v59 = vpop.permute.xlu1 %231 }
 0x199   :  { %210 = vadd.xlane.f32.xlu1 %v209_v56 }
 0x19b   :  { %v243_v60 = vpop.permute.xlu1 %242 }
 0x1aa   :  { %247 = vperm.xlu1 %298, %v239_v57  }
 0x222   :  { %v207_v61 = vpop.xlane.xlu0 %206 }
 0x223   :  { %v212_v62 = vmul.f32 0.007142857, %v207_v61 }
 0x225   :  { %v214_v63 = vadd.f32 1e-05, %v212_v62 }
 0x226   :  { %v211_v0 = vpop.xlane.xlu1 %210 }
 0x227   :  { %324 = vrsqrt.f32 %v214_v63  ;;  %v213_v1 = vmul.f32 0.007142857, %v211_v0 }
 0x229   :  { %v215_v2 = vadd.f32 1e-05, %v213_v1 }
 0x22a   :  { %v248_v16 = vpop.permute.xlu1 %247 }
 0x22b   :  { %326 = vrsqrt.f32 %v215_v2 }
 0x231   :  { %v325_v3 = vpop.eup %324 }
 0x232   :  { %v218_v4 = vmul.f32 %v325_v3, %v196_v43  ;;  %v219_v5 = vmul.f32 %v325_v3, %v197_v44 }
 0x234   :  { %v234_v6 = vmul.f32 %v227_v58, %v218_v4  ;;  %v235_v7 = vmul.f32 %v227_v58, %v219_v5 }
 0x235   :  { %v327_v8 = vpop.eup %326 }
 0x236   :  { %v250_v9 = vadd.f32 %v243_v60, %v234_v6  ;;  %v251_v10 = vadd.f32 %v243_v60, %v235_v7  ;;  %v220_v11 = vmul.f32 %v327_v8, %v198_v49  ;;  %v221_v12 = vmul.f32 %v327_v8, %v199_v50 }
 0x238   :  { %v236_v13 = vmul.f32 %v232_v59, %v220_v11  ;;  %v237_v14 = vmul.f32 %v232_v59, %v221_v12  ;;  %v294_v15 = vpack.c.bf16 %v251_v10, %v250_v9 }
 0x23a   :  { %269 = vst.msk [vmem:[%s443_s5] sm:$0xff] %vm268_vm3, %v294_v15  ;;  %v252_v17 = vadd.f32 %v248_v16, %v236_v13  ;;  %v253_v18 = vadd.f32 %v248_v16, %v237_v14 }
 0x23c   :  { %v295_v19 = vpack.c.bf16 %v253_v18, %v252_v17 }
 0x23e   :  { %270 = vst.msk [vmem:[%s443_s5 + $0x8] sm:$0xff] %vm268_vm3, %v295_v19 }

// kernel: actor_forward.8
= control target key start
LH: loop header
LB: loop body
LE: loop exit
PB: predicated region body
PF: predicated region fallthrough
CT: control target
= control target key end

     0   :  { %v277_v0 = vmov 0   ;;  %vm133_vm0 = vcmask 130048   ;;  %vm209_vm1 = vcmask 650240   ;;  %s361_s0 = inlined_call_operand.vmem [shape: bf16[144,80], index: 0, kind: input, shape index: {}]   ;;  %s362_s1 = inlined_call_operand.vmem [shape: bf16[32,144], index: 1, kind: input, shape index: {}]   ;;  %s363_s2 = inlined_call_operand.vmem [shape: f32[32,1], index: 2, kind: input, shape index: {}]   ;;  %s364_s3 = inlined_call_operand.vmem [shape: bf16[32,80], index: 3, kind: output, shape index: {}]  }
   0x1   :  { %140 = vmatprep.subr.bf16.mxu0 %v277_v0  ;;  %241 = vmatprep.subr.bf16.mxu1 %v277_v0  ;;  %v262_v1 = vld [vmem:[%s361_s0] sm:$0xff]   ;;  %v263_v2 = vld [vmem:[%s361_s0 + $0x8] sm:$0xff]   ;;  %v264_v3 = vld [vmem:[%s361_s0 + $0x10] sm:$0xff]  }
   0x2   :  { %261 = vset.pattern.permute.xlu1 %v277_v0  ;;  %260 = vset.pattern.permute.xlu0 %v277_v0  ;;  %v265_v4 = vld [vmem:[%s361_s0 + $0x18] sm:$0xff]   ;;  %v273_v5 = vld [vmem:[%s362_s1 + $0x4] ss:$8 sps:$4 sm:$0xff]   ;;  %v39_v7 = vld [vmem:[%s363_s2 + $0x10] sm:$0xff] }
   0x3   :  { %141 = vmatpush1.bf16.msra.mxu0 %v262_v1  ;;  %250 = vmatpush1.bf16.msra.mxu1 %v262_v1  ;;  %v276_v6 = vld [vmem:[%s362_s1 + $0x14] ss:$8 sps:$4 sm:$0xff]   ;;  %v37_v8 = vld [vmem:[%s363_s2] sm:$0xff]  ;;  %v38_v11 = vld [vmem:[%s363_s2 + $0x8] sm:$0xff] }
   0x4   :  { %142 = vmatprep.subr.bf16.mxu0 %v277_v0  ;;  %242 = vmatprep.subr.bf16.mxu1 %v277_v0  ;;  %v40_v9 = vld [vmem:[%s363_s2 + $0x18] sm:$0xff]  ;;  %v266_v10 = vld [vmem:[%s361_s0 + $0x20] sm:$0xff]   ;;  %v267_v12 = vld [vmem:[%s361_s0 + $0x28] sm:$0xff]  }
   0x5   :  { %231 = vmatprep.mubr.msk.bf16.mxu0 %vm133_vm0, %v273_v5  ;;  %53 = vperm.xlu1 %261, %v39_v7   ;;  %v268_v13 = vld [vmem:[%s361_s0 + $0x30] sm:$0xff]   ;;  %v269_v14 = vld [vmem:[%s361_s0 + $0x38] sm:$0xff]   ;;  %v270_v15 = vld [vmem:[%s361_s0 + $0x40] sm:$0xff]  }
   0x6   :  { %232 = vmatprep.mubr.msk.bf16.mxu1 %vm133_vm0, %v276_v6  ;;  %43 = vperm.xlu0 %260, %v37_v8   ;;  %v271_v16 = vld [vmem:[%s362_s1] ss:$8 sps:$4 sm:$0xff]   ;;  %v274_v17 = vld [vmem:[%s362_s1 + $0x10] ss:$8 sps:$4 sm:$0xff]  }
   0x7   :  { %143 = vmatpush1.bf16.msra.mxu0 %v263_v2  ;;  %251 = vmatpush1.bf16.msra.mxu1 %v263_v2 }
   0x8   :  { %144 = vmatprep.subr.bf16.mxu0 %v277_v0  ;;  %243 = vmatprep.subr.bf16.mxu1 %v277_v0 }
   0x9   :  { %58 = vperm.xlu1 %261, %v40_v9  }
   0xa   :  { %48 = vperm.xlu0 %260, %v38_v11  }
   0xb   :  { %145 = vmatpush1.bf16.msra.mxu0 %v264_v3  ;;  %252 = vmatpush1.bf16.msra.mxu1 %v264_v3 }
   0xc   :  { %146 = vmatprep.subr.bf16.mxu0 %v277_v0  ;;  %244 = vmatprep.subr.bf16.mxu1 %v277_v0 }
   0xf   :  { %147 = vmatpush1.bf16.msra.mxu0 %v265_v4  ;;  %253 = vmatpush1.bf16.msra.mxu1 %v265_v4 }
  0x10   :  { %148 = vmatprep.subr.bf16.mxu0 %v277_v0  ;;  %245 = vmatprep.subr.bf16.mxu1 %v277_v0 }
  0x13   :  { %149 = vmatpush1.bf16.msra.mxu0 %v266_v10  ;;  %254 = vmatpush1.bf16.msra.mxu1 %v266_v10 }
  0x14   :  { %150 = vmatprep.subr.bf16.mxu0 %v277_v0  ;;  %246 = vmatprep.subr.bf16.mxu1 %v277_v0 }
  0x17   :  { %151 = vmatpush1.bf16.msra.mxu0 %v267_v12  ;;  %255 = vmatpush1.bf16.msra.mxu1 %v267_v12 }
  0x18   :  { %152 = vmatprep.subr.bf16.mxu0 %v277_v0  ;;  %247 = vmatprep.subr.bf16.mxu1 %v277_v0 }
  0x1b   :  { %153 = vmatpush1.bf16.msra.mxu0 %v268_v13  ;;  %256 = vmatpush1.bf16.msra.mxu1 %v268_v13 }
  0x1c   :  { %154 = vmatprep.subr.bf16.mxu0 %v277_v0  ;;  %248 = vmatprep.subr.bf16.mxu1 %v277_v0 }
  0x1f   :  { %155 = vmatpush1.bf16.msra.mxu0 %v269_v14  ;;  %257 = vmatpush1.bf16.msra.mxu1 %v269_v14 }
  0x20   :  { %156 = vmatprep.subr.bf16.mxu0 %v277_v0  ;;  %249 = vmatprep.subr.bf16.mxu1 %v277_v0 }
  0x23   :  { %157 = vmatpush1.bf16.msra.mxu0 %v270_v15  ;;  %258 = vmatpush1.bf16.msra.mxu1 %v270_v15 }
  0x26   :  { %173 = vmatmul.mubr.bf16.vlgmr.msra.gmra.mrb[0].mxu0 %v271_v16  ;;  %181 = vmatmul.mubr.bf16.vlgmr.msra.gmra.mrb[0].mxu1 %v274_v17 }
  0x84   :  { %v54_v18 = vpop.permute.xlu1 %53 }
  0x85   :  { %v44_v19 = vpop.permute.xlu0 %43 }
  0x88   :  { %v59_v20 = vpop.permute.xlu1 %58 }
  0x89   :  { %v49_v21 = vpop.permute.xlu0 %48 }
  0xf9   :  { %v174_v22 = vpop.f32.mrb[0].mxu0  ;;  %v182_v23 = vpop.f32.mrb[0].mxu1 }
  0xfa   :  { %v175_v24 = vadd.f32 %v174_v22, %v44_v19  ;;  %v183_v25 = vadd.f32 %v182_v23, %v54_v18  ;;  %v176_v26 = vpop.f32.mrb[1].mxu0  ;;  %v184_v27 = vpop.f32.mrb[1].mxu1 }
  0xfb   :  { %v177_v28 = vpop.f32.mrb[2].mxu0  ;;  %v185_v29 = vpop.f32.mrb[2].mxu1 }
  0xfc   :  { %v189_v30 = vmax.f32 %v175_v24, 0.0  ;;  %v191_v31 = vmax.f32 %v183_v25, 0.0  ;;  %v178_v32 = vadd.f32 %v177_v28, %v49_v21  ;;  %v186_v33 = vadd.f32 %v185_v29, %v59_v20  ;;  %v179_v34 = vpop.f32.mrb[3].mxu0  ;;  %v187_v35 = vpop.f32.mrb[3].mxu1 }
  0xfe   :  { %v237_v36 = vpack.c.bf16 %v189_v30, %v189_v30  ;;  %v239_v37 = vpack.c.bf16 %v191_v31, %v191_v31  ;;  %v190_v38 = vmax.f32 %v178_v32, 0.0  ;;  %v192_v39 = vmax.f32 %v186_v33, 0.0 }
 0x100   :  { %210 = vst.msk [vmem:[%s364_s3] sm:$0xf] %vm209_vm1, %v237_v36  ;;  %212 = vst.msk [vmem:[%s364_s3 + $0x8] sm:$0xf] %vm209_vm1, %v239_v37  ;;  %v238_v40 = vpack.c.bf16 %v190_v38, %v190_v38  ;;  %v240_v41 = vpack.c.bf16 %v192_v39, %v192_v39 }
 0x102   :  { %211 = vst.msk [vmem:[%s364_s3 + $0x4] sm:$0xf] %vm209_vm1, %v238_v40  ;;  %213 = vst.msk [vmem:[%s364_s3 + $0xc] sm:$0xf] %vm209_vm1, %v240_v41 }

// kernel: actor_forward.9
= control target key start
LH: loop header
LB: loop body
LE: loop exit
PB: predicated region body
PF: predicated region fallthrough
CT: control target
= control target key end

     0   :  { %v2784_v2 = vmov 0   ;;  %vm110_vm0 = vcmask 1041408   ;;  %vm649_vm1 = vcmask 25600   ;;  %v2785_v29 = vmov 1983009808   ;;  %s3623_s0 = inlined_call_operand.vmem [shape: bf16[2,1280], index: 0, kind: input, shape index: {}]   ;;  %s3624_s1 = inlined_call_operand.vmem [shape: f32[2,4], index: 1, kind: input, shape index: {}]   ;;  %s3625_s2 = inlined_call_operand.vmem [shape: f32[1,1280], index: 2, kind: input, shape index: {}]   ;;  %s3626_s3 = inlined_call_operand.vmem [shape: f32[1,1280], index: 3, kind: input, shape index: {}]   ;;  %s3627_s4 = inlined_call_operand.vmem [shape: f32[1,4], index: 4, kind: input, shape index: {}]   ;;  %s3628_s5 = inlined_call_operand.vmem [shape: f32[1,4], index: 5, kind: input, shape index: {}]   ;;  %s3629_s6 = inlined_call_operand.vmem [shape: bf16[1280,256], index: 6, kind: input, shape index: {}]   ;;  %s3630_s7 = inlined_call_operand.vmem [shape: bf16[4,256], index: 7, kind: input, shape index: {}]   ;;  %s3631_s8 = inlined_call_operand.vmem [shape: f32[1,256], index: 8, kind: input, shape index: {}]   ;;  %s3632_s9 = inlined_call_operand.vmem [shape: f32[1,256], index: 9, kind: input, shape index: {}]   ;;  %s3633_s10 = inlined_call_operand.vmem [shape: f32[1,256], index: 10, kind: input, shape index: {}]   ;;  %s3634_s11 = inlined_call_operand.vmem [shape: bf16[256,19], index: 11, kind: input, shape index: {}]   ;;  %s3635_s12 = inlined_call_operand.vmem [shape: f32[1,19], index: 12, kind: input, shape index: {}]   ;;  %s3636_s13 = inlined_call_operand.hbm [shape: f32[2,19], index: 13, kind: output, shape index: {}]  }
   0x1   :  { %v2474_v0 = vld [vmem:[%s3629_s6 + $0x4] ss:$8 sps:$4 sm:$0xff]   ;;  %v2476_v1 = vld [vmem:[%s3629_s6] ss:$8 sps:$4 sm:$0xff]   ;;  %963 = vmatprep.mubr.bf16.mxu0 %v2784_v2  ;;  %v2477_v3 = vld [vmem:[%s3629_s6 + $0x14] ss:$8 sps:$4 sm:$0xff]   ;;  %v60_v30 = vunpack.c.l.s4 %v2785_v29  ;;  %v62_v31 = vlaneseq }
   0x2   :  { %1772 = vmatprep.subr.bf16.mxu1 %v2474_v0  ;;  %v2479_v4 = vld [vmem:[%s3629_s6 + $0x10] ss:$8 sps:$4 sm:$0xff]   ;;  %v2480_v5 = vld [vmem:[%s3629_s6 + $0x24] ss:$8 sps:$4 sm:$0xff]   ;;  %v2482_v6 = vld [vmem:[%s3629_s6 + $0x20] ss:$8 sps:$4 sm:$0xff]  }
   0x3   :  { %1773 = vmatpush1.bf16.msra.mxu1 %v2476_v1  ;;  %v2483_v7 = vld [vmem:[%s3629_s6 + $0x34] ss:$8 sps:$4 sm:$0xff]   ;;  %v2269_v8 = vld.sshfl [vmem:[%s3630_s7] sm:$0x33 pattern:$0x76325410]  ;;  %v61_v36 = vunpack.c.0.s8 %v60_v30 }
   0x4   :  { %1774 = vmatprep.subr.bf16.mxu1 %v2477_v3  ;;  %v920_v9 = vcombine.high %v2269_v8, %v2269_v8  ;;  %v926_v10 = vsel %vm110_vm0, %v2269_v8, 0  ;;  %v2485_v11 = vld [vmem:[%s3629_s6 + $0x30] ss:$8 sps:$4 sm:$0xff]   ;;  %v2486_v12 = vld [vmem:[%s3629_s6 + $0x44] ss:$8 sps:$4 sm:$0xff]   ;;  %v2924_v37 = vshrl.u32 %v62_v31, 7 }
   0x5   :  { %v2500_v13 = vld [vmem:[%s3629_s6 + $0x104] ss:$8 sps:$4 sm:$0xff]   ;;  %v646_v14 = vld [vmem:[%s3624_s1] sm:$0x3]  ;;  %v2489_v18 = vld [vmem:[%s3629_s6 + $0x54] ss:$8 sps:$4 sm:$0xff]  }
   0x6   :  { %2270 = vmatprep.subr.msk.bf16.mxu0 %vm110_vm0, %v920_v9  ;;  %v650_v15 = vsel %vm649_vm1, %v646_v14, 0.0  ;;  %v2488_v17 = vld [vmem:[%s3629_s6 + $0x40] ss:$8 sps:$4 sm:$0xff]   ;;  %v2491_v21 = vld [vmem:[%s3629_s6 + $0x50] ss:$8 sps:$4 sm:$0xff]   ;;  %v2934_v42 = vsub.s32 %v61_v36, %v2924_v37  ;;  %vm921_vm2 = vcmask 31744  }
   0x7   :  { %1775 = vmatpush1.bf16.msra.mxu1 %v2479_v4  ;;  %932 = vmatpush1.bf16.msra.mxu0 %v926_v10  ;;  %v651_v16 = vrot.slane %v650_v15, 4  ;;  %v2492_v22 = vld [vmem:[%s3629_s6 + $0x64] ss:$8 sps:$4 sm:$0xff]   ;;  %v2494_v25 = vld [vmem:[%s3629_s6 + $0x60] ss:$8 sps:$4 sm:$0xff]  }
   0x8   :  { %1776 = vmatprep.subr.bf16.mxu1 %v2480_v5  ;;  %1813 = vmatprep.subr.bf16.mxu0 %v2500_v13  ;;  %v2495_v26 = vld [vmem:[%s3629_s6 + $0x74] ss:$8 sps:$4 sm:$0xff]   ;;  %v2497_v32 = vld [vmem:[%s3629_s6 + $0x70] ss:$8 sps:$4 sm:$0xff]   ;;  %v2501_v34 = vld [vmem:[%s3629_s6 + $0x84] ss:$8 sps:$4 sm:$0xff]  }
   0x9   :  { %v652_v19 = vadd.f32 %v651_v16, %v650_v15  ;;  %v2503_v38 = vld [vmem:[%s3629_s6 + $0x80] ss:$8 sps:$4 sm:$0xff]   ;;  %v2507_v40 = vld [vmem:[%s3629_s6 + $0x94] ss:$8 sps:$4 sm:$0xff]   ;;  %v2509_v44 = vld [vmem:[%s3629_s6 + $0x90] ss:$8 sps:$4 sm:$0xff]  }
   0xa   :  { %v46_v45 = vld [vmem:[%s3623_s0] sm:$0xff]  ;;  %v2519_v56 = vld [vmem:[%s3629_s6 + $0xb4] ss:$8 sps:$4 sm:$0xff]   ;;  %v2521_v4 = vld [vmem:[%s3629_s6 + $0xb0] ss:$8 sps:$4 sm:$0xff]  }
   0xb   :  { %1777 = vmatpush1.bf16.msra.mxu1 %v2482_v6  ;;  %v653_v20 = vrot.slane %v652_v19, 2  ;;  %v2513_v46 = vld [vmem:[%s3629_s6 + $0xa4] ss:$8 sps:$4 sm:$0xff]   ;;  %v2945_v47 = vunpack.c.l.bf16 %v46_v45  ;;  %v2947_v48 = vunpack.c.h.bf16 %v46_v45  ;;  %v2515_v55 = vld [vmem:[%s3629_s6 + $0xa0] ss:$8 sps:$4 sm:$0xff]  }
   0xc   :  { %1778 = vmatprep.subr.bf16.mxu1 %v2483_v7  ;;  %v2525_v8 = vld [vmem:[%s3629_s6 + $0xc4] ss:$8 sps:$4 sm:$0xff]  }
   0xd   :  { %v654_v23 = vadd.f32 %v653_v20, %v652_v19  ;;  %v58_v50 = vcombine.high %v2945_v47, %v2945_v47  ;;  %v65_v51 = vrot.slane %v2945_v47, %v2934_v42  ;;  %v75_v52 = vcombine.high %v2947_v48, %v2947_v48 }
   0xe   :  { %v82_v53 = vrot.slane %v2947_v48, %v2934_v42 }
   0xf   :  { %1779 = vmatpush1.bf16.msra.mxu1 %v2485_v11  ;;  %v655_v24 = vrot.slane %v654_v23, 1  ;;  %v72_v57 = vrot.slane %v58_v50, %v2934_v42  ;;  %v73_v58 = vcombine.high %v65_v51, %v65_v51  ;;  %v89_v59 = vrot.slane %v75_v52, %v2934_v42 }
  0x10   :  { %1780 = vmatprep.subr.bf16.mxu1 %v2486_v12  ;;  %v111_v61 = vsel %vm110_vm0, %v65_v51, 0.0  ;;  %v139_v62 = vsel %vm110_vm0, %v82_v53, 0.0  ;;  %v90_v0 = vcombine.high %v82_v53, %v82_v53 }
  0x11   :  { %v656_v27 = vadd.f32 %v655_v24, %v654_v23  ;;  %v74_v63 = vcombine.high %v72_v57, %v72_v57  ;;  %v112_v1 = vrot.slane %v111_v61, 4  ;;  %v118_v2 = vsel %vm110_vm0, %v73_v58, 0.0 }
  0x12   :  { %v119_v5 = vrot.slane %v118_v2, 4  ;;  %v125_v6 = vsel %vm110_vm0, %v72_v57, 0.0  ;;  %v140_v7 = vrot.slane %v139_v62, 4  ;;  %v91_v9 = vcombine.high %v89_v59, %v89_v59 }
  0x13   :  { %1781 = vmatpush1.bf16.msra.mxu1 %v2488_v17  ;;  %v657_v28 = vmul.f32 0.5, %v656_v27  ;;  %v113_v10 = vadd.f32 %v112_v1, %v111_v61  ;;  %v126_v11 = vrot.slane %v125_v6, 4  ;;  %v132_v12 = vsel %vm110_vm0, %v74_v63, 0.0 }
  0x14   :  { %1782 = vmatprep.subr.bf16.mxu1 %v2489_v18  ;;  %v133_v15 = vrot.slane %v132_v12, 4  ;;  %v141_v16 = vadd.f32 %v140_v7, %v139_v62  ;;  %v146_v19 = vsel %vm110_vm0, %v90_v0, 0.0  ;;  %v153_v24 = vsel %vm110_vm0, %v89_v59, 0.0  ;;  %v2543_v59 = vld [vmem:[%s3629_s6 + $0xf4] ss:$8 sps:$4 sm:$0xff]  }
  0x15   :  { %v2917_v33 = vsub.f32 %v646_v14, %v657_v28  ;;  %v120_v14 = vadd.f32 %v119_v5, %v118_v2  ;;  %v114_v17 = vrot.slane %v113_v10, 2  ;;  %v127_v18 = vadd.f32 %v126_v11, %v125_v6 }
  0x16   :  { %v134_v23 = vadd.f32 %v133_v15, %v132_v12  ;;  %v142_v28 = vrot.slane %v141_v16, 2  ;;  %v160_v31 = vsel %vm110_vm0, %v91_v9, 0.0  ;;  %v154_v36 = vrot.slane %v153_v24, 4  ;;  %v2551_v9 = vld [vmem:[%s3629_s6 + $0x204] ss:$8 sps:$4 sm:$0xff]  }
  0x17   :  { %1783 = vmatpush1.bf16.msra.mxu1 %v2491_v21  ;;  %v659_v35 = vmul.f32 %v2917_v33, %v2917_v33  ;;  %v2527_v21 = vld [vmem:[%s3629_s6 + $0xc0] ss:$8 sps:$4 sm:$0xff]   ;;  %v128_v27 = vrot.slane %v127_v18, 2 }
  0x18   :  { %1784 = vmatprep.subr.bf16.mxu1 %v2492_v22  ;;  %v121_v22 = vrot.slane %v120_v14, 2  ;;  %v135_v30 = vrot.slane %v134_v23, 2  ;;  %v143_v50 = vadd.f32 %v142_v28, %v141_v16  ;;  %v155_v53 = vadd.f32 %v154_v36, %v153_v24  ;;  %v2498_v24 = vld [vmem:[%s3629_s6 + $0x100] ss:$8 sps:$4 sm:$0xff]   ;;  %v2506_v28 = vld [vmem:[%s3629_s6 + $0x114] ss:$8 sps:$4 sm:$0xff]  }
  0x19   :  { %v660_v39 = vsel %vm649_vm1, %v659_v35, 0.0  ;;  %v147_v35 = vrot.slane %v146_v19, 4 }
  0x1a   :  { %v661_v41 = vrot.slane %v660_v39, 4  ;;  %v122_v29 = vadd.f32 %v121_v22, %v120_v14  ;;  %v144_v63 = vrot.slane %v143_v50, 1  ;;  %v156_v1 = vrot.slane %v155_v53, 2 }
  0x1b   :  { %1785 = vmatpush1.bf16.msra.mxu1 %v2494_v25  ;;  %v2531_v25 = vld [vmem:[%s3629_s6 + $0xd4] ss:$8 sps:$4 sm:$0xff]   ;;  %v148_v52 = vadd.f32 %v147_v35, %v146_v19 }
  0x1c   :  { %1786 = vmatprep.subr.bf16.mxu1 %v2495_v26  ;;  %v662_v43 = vadd.f32 %v661_v41, %v660_v39  ;;  %v115_v26 = vadd.f32 %v114_v17, %v113_v10  ;;  %v123_v39 = vrot.slane %v122_v29, 1  ;;  %v161_v41 = vrot.slane %v160_v31, 4 }
  0x1d   :  { %v149_v0 = vrot.slane %v148_v52, 2  ;;  %v145_v10 = vadd.f32 %v144_v63, %v143_v50  ;;  %v157_v12 = vadd.f32 %v156_v1, %v155_v53 }
  0x1e   :  { %v663_v49 = vrot.slane %v662_v43, 2  ;;  %v162_v58 = vadd.f32 %v161_v41, %v160_v31 }
  0x1f   :  { %1787 = vmatpush1.bf16.msra.mxu1 %v2497_v32  ;;  %v116_v32 = vrot.slane %v115_v26, 1  ;;  %v150_v11 = vadd.f32 %v149_v0, %v148_v52  ;;  %v2516_v0 = vld [vmem:[%s3629_s6 + $0x130] ss:$8 sps:$4 sm:$0xff]  }
  0x20   :  { %1788 = vmatprep.subr.bf16.mxu1 %v2501_v34  ;;  %v664_v54 = vadd.f32 %v663_v49, %v662_v43  ;;  %v129_v34 = vadd.f32 %v128_v27, %v127_v18  ;;  %v2537_v43 = vld [vmem:[%s3629_s6 + $0xe4] ss:$8 sps:$4 sm:$0xff]   ;;  %v163_v7 = vrot.slane %v162_v58, 2  ;;  %v158_v18 = vrot.slane %v157_v12, 1 }
  0x21   :  { %v151_v17 = vrot.slane %v150_v11, 1 }
  0x22   :  { %v665_v60 = vrot.slane %v664_v54, 1  ;;  %v130_v45 = vrot.slane %v129_v34, 1  ;;  %v164_v15 = vadd.f32 %v163_v7, %v162_v58  ;;  %v159_v22 = vadd.f32 %v158_v18, %v157_v12 }
  0x23   :  { %1789 = vmatpush1.bf16.msra.mxu1 %v2503_v38  ;;  %v2533_v38 = vld [vmem:[%s3629_s6 + $0xd0] ss:$8 sps:$4 sm:$0xff]   ;;  %v3058_v7 = vsub.s32 1, %v2924_v37 }
  0x24   :  { %1790 = vmatprep.subr.bf16.mxu1 %v2507_v40  ;;  %v666_v3 = vadd.f32 %v665_v60, %v664_v54  ;;  %v136_v40 = vadd.f32 %v135_v30, %v134_v23  ;;  %v131_v51 = vadd.f32 %v130_v45, %v129_v34  ;;  %v165_v19 = vrot.slane %v164_v15, 1 }
  0x25   :  { %v186_v23 = vmul.f32 0.5, %v145_v10  ;;  %v188_v30 = vmul.f32 0.5, %v159_v22 }
  0x26   :  { %v667_v13 = vmul.f32 0.5, %v666_v3  ;;  %v137_v49 = vrot.slane %v136_v40, 1  ;;  %v184_v60 = vmul.f32 0.5, %v131_v51  ;;  %v2267_v3 = vld [vmem:[%s3627_s4] ss:$0 sm:$0xff] }
  0x27   :  { %1791 = vmatpush1.bf16.msra.mxu1 %v2509_v44  ;;  %v117_v44 = vadd.f32 %v116_v32, %v115_v26  ;;  %v166_v26 = vadd.f32 %v165_v19, %v164_v15  ;;  %v478_v15 = vsub.s32 2, %v2924_v37 }
  0x28   :  { %1792 = vmatprep.subr.bf16.mxu1 %v2513_v46  ;;  %v668_v20 = vadd.f32 1e-05, %v667_v13  ;;  %v124_v46 = vadd.f32 %v123_v39, %v122_v29  ;;  %v2268_v13 = vld [vmem:[%s3628_s5] ss:$0 sm:$0xff]  ;;  %v2512_v39 = vld [vmem:[%s3629_s6 + $0x124] ss:$8 sps:$4 sm:$0xff]  }
  0x29   :  { %v182_v54 = vmul.f32 0.5, %v117_v44  ;;  %v189_v32 = vmul.f32 0.5, %v166_v26 }
  0x2a   :  { %2730 = vrsqrt.f32 %v668_v20  ;;  %v183_v57 = vmul.f32 0.5, %v124_v46 }
  0x2b   :  { %1793 = vmatpush1.bf16.msra.mxu1 %v2515_v55  ;;  %v2539_v55 = vld [vmem:[%s3629_s6 + $0xe0] ss:$8 sps:$4 sm:$0xff]  }
  0x2c   :  { %1794 = vmatprep.subr.bf16.mxu1 %v2519_v56  ;;  %v138_v56 = vadd.f32 %v137_v49, %v136_v40  ;;  %v202_v62 = vcombine.low %v182_v54, %v183_v57  ;;  %v2510_v49 = vld [vmem:[%s3629_s6 + $0x120] ss:$8 sps:$4 sm:$0xff]   ;;  %v2518_v54 = vld [vmem:[%s3629_s6 + $0x134] ss:$8 sps:$4 sm:$0xff]  }
  0x2e   :  { %v185_v61 = vmul.f32 0.5, %v138_v56  ;;  %v210_v6 = vrot.slane %v202_v62, %v2934_v42 }
  0x2f   :  { %1795 = vmatpush1.bf16.msra.mxu1 %v2521_v4  ;;  %v2545_v4 = vld [vmem:[%s3629_s6 + $0xf0] ss:$8 sps:$4 sm:$0xff]  }
  0x30   :  { %1796 = vmatprep.subr.bf16.mxu1 %v2525_v8  ;;  %v203_v5 = vcombine.low %v184_v60, %v185_v61 }
  0x32   :  { %v217_v14 = vrot.slane %v203_v5, %v2934_v42 }
  0x33   :  { %1797 = vmatpush1.bf16.msra.mxu1 %v2527_v21  ;;  %v152_v21 = vadd.f32 %v151_v17, %v150_v11 }
  0x34   :  { %1798 = vmatprep.subr.bf16.mxu1 %v2531_v25  ;;  %v2731_v2 = vpop.eup %2730 }
  0x35   :  { %v670_v8 = vmul.f32 %v2731_v2, %v2917_v33  ;;  %v218_v33 = vcombine.low %v210_v6, %v217_v14  ;;  %v187_v29 = vmul.f32 0.5, %v152_v21  ;;  %v2524_v2 = vld [vmem:[%s3629_s6 + $0x144] ss:$8 sps:$4 sm:$0xff]   ;;  %v3055_v6 = vsub.s32 0, %v2924_v37  ;;  %v2522_v14 = vld [vmem:[%s3629_s6 + $0x140] ss:$8 sps:$4 sm:$0xff]  }
  0x37   :  { %1799 = vmatpush1.bf16.msra.mxu1 %v2533_v38  ;;  %v677_v16 = vmul.f32 %v2267_v3, %v670_v8  ;;  %v3016_v25 = vsub.f32 %v2945_v47, %v218_v33  ;;  %v219_v34 = vcombine.low %v186_v23, %v187_v29  ;;  %v2504_v47 = vld [vmem:[%s3629_s6 + $0x110] ss:$8 sps:$4 sm:$0xff]   ;;  %v220_v38 = vcombine.low %v188_v30, %v189_v32  ;;  %v2530_v33 = vld [vmem:[%s3629_s6 + $0x154] ss:$8 sps:$4 sm:$0xff]  }
  0x38   :  { %1800 = vmatprep.subr.bf16.mxu1 %v2537_v43  ;;  %v2528_v32 = vld [vmem:[%s3629_s6 + $0x150] ss:$8 sps:$4 sm:$0xff]  }
  0x39   :  { %v684_v20 = vadd.f32 %v2268_v13, %v677_v16  ;;  %v250_v31 = vmul.f32 %v3016_v25, %v3016_v25  ;;  %v227_v40 = vrot.slane %v219_v34, %v2934_v42  ;;  %v234_v45 = vrot.slane %v220_v38, %v2934_v42  ;;  %v2536_v38 = vld [vmem:[%s3629_s6 + $0x164] ss:$8 sps:$4 sm:$0xff]  }
  0x3b   :  { %1801 = vmatpush1.bf16.msra.mxu1 %v2539_v55  ;;  %v910_v27 = vpack.c.bf16 %v684_v20, %v684_v20  ;;  %v256_v35 = vcombine.high %v250_v31, %v250_v31  ;;  %v263_v36 = vrot.slane %v250_v31, %v2934_v42  ;;  %v235_v53 = vcombine.low %v227_v40, %v234_v45 }
  0x3c   :  { %1802 = vmatprep.subr.bf16.mxu1 %v2543_v59 }
  0x3d   :  { %2271 = vmatmul.mubr.msk.bf16.vlgmr.msra.gmra.mrb[0].mxu0 %vm921_vm2, %v910_v27  ;;  %v270_v41 = vrot.slane %v256_v35, %v2934_v42  ;;  %v271_v43 = vcombine.high %v263_v36, %v263_v36  ;;  %v308_v44 = vsel %vm110_vm0, %v263_v36, 0.0  ;;  %v3044_v59 = vsub.f32 %v2947_v48, %v235_v53 }
  0x3e   :  { %1814 = vmatpush1.bf16.msra.mxu0 %v2498_v24  ;;  %v309_v46 = vrot.slane %v308_v44, 4 }
  0x3f   :  { %1803 = vmatpush1.bf16.msra.mxu1 %v2545_v4  ;;  %1815 = vmatprep.subr.bf16.mxu0 %v2506_v28  ;;  %v272_v50 = vcombine.high %v270_v41, %v270_v41  ;;  %v315_v51 = vsel %vm110_vm0, %v271_v43, 0.0  ;;  %v322_v52 = vsel %vm110_vm0, %v270_v41, 0.0  ;;  %v251_v1 = vmul.f32 %v3044_v59, %v3044_v59 }
  0x40   :  { %1854 = vmatprep.subr.bf16.mxu1 %v2551_v9  ;;  %v310_v55 = vadd.f32 %v309_v46, %v308_v44  ;;  %v316_v56 = vrot.slane %v315_v51, 4  ;;  %v323_v57 = vrot.slane %v322_v52, 4  ;;  %v2534_v44 = vld [vmem:[%s3629_s6 + $0x160] ss:$8 sps:$4 sm:$0xff]  }
  0x41   :  { %v329_v58 = vsel %vm110_vm0, %v272_v50, 0.0  ;;  %v273_v8 = vcombine.high %v251_v1, %v251_v1  ;;  %v280_v9 = vrot.slane %v251_v1, %v2934_v42 }
  0x42   :  { %1816 = vmatpush1.bf16.msra.mxu0 %v2504_v47  ;;  %v311_v60 = vrot.slane %v310_v55, 2  ;;  %v317_v61 = vadd.f32 %v316_v56, %v315_v51  ;;  %v324_v62 = vadd.f32 %v323_v57, %v322_v52  ;;  %v330_v63 = vrot.slane %v329_v58, 4 }
  0x43   :  { %1817 = vmatprep.subr.bf16.mxu0 %v2512_v39  ;;  %v287_v16 = vrot.slane %v273_v8, %v2934_v42  ;;  %v288_v17 = vcombine.high %v280_v9, %v280_v9  ;;  %v336_v18 = vsel %vm110_vm0, %v280_v9, 0.0 }
  0x44   :  { %v312_v3 = vadd.f32 %v311_v60, %v310_v55  ;;  %v318_v48 = vrot.slane %v317_v61, 2  ;;  %v325_v4 = vrot.slane %v324_v62, 2  ;;  %v331_v5 = vadd.f32 %v330_v63, %v329_v58  ;;  %v3088_v60 = vld [vmem:[%s3625_s2] sm:$0xff] }
  0x45   :  { %v289_v23 = vcombine.high %v287_v16, %v287_v16  ;;  %v337_v24 = vrot.slane %v336_v18, 4  ;;  %v343_v26 = vsel %vm110_vm0, %v288_v17, 0.0  ;;  %v350_v27 = vsel %vm110_vm0, %v287_v16, 0.0 }
  0x46   :  { %1818 = vmatpush1.bf16.msra.mxu0 %v2510_v49  ;;  %v313_v10 = vrot.slane %v312_v3, 1  ;;  %v319_v11 = vadd.f32 %v318_v48, %v317_v61  ;;  %v326_v12 = vadd.f32 %v325_v4, %v324_v62  ;;  %v332_v13 = vrot.slane %v331_v5, 2  ;;  %v2540_v48 = vld [vmem:[%s3629_s6 + $0x170] ss:$8 sps:$4 sm:$0xff]  }
  0x47   :  { %1819 = vmatprep.subr.bf16.mxu0 %v2518_v54  ;;  %v338_v34 = vadd.f32 %v337_v24, %v336_v18  ;;  %v344_v47 = vrot.slane %v343_v26, 4  ;;  %v351_v35 = vrot.slane %v350_v27, 4  ;;  %v357_v36 = vsel %vm110_vm0, %v289_v23, 0.0  ;;  %v2542_v54 = vld [vmem:[%s3629_s6 + $0x174] ss:$8 sps:$4 sm:$0xff]  }
  0x48   :  { %v314_v19 = vadd.f32 %v313_v10, %v312_v3  ;;  %v320_v20 = vrot.slane %v319_v11, 1  ;;  %v327_v21 = vrot.slane %v326_v12, 1  ;;  %v333_v22 = vadd.f32 %v332_v13, %v331_v5  ;;  %v2548_v10 = vld [vmem:[%s3629_s6 + $0x184] ss:$8 sps:$4 sm:$0xff]  }
  0x49   :  { %v339_v45 = vrot.slane %v338_v34, 2  ;;  %v345_v46 = vadd.f32 %v344_v47, %v343_v26  ;;  %v352_v49 = vadd.f32 %v351_v35, %v350_v27  ;;  %v358_v50 = vrot.slane %v357_v36, 4 }
  0x4a   :  { %1820 = vmatpush1.bf16.msra.mxu0 %v2516_v0  ;;  %v321_v28 = vadd.f32 %v320_v20, %v319_v11  ;;  %v328_v29 = vadd.f32 %v327_v21, %v326_v12  ;;  %v334_v30 = vrot.slane %v333_v22, 1  ;;  %v378_v31 = vmul.f32 0.5, %v314_v19  ;;  %v2546_v19 = vld [vmem:[%s3629_s6 + $0x180] ss:$8 sps:$4 sm:$0xff]  }
  0x4b   :  { %1821 = vmatprep.subr.bf16.mxu0 %v2524_v2  ;;  %v340_v55 = vadd.f32 %v339_v45, %v338_v34  ;;  %v346_v56 = vrot.slane %v345_v46, 2  ;;  %v353_v57 = vrot.slane %v352_v49, 2  ;;  %v359_v58 = vadd.f32 %v358_v50, %v357_v36  ;;  %v3094_v2 = vld [vmem:[%s3626_s3] sm:$0xff] }
  0x4c   :  { %v335_v39 = vadd.f32 %v334_v30, %v333_v22  ;;  %v379_v40 = vmul.f32 0.5, %v321_v28  ;;  %v380_v41 = vmul.f32 0.5, %v328_v29  ;;  %v388_v43 = vadd.f32 1e-05, %v378_v31  ;;  %v2554_v30 = vld [vmem:[%s3629_s6 + $0x194] ss:$8 sps:$4 sm:$0xff]  }
  0x4d   :  { %v482_v62 = vsub.s32 3, %v2924_v37  ;;  %v341_v63 = vrot.slane %v340_v55, 1  ;;  %v347_v0 = vadd.f32 %v346_v56, %v345_v46  ;;  %v354_v1 = vadd.f32 %v353_v57, %v352_v49 }
  0x4e   :  { %1822 = vmatpush1.bf16.msra.mxu0 %v2522_v14  ;;  %v381_v51 = vmul.f32 0.5, %v335_v39  ;;  %v389_v52 = vadd.f32 1e-05, %v379_v40  ;;  %v390_v53 = vadd.f32 1e-05, %v380_v41  ;;  %2732 = vrsqrt.f32 %v388_v43 }
  0x4f   :  { %1823 = vmatprep.subr.bf16.mxu0 %v2530_v33  ;;  %v360_v3 = vrot.slane %v359_v58, 2  ;;  %v471_v4 = vrot.slane %v3088_v60, %v3055_v6  ;;  %v342_v5 = vadd.f32 %v341_v63, %v340_v55  ;;  %v348_v8 = vrot.slane %v347_v0, 1  ;;  %v2560_v43 = vld [vmem:[%s3629_s6 + $0x1a4] ss:$8 sps:$4 sm:$0xff]  }
  0x50   :  { %v391_v61 = vadd.f32 1e-05, %v381_v51  ;;  %2734 = vrsqrt.f32 %v389_v52  ;;  %v355_v9 = vrot.slane %v354_v1, 1  ;;  %v475_v11 = vrot.slane %v3088_v60, %v3058_v7 }
  0x51   :  { %2736 = vrsqrt.f32 %v390_v53  ;;  %v479_v12 = vrot.slane %v3088_v60, %v478_v15  ;;  %v483_v13 = vrot.slane %v3088_v60, %v482_v62  ;;  %v361_v14 = vadd.f32 %v360_v3, %v359_v58 }
  0x52   :  { %1824 = vmatpush1.bf16.msra.mxu0 %v2528_v32  ;;  %2738 = vrsqrt.f32 %v391_v61  ;;  %v561_v16 = vrot.slane %v3094_v2, %v3055_v6  ;;  %v349_v17 = vadd.f32 %v348_v8, %v347_v0  ;;  %v356_v18 = vadd.f32 %v355_v9, %v354_v1  ;;  %v2558_v61 = vld [vmem:[%s3629_s6 + $0x1a0] ss:$8 sps:$4 sm:$0xff]  }
  0x53   :  { %1825 = vmatprep.subr.bf16.mxu0 %v2536_v38  ;;  %v382_v33 = vmul.f32 0.5, %v342_v5  ;;  %v565_v20 = vrot.slane %v3094_v2, %v3058_v7  ;;  %v569_v21 = vrot.slane %v3094_v2, %v478_v15  ;;  %v573_v22 = vrot.slane %v3094_v2, %v482_v62  ;;  %v2552_v38 = vld [vmem:[%s3629_s6 + $0x190] ss:$8 sps:$4 sm:$0xff]  }
  0x54   :  { %v362_v23 = vrot.slane %v361_v14, 1  ;;  %v383_v24 = vmul.f32 0.5, %v349_v17  ;;  %v384_v26 = vmul.f32 0.5, %v356_v18  ;;  %v508_v29 = vcombine.low %v471_v4, %v475_v11  ;;  %v2564_v11 = vld [vmem:[%s3629_s6 + $0x1b0] ss:$8 sps:$4 sm:$0xff]  }
  0x55   :  { %v392_v27 = vadd.f32 1e-05, %v382_v33  ;;  %v509_v32 = vcombine.low %v479_v12, %v483_v13  ;;  %v598_v35 = vcombine.low %v561_v16, %v565_v20  ;;  %v599_v36 = vcombine.low %v569_v21, %v573_v22  ;;  %v2570_v21 = vld [vmem:[%s3629_s6 + $0x1c0] ss:$8 sps:$4 sm:$0xff]  }
  0x56   :  { %1826 = vmatpush1.bf16.msra.mxu0 %v2534_v44  ;;  %v363_v31 = vadd.f32 %v362_v23, %v361_v14  ;;  %v393_v34 = vadd.f32 1e-05, %v383_v24  ;;  %v394_v47 = vadd.f32 1e-05, %v384_v26  ;;  %v486_v44 = vsub.s32 4, %v2924_v37 }
  0x57   :  { %1827 = vmatprep.subr.bf16.mxu0 %v2542_v54  ;;  %2740 = vrsqrt.f32 %v392_v27  ;;  %v490_v45 = vsub.s32 5, %v2924_v37  ;;  %v494_v50 = vsub.s32 6, %v2924_v37  ;;  %v498_v51 = vsub.s32 7, %v2924_v37  ;;  %v2566_v37 = vld [vmem:[%s3629_s6 + $0x1b4] ss:$8 sps:$4 sm:$0xff]  }
  0x58   :  { %v2733_v28 = vpop.eup %2732  ;;  %v385_v39 = vmul.f32 0.5, %v363_v31  ;;  %2742 = vrsqrt.f32 %v393_v34  ;;  %v516_v54 = vrot.slane %v508_v29, %v2934_v42  ;;  %v523_v55 = vrot.slane %v509_v32, %v2934_v42  ;;  %v2578_v23 = vld [vmem:[%s3629_s6 + $0x1d4] ss:$8 sps:$4 sm:$0xff]   ;;  %v2576_v31 = vld [vmem:[%s3629_s6 + $0x1d0] ss:$8 sps:$4 sm:$0xff]  }
  0x59   :  { %2744 = vrsqrt.f32 %v394_v47  ;;  %v606_v57 = vrot.slane %v598_v35, %v2934_v42  ;;  %v613_v58 = vrot.slane %v599_v36, %v2934_v42  ;;  %v487_v62 = vrot.slane %v3088_v60, %v486_v44  ;;  %v2584_v47 = vld [vmem:[%s3629_s6 + $0x1e4] ss:$8 sps:$4 sm:$0xff]   ;;  %v2549_v36 = vld [vmem:[%s3629_s6 + $0x200] ss:$8 sps:$4 sm:$0xff]  }
  0x5a   :  { %1828 = vmatpush1.bf16.msra.mxu0 %v2540_v48  ;;  %v2735_v15 = vpop.eup %2734  ;;  %v395_v49 = vadd.f32 1e-05, %v385_v39  ;;  %v491_v63 = vrot.slane %v3088_v60, %v490_v45  ;;  %v495_v0 = vrot.slane %v3088_v60, %v494_v50  ;;  %v499_v1 = vrot.slane %v3088_v60, %v498_v51  ;;  %v2572_v60 = vld [vmem:[%s3629_s6 + $0x1c4] ss:$8 sps:$4 sm:$0xff]  }
  0x5b   :  { %1829 = vmatprep.subr.bf16.mxu0 %v2548_v10  ;;  %v2737_v40 = vpop.eup %2736  ;;  %v418_v41 = vcombine.low %v2733_v28, %v2735_v15  ;;  %v524_v48 = vcombine.low %v516_v54, %v523_v55  ;;  %v577_v4 = vrot.slane %v3094_v2, %v486_v44  ;;  %v581_v5 = vrot.slane %v3094_v2, %v490_v45  ;;  %v3173_v28 = vld [vmem:[%s3623_s0 + $0x8] sm:$0x3]  ;;  %v2555_v55 = vld [vmem:[%s3629_s6 + $0x210] ss:$8 sps:$4 sm:$0xff]  }
  0x5c   :  { %v2739_v46 = vpop.eup %2738  ;;  %2746 = vrsqrt.f32 %v395_v49  ;;  %v614_v10 = vcombine.low %v606_v57, %v613_v58  ;;  %v585_v12 = vrot.slane %v3094_v2, %v494_v50  ;;  %v589_v13 = vrot.slane %v3094_v2, %v498_v51 }
  0x5d   :  { %v419_v52 = vcombine.low %v2737_v40, %v2739_v46  ;;  %v426_v53 = vrot.slane %v418_v41, %v2934_v42  ;;  %v525_v14 = vcombine.low %v487_v62, %v491_v63  ;;  %v526_v16 = vcombine.low %v495_v0, %v499_v1  ;;  %v2582_v46 = vld [vmem:[%s3629_s6 + $0x1e0] ss:$8 sps:$4 sm:$0xff]   ;;  %v2588_v63 = vld [vmem:[%s3629_s6 + $0x1f0] ss:$8 sps:$4 sm:$0xff]  }
  0x5e   :  { %1830 = vmatpush1.bf16.msra.mxu0 %v2546_v19  ;;  %v615_v19 = vcombine.low %v577_v4, %v581_v5  ;;  %v616_v22 = vcombine.low %v585_v12, %v589_v13  ;;  %v50_v34 = vunpack.c.l.bf16 %v3173_v28 }
  0x5f   :  { %1831 = vmatprep.subr.bf16.mxu0 %v2554_v30  ;;  %v433_v56 = vrot.slane %v419_v52, %v2934_v42  ;;  %v533_v26 = vrot.slane %v525_v14, %v2934_v42  ;;  %v540_v27 = vrot.slane %v526_v16, %v2934_v42  ;;  %v2590_v52 = vld [vmem:[%s3629_s6 + $0x1f4] ss:$8 sps:$4 sm:$0xff]  }
  0x60   :  { %v623_v15 = vrot.slane %v615_v19, %v2934_v42  ;;  %v630_v40 = vrot.slane %v616_v22, %v2934_v42  ;;  %v98_v44 = vrot.slane %v50_v34, %v2934_v42 }
  0x61   :  { %v434_v3 = vcombine.low %v426_v53, %v433_v56  ;;  %v2741_v8 = vpop.eup %2740  ;;  %v541_v51 = vcombine.low %v533_v26, %v540_v27 }
  0x62   :  { %1832 = vmatpush1.bf16.msra.mxu0 %v2552_v38  ;;  %v2743_v17 = vpop.eup %2742  ;;  %v99_v53 = vcombine.high %v98_v44, %v98_v44  ;;  %v167_v54 = vsel %vm110_vm0, %v98_v44, 0.0  ;;  %v631_v58 = vcombine.low %v623_v15, %v630_v40 }
  0x63   :  { %1833 = vmatprep.subr.bf16.mxu0 %v2560_v43  ;;  %v463_v9 = vmul.f32 %v434_v3, %v3016_v25  ;;  %v2745_v25 = vpop.eup %2744  ;;  %v435_v33 = vcombine.low %v2741_v8, %v2743_v17  ;;  %v2557_v43 = vld [vmem:[%s3629_s6 + $0x214] ss:$8 sps:$4 sm:$0xff]  }
  0x64   :  { %v174_v62 = vsel %vm110_vm0, %v99_v53, 0.0 }
  0x65   :  { %v553_v18 = vmul.f32 %v524_v48, %v463_v9  ;;  %v443_v24 = vrot.slane %v435_v33, %v2934_v42  ;;  %v175_v3 = vrot.slane %v174_v62, 4  ;;  %v2561_v48 = vld [vmem:[%s3629_s6 + $0x220] ss:$8 sps:$4 sm:$0xff]   ;;  %v2569_v9 = vld [vmem:[%s3629_s6 + $0x234] ss:$8 sps:$4 sm:$0xff]  }
  0x66   :  { %1834 = vmatpush1.bf16.msra.mxu0 %v2558_v61  ;;  %v2747_v2 = vpop.eup %2746  ;;  %v168_v61 = vrot.slane %v167_v54, 4 }
  0x67   :  { %1835 = vmatprep.subr.bf16.mxu0 %v2566_v37  ;;  %v643_v20 = vadd.f32 %v614_v10, %v553_v18  ;;  %v436_v32 = vcombine.low %v2745_v25, %v2747_v2  ;;  %v2563_v37 = vld [vmem:[%s3629_s6 + $0x224] ss:$8 sps:$4 sm:$0xff]   ;;  %v176_v8 = vadd.f32 %v175_v3, %v174_v62 }
  0x68   :  { %v169_v1 = vadd.f32 %v168_v61, %v167_v54 }
  0x69   :  { %v688_v29 = vcombine.high %v643_v20, %v643_v20  ;;  %v695_v30 = vrot.slane %v643_v20, %v2934_v42  ;;  %v450_v39 = vrot.slane %v436_v32, %v2934_v42  ;;  %v177_v13 = vrot.slane %v176_v8, 2 }
  0x6a   :  { %1836 = vmatpush1.bf16.msra.mxu0 %v2564_v11  ;;  %v170_v5 = vrot.slane %v169_v1, 2 }
  0x6b   :  { %1837 = vmatprep.subr.bf16.mxu0 %v2572_v60  ;;  %v703_v35 = vcombine.high %v695_v30, %v695_v30  ;;  %v3188_v38 = vrot.slane %v688_v29, %v2934_v42  ;;  %v740_v41 = vpack.c.bf16 %v695_v30, %v695_v30  ;;  %v451_v50 = vcombine.low %v443_v24, %v450_v39 }
  0x6c   :  { %v171_v12 = vadd.f32 %v170_v5, %v169_v1 }
  0x6d   :  { %v741_v45 = vpack.c.bf16 %v703_v35, %v703_v35  ;;  %v704_v49 = vcombine.high %v3188_v38, %v3188_v38  ;;  %v464_v57 = vmul.f32 %v451_v50, %v3044_v59  ;;  %v2596_v59 = vld [vmem:[%s3629_s6 + $0x304] ss:$8 sps:$4 sm:$0xff]   ;;  %v742_v60 = vpack.c.bf16 %v3188_v38, %v3188_v38 }
  0x6e   :  { %1838 = vmatpush1.bf16.msra.mxu0 %v2570_v21 }
  0x6f   :  { %1839 = vmatprep.subr.bf16.mxu0 %v2578_v23  ;;  %1804 = vmatprep.mubr.bf16.mxu1 %v741_v45  ;;  %v743_v56 = vpack.c.bf16 %v704_v49, %v704_v49  ;;  %v554_v0 = vmul.f32 %v541_v51, %v464_v57 }
  0x70   :  { %1805 = vmatmul.mubr.bf16.vlgmr.msra.gmra.mrb[0].mxu1 %v740_v41 }
  0x71   :  { %1855 = vmatpush1.bf16.msra.mxu1 %v2549_v36  ;;  %1845 = vmatprep.mubr.bf16.mxu0 %v743_v56  ;;  %v644_v4 = vadd.f32 %v631_v58, %v554_v0 }
  0x72   :  { %1840 = vmatpush1.bf16.msra.mxu0 %v2576_v31  ;;  %1856 = vmatprep.subr.bf16.mxu1 %v2557_v43 }
  0x73   :  { %1841 = vmatprep.subr.bf16.mxu0 %v2584_v47  ;;  %v3228_v10 = vrot.slane %v644_v4, %v2934_v42  ;;  %v705_v11 = vcombine.high %v644_v4, %v644_v4 }
  0x75   :  { %1857 = vmatpush1.bf16.msra.mxu1 %v2555_v55 }
  0x76   :  { %1842 = vmatpush1.bf16.msra.mxu0 %v2582_v46  ;;  %1858 = vmatprep.subr.bf16.mxu1 %v2563_v37 }
  0x77   :  { %1843 = vmatprep.subr.bf16.mxu0 %v2590_v52 }
  0x78   :  { %18 = vsyncpa [#allocation3], 0  ;;  %v2594_v14 = vld [vmem:[%s3629_s6 + $0x300] ss:$8 sps:$4 sm:$0xff]   ;;  %v720_v16 = vcombine.high %v3228_v10, %v3228_v10  ;;  %v3238_v17 = vrot.slane %v705_v11, %v2934_v42  ;;  %v172_v18 = vrot.slane %v171_v12, 1  ;;  %v178_v33 = vadd.f32 %v177_v13, %v176_v8  ;;  %s2786_s29 = smov [#allocation2]  }
  0x79   :  { %v2602_v25 = vld [vmem:[%s3629_s6 + $0x314] ss:$8 sps:$4 sm:$0xff]   ;;  %1859 = vmatpush1.bf16.msra.mxu1 %v2561_v48  ;;  %v2567_v19 = vld [vmem:[%s3629_s6 + $0x230] ss:$8 sps:$4 sm:$0xff]   ;;  %v2575_v2 = vld [vmem:[%s3629_s6 + $0x244] ss:$8 sps:$4 sm:$0xff]  }
  0x7a   :  { %1844 = vmatpush1.bf16.msra.mxu0 %v2588_v63  ;;  %v745_v20 = vpack.c.bf16 %v720_v16, %v720_v16  ;;  %v721_v21 = vcombine.high %v3238_v17, %v3238_v17  ;;  %v173_v22 = vadd.f32 %v172_v18, %v171_v12  ;;  %1860 = vmatprep.subr.bf16.mxu1 %v2569_v9  ;;  %v179_v23 = vrot.slane %v178_v33, 1  ;;  %v2600_v24 = vld [vmem:[%s3629_s6 + $0x310] ss:$8 sps:$4 sm:$0xff]   ;;  %v2608_v27 = vld [vmem:[%s3629_s6 + $0x324] ss:$8 sps:$4 sm:$0xff]  }
  0x7b   :  { %1895 = vmatprep.subr.bf16.mxu0 %v2596_v59  ;;  %v2573_v31 = vld [vmem:[%s3629_s6 + $0x240] ss:$8 sps:$4 sm:$0xff]   ;;  %v2581_v32 = vld [vmem:[%s3629_s6 + $0x254] ss:$8 sps:$4 sm:$0xff]   ;;  %v2579_v38 = vld [vmem:[%s3629_s6 + $0x250] ss:$8 sps:$4 sm:$0xff]  }
  0x7c   :  { %1886 = vmatprep.mubr.bf16.mxu1 %v745_v20  ;;  %v747_v26 = vpack.c.bf16 %v721_v21, %v721_v21  ;;  %v180_v29 = vadd.f32 %v179_v23, %v178_v33  ;;  %v190_v30 = vmul.f32 0.5, %v173_v22  ;;  %v2606_v15 = vld [vmem:[%s3629_s6 + $0x320] ss:$8 sps:$4 sm:$0xff]   ;;  %v2614_v35 = vld [vmem:[%s3629_s6 + $0x334] ss:$8 sps:$4 sm:$0xff]   ;;  %vm2240_vm3 = vcmask 148480  }
  0x7d   :  { %1846 = vmatmul.mubr.bf16.vlgmr.msra.gmra.mrb[4].mxu0 %v742_v60  ;;  %1861 = vmatpush1.bf16.msra.mxu1 %v2567_v19  ;;  %v2587_v39 = vld [vmem:[%s3629_s6 + $0x264] ss:$8 sps:$4 sm:$0xff]   ;;  %v2612_v41 = vld [vmem:[%s3629_s6 + $0x330] ss:$8 sps:$4 sm:$0xff]   ;;  %v2585_v45 = vld [vmem:[%s3629_s6 + $0x260] ss:$8 sps:$4 sm:$0xff]  }
  0x7e   :  { %1896 = vmatpush1.bf16.msra.mxu0 %v2594_v14  ;;  %1927 = vmatprep.mubr.bf16.mxu0 %v747_v26  ;;  %v191_v47 = vmul.f32 0.5, %v180_v29  ;;  %v2620_v43 = vld [vmem:[%s3629_s6 + $0x344] ss:$8 sps:$4 sm:$0xff]   ;;  %v2593_v46 = vld [vmem:[%s3629_s6 + $0x274] ss:$8 sps:$4 sm:$0xff]  }
  0x7f   :  { %1897 = vmatprep.subr.bf16.mxu0 %v2602_v25  ;;  %1862 = vmatprep.subr.bf16.mxu1 %v2575_v2  ;;  %v2618_v28 = vld [vmem:[%s3629_s6 + $0x340] ss:$8 sps:$4 sm:$0xff]   ;;  %v2591_v51 = vld [vmem:[%s3629_s6 + $0x270] ss:$8 sps:$4 sm:$0xff]   ;;  %v2599_v52 = vld [vmem:[%s3629_s6 + $0x284] ss:$8 sps:$4 sm:$0xff]  }
  0x80   :  { %v236_v36 = vcombine.low %v190_v30, %v191_v47  ;;  %v2624_v55 = vld [vmem:[%s3629_s6 + $0x350] ss:$8 sps:$4 sm:$0xff]   ;;  %v2632_v57 = vld [vmem:[%s3629_s6 + $0x364] ss:$8 sps:$4 sm:$0xff]   ;;  %v2597_v61 = vld [vmem:[%s3629_s6 + $0x280] ss:$8 sps:$4 sm:$0xff]  }
  0x81   :  { %1863 = vmatpush1.bf16.msra.mxu1 %v2573_v31  ;;  %v2605_v63 = vld [vmem:[%s3629_s6 + $0x294] ss:$8 sps:$4 sm:$0xff]   ;;  %v2630_v0 = vld [vmem:[%s3629_s6 + $0x360] ss:$8 sps:$4 sm:$0xff]   ;;  %v2603_v48 = vld [vmem:[%s3629_s6 + $0x290] ss:$8 sps:$4 sm:$0xff]  }
  0x82   :  { %1898 = vmatpush1.bf16.msra.mxu0 %v2600_v24  ;;  %1864 = vmatprep.subr.bf16.mxu1 %v2581_v32  ;;  %v243_v40 = vrot.slane %v236_v36, %v2934_v42  ;;  %v2638_v59 = vld [vmem:[%s3629_s6 + $0x374] ss:$8 sps:$4 sm:$0xff]   ;;  %v2611_v8 = vld [vmem:[%s3629_s6 + $0x2a4] ss:$8 sps:$4 sm:$0xff]   ;;  %v2636_v9 = vld [vmem:[%s3629_s6 + $0x370] ss:$8 sps:$4 sm:$0xff]  }
  0x83   :  { %1899 = vmatprep.subr.bf16.mxu0 %v2608_v27  ;;  %v2644_v13 = vld [vmem:[%s3629_s6 + $0x384] ss:$8 sps:$4 sm:$0xff]   ;;  %v2609_v60 = vld [vmem:[%s3629_s6 + $0x2a0] ss:$8 sps:$4 sm:$0xff]   ;;  %v2617_v18 = vld [vmem:[%s3629_s6 + $0x2b4] ss:$8 sps:$4 sm:$0xff]  }
  0x84   :  { %v3284_v44 = vsub.f32 %v50_v34, %v243_v40  ;;  %v2626_v34 = vld [vmem:[%s3629_s6 + $0x354] ss:$8 sps:$4 sm:$0xff]   ;;  %v2642_v25 = vld [vmem:[%s3629_s6 + $0x380] ss:$8 sps:$4 sm:$0xff]   ;;  %v2615_v21 = vld [vmem:[%s3629_s6 + $0x2b0] ss:$8 sps:$4 sm:$0xff]  }
  0x85   :  { %1865 = vmatpush1.bf16.msra.mxu1 %v2579_v38  ;;  %v2650_v20 = vld [vmem:[%s3629_s6 + $0x394] ss:$8 sps:$4 sm:$0xff]   ;;  %v2623_v23 = vld [vmem:[%s3629_s6 + $0x2c4] ss:$8 sps:$4 sm:$0xff]   ;;  %v2648_v24 = vld [vmem:[%s3629_s6 + $0x390] ss:$8 sps:$4 sm:$0xff]  }
  0x86   :  { %1900 = vmatpush1.bf16.msra.mxu0 %v2606_v15  ;;  %1866 = vmatprep.subr.bf16.mxu1 %v2587_v39  ;;  %v252_v49 = vmul.f32 %v3284_v44, %v3284_v44  ;;  %v2656_v27 = vld [vmem:[%s3629_s6 + $0x3a4] ss:$8 sps:$4 sm:$0xff]   ;;  %v2621_v29 = vld [vmem:[%s3629_s6 + $0x2c0] ss:$8 sps:$4 sm:$0xff]   ;;  %v2629_v30 = vld [vmem:[%s3629_s6 + $0x2d4] ss:$8 sps:$4 sm:$0xff]  }
  0x87   :  { %1901 = vmatprep.subr.bf16.mxu0 %v2614_v35  ;;  %v2654_v31 = vld [vmem:[%s3629_s6 + $0x3a0] ss:$8 sps:$4 sm:$0xff]   ;;  %v2662_v47 = vld [vmem:[%s3629_s6 + $0x3b4] ss:$8 sps:$4 sm:$0xff]   ;;  %v2627_v15 = vld [vmem:[%s3629_s6 + $0x2d0] ss:$8 sps:$4 sm:$0xff]  }
  0x88   :  { %v296_v50 = vrot.slane %v252_v49, %v2934_v42  ;;  %v52_v32 = vld [vmem:[%s3625_s2 + $0x8] sm:$0x3]  ;;  %v2635_v36 = vld [vmem:[%s3629_s6 + $0x2e4] ss:$8 sps:$4 sm:$0xff]   ;;  %v2660_v40 = vld [vmem:[%s3629_s6 + $0x3b0] ss:$8 sps:$4 sm:$0xff]  }
  0x89   :  { %1867 = vmatpush1.bf16.msra.mxu1 %v2585_v45  ;;  %v54_v35 = vld [vmem:[%s3626_s3 + $0x8] sm:$0x3]  ;;  %v503_v38 = vrot.slane %v52_v32, %v3055_v6  ;;  %v507_v39 = vrot.slane %v52_v32, %v3058_v7 }
  0x8a   :  { %1902 = vmatpush1.bf16.msra.mxu0 %v2612_v41  ;;  %1868 = vmatprep.subr.bf16.mxu1 %v2593_v46  ;;  %v297_v53 = vcombine.high %v296_v50, %v296_v50  ;;  %v364_v54 = vsel %vm110_vm0, %v296_v50, 0.0  ;;  %v2668_v41 = vld [vmem:[%s3629_s6 + $0x3c4] ss:$8 sps:$4 sm:$0xff]   ;;  %v597_v45 = vrot.slane %v54_v35, %v3058_v7  ;;  %v2633_v49 = vld [vmem:[%s3629_s6 + $0x2e0] ss:$8 sps:$4 sm:$0xff]  }
  0x8b   :  { %1903 = vmatprep.subr.bf16.mxu0 %v2620_v43  ;;  %v365_v56 = vrot.slane %v364_v54, 4  ;;  %v593_v43 = vrot.slane %v54_v35, %v3055_v6  ;;  %v2702_v32 = vld [vmem:[%s3629_s6 + $0x4c0] ss:$8 sps:$4 sm:$0xff]   ;;  %v2710_v35 = vld [vmem:[%s3629_s6 + $0x4e4] ss:$8 sps:$4 sm:$0xff]  }
  0x8c   :  { %v371_v58 = vsel %vm110_vm0, %v297_v53, 0.0 }
  0x8d   :  { %1869 = vmatpush1.bf16.msra.mxu1 %v2591_v51  ;;  %v366_v37 = vadd.f32 %v365_v56, %v364_v54  ;;  %v372_v62 = vrot.slane %v371_v58, 4  ;;  %v2666_v51 = vld [vmem:[%s3629_s6 + $0x3c0] ss:$8 sps:$4 sm:$0xff]   ;;  %v632_v54 = vcombine.low %v593_v43, %v597_v45  ;;  %v2647_v56 = vld [vmem:[%s3629_s6 + $0x404] ss:$8 sps:$4 sm:$0xff]  }
  0x8e   :  { %1904 = vmatpush1.bf16.msra.mxu0 %v2618_v28  ;;  %1870 = vmatprep.subr.bf16.mxu1 %v2599_v52  ;;  %v2641_v28 = vld [vmem:[%s3629_s6 + $0x2f4] ss:$8 sps:$4 sm:$0xff]  }
  0x8f   :  { %1905 = vmatprep.subr.bf16.mxu0 %v2626_v34  ;;  %v367_v1 = vrot.slane %v366_v37, 2  ;;  %v373_v3 = vadd.f32 %v372_v62, %v371_v58  ;;  %v542_v34 = vcombine.low %v503_v38, %v507_v39  ;;  %v2674_v52 = vld [vmem:[%s3629_s6 + $0x3d4] ss:$8 sps:$4 sm:$0xff]   ;;  %v2680_v62 = vld [vmem:[%s3629_s6 + $0x3e4] ss:$8 sps:$4 sm:$0xff]  }
  0x90   :  { %v2713_v38 = vld [vmem:[%s3629_s6 + $0x4f4] ss:$8 sps:$4 sm:$0xff]   ;;  %v2711_v39 = vld [vmem:[%s3629_s6 + $0x4f0] ss:$8 sps:$4 sm:$0xff]  }
  0x91   :  { %1871 = vmatpush1.bf16.msra.mxu1 %v2597_v61  ;;  %v368_v4 = vadd.f32 %v367_v1, %v366_v37  ;;  %v374_v5 = vrot.slane %v373_v3, 2  ;;  %v549_v58 = vrot.slane %v542_v34, %v2934_v42  ;;  %v2672_v61 = vld [vmem:[%s3629_s6 + $0x3d0] ss:$8 sps:$4 sm:$0xff]   ;;  %v744_v37 = vpack.c.bf16 %v3228_v10, %v3228_v10  ;;  %v2645_v1 = vld [vmem:[%s3629_s6 + $0x400] ss:$8 sps:$4 sm:$0xff]  }
  0x92   :  { %1906 = vmatpush1.bf16.msra.mxu0 %v2624_v55  ;;  %1872 = vmatprep.subr.bf16.mxu1 %v2605_v63  ;;  %v2639_v55 = vld [vmem:[%s3629_s6 + $0x2f0] ss:$8 sps:$4 sm:$0xff]  }
  0x93   :  { %1907 = vmatprep.subr.bf16.mxu0 %v2632_v57  ;;  %v369_v11 = vrot.slane %v368_v4, 1  ;;  %v375_v12 = vadd.f32 %v374_v5, %v373_v3  ;;  %v2653_v3 = vld [vmem:[%s3629_s6 + $0x414] ss:$8 sps:$4 sm:$0xff]   ;;  %v2659_v5 = vld [vmem:[%s3629_s6 + $0x424] ss:$8 sps:$4 sm:$0xff]  }
  0x95   :  { %1873 = vmatpush1.bf16.msra.mxu1 %v2603_v48  ;;  %v370_v14 = vadd.f32 %v369_v11, %v368_v4  ;;  %v376_v16 = vrot.slane %v375_v12, 1  ;;  %v2651_v4 = vld [vmem:[%s3629_s6 + $0x410] ss:$8 sps:$4 sm:$0xff]  }
  0x96   :  { %1908 = vmatpush1.bf16.msra.mxu0 %v2630_v0  ;;  %1874 = vmatprep.subr.bf16.mxu1 %v2611_v8  ;;  %v639_v0 = vrot.slane %v632_v54, %v2934_v42 }
  0x97   :  { %1909 = vmatprep.subr.bf16.mxu0 %v2638_v59  ;;  %v377_v33 = vadd.f32 %v376_v16, %v375_v12  ;;  %v386_v19 = vmul.f32 0.5, %v370_v14  ;;  %v2678_v59 = vld [vmem:[%s3629_s6 + $0x3e0] ss:$8 sps:$4 sm:$0xff]   ;;  %v2663_v14 = vld [vmem:[%s3629_s6 + $0x430] ss:$8 sps:$4 sm:$0xff]  }
  0x98   :  { %v2657_v12 = vld [vmem:[%s3629_s6 + $0x420] ss:$8 sps:$4 sm:$0xff]   ;;  %v2671_v16 = vld [vmem:[%s3629_s6 + $0x444] ss:$8 sps:$4 sm:$0xff]  }
  0x99   :  { %1875 = vmatpush1.bf16.msra.mxu1 %v2609_v60  ;;  %v387_v22 = vmul.f32 0.5, %v377_v33  ;;  %v396_v2 = vadd.f32 1e-05, %v386_v19  ;;  %v2683_v33 = vld [vmem:[%s3629_s6 + $0x464] ss:$8 sps:$4 sm:$0xff]  }
  0x9a   :  { %1910 = vmatpush1.bf16.msra.mxu0 %v2636_v9  ;;  %1876 = vmatprep.subr.bf16.mxu1 %v2617_v18  ;;  %v2684_v9 = vld [vmem:[%s3629_s6 + $0x3f0] ss:$8 sps:$4 sm:$0xff]   ;;  %v2669_v18 = vld [vmem:[%s3629_s6 + $0x440] ss:$8 sps:$4 sm:$0xff]  }
  0x9b   :  { %1911 = vmatprep.subr.bf16.mxu0 %v2644_v13  ;;  %v397_v26 = vadd.f32 1e-05, %v387_v22  ;;  %2748 = vrsqrt.f32 %v396_v2  ;;  %v746_v13 = vpack.c.bf16 %v3238_v17, %v3238_v17  ;;  %v2677_v17 = vld [vmem:[%s3629_s6 + $0x454] ss:$8 sps:$4 sm:$0xff]   ;;  %v2681_v19 = vld [vmem:[%s3629_s6 + $0x460] ss:$8 sps:$4 sm:$0xff]  }
  0x9c   :  { %v2692_v22 = vld [vmem:[%s3629_s6 + $0x484] ss:$8 sps:$4 sm:$0xff]   ;;  %v2690_v2 = vld [vmem:[%s3629_s6 + $0x480] ss:$8 sps:$4 sm:$0xff]  }
  0x9d   :  { %1877 = vmatpush1.bf16.msra.mxu1 %v2615_v21  ;;  %2750 = vrsqrt.f32 %v397_v26  ;;  %v2687_v21 = vld [vmem:[%s3629_s6 + $0x470] ss:$8 sps:$4 sm:$0xff]   ;;  %v2698_v26 = vld [vmem:[%s3629_s6 + $0x4a4] ss:$8 sps:$4 sm:$0xff]  }
  0x9e   :  { %1912 = vmatpush1.bf16.msra.mxu0 %v2642_v25  ;;  %1878 = vmatprep.subr.bf16.mxu1 %v2623_v23  ;;  %v2675_v25 = vld [vmem:[%s3629_s6 + $0x450] ss:$8 sps:$4 sm:$0xff]   ;;  %v2695_v23 = vld [vmem:[%s3629_s6 + $0x494] ss:$8 sps:$4 sm:$0xff]  }
  0x9f   :  { %1913 = vmatprep.subr.bf16.mxu0 %v2650_v20  ;;  %v2689_v20 = vld [vmem:[%s3629_s6 + $0x474] ss:$8 sps:$4 sm:$0xff]  }
  0xa1   :  { %1879 = vmatpush1.bf16.msra.mxu1 %v2621_v29  ;;  %v2701_v29 = vld [vmem:[%s3629_s6 + $0x4b4] ss:$8 sps:$4 sm:$0xff]  }
  0xa2   :  { %1914 = vmatpush1.bf16.msra.mxu0 %v2648_v24  ;;  %1880 = vmatprep.subr.bf16.mxu1 %v2629_v30  ;;  %v2693_v24 = vld [vmem:[%s3629_s6 + $0x490] ss:$8 sps:$4 sm:$0xff]  }
  0xa3   :  { %1915 = vmatprep.subr.bf16.mxu0 %v2656_v27  ;;  %v2696_v27 = vld [vmem:[%s3629_s6 + $0x4a0] ss:$8 sps:$4 sm:$0xff]   ;;  %v2699_v30 = vld [vmem:[%s3629_s6 + $0x4b0] ss:$8 sps:$4 sm:$0xff]  }
  0xa5   :  { %v2749_v46 = vpop.eup %2748  ;;  %1881 = vmatpush1.bf16.msra.mxu1 %v2627_v15  ;;  %v2705_v15 = vld [vmem:[%s3629_s6 + $0x4d0] ss:$8 sps:$4 sm:$0xff]  }
  0xa6   :  { %1916 = vmatpush1.bf16.msra.mxu0 %v2654_v31  ;;  %1882 = vmatprep.subr.bf16.mxu1 %v2635_v36  ;;  %v2704_v31 = vld [vmem:[%s3629_s6 + $0x4c4] ss:$8 sps:$4 sm:$0xff]   ;;  %v2708_v36 = vld [vmem:[%s3629_s6 + $0x4e0] ss:$8 sps:$4 sm:$0xff]  }
  0xa7   :  { %1917 = vmatprep.subr.bf16.mxu0 %v2662_v47  ;;  %v2751_v50 = vpop.eup %2750  ;;  %v2707_v47 = vld [vmem:[%s3629_s6 + $0x4d4] ss:$8 sps:$4 sm:$0xff]  }
  0xa8   :  { %v452_v53 = vcombine.low %v2749_v46, %v2751_v50 }
  0xa9   :  { %1883 = vmatpush1.bf16.msra.mxu1 %v2633_v49 }
  0xaa   :  { %1918 = vmatpush1.bf16.msra.mxu0 %v2660_v40  ;;  %1884 = vmatprep.subr.bf16.mxu1 %v2641_v28  ;;  %v459_v57 = vrot.slane %v452_v53, %v2934_v42 }
  0xab   :  { %1919 = vmatprep.subr.bf16.mxu0 %v2668_v41 }
  0xac   :  { %v465_v63 = vmul.f32 %v459_v57, %v3284_v44  ;;  %v2686_v44 = vld [vmem:[%s3629_s6 + $0x3f4] ss:$8 sps:$4 sm:$0xff]  }
  0xad   :  { %1885 = vmatpush1.bf16.msra.mxu1 %v2639_v55 }
  0xae   :  { %1920 = vmatpush1.bf16.msra.mxu0 %v2666_v51  ;;  %1936 = vmatprep.subr.bf16.mxu1 %v2647_v56  ;;  %v555_v10 = vmul.f32 %v549_v58, %v465_v63  ;;  %v2717_v63 = vld [vmem:[%s3634_s11 + $0x8] sm:$0xff]  }
  0xaf   :  { %1921 = vmatprep.subr.bf16.mxu0 %v2674_v52 }
  0xb0   :  { %1887 = vmatmul.mubr.bf16.vlgmr.msra.gmra.mrb[4].mxu1 %v744_v37  ;;  %v645_v48 = vadd.f32 %v639_v0, %v555_v10  ;;  %v2715_v37 = vld [vmem:[%s3634_s11] sm:$0xff]   ;;  %v2718_v0 = vld [vmem:[%s3634_s11 + $0x50] sm:$0xff]   ;;  %v2721_v10 = vld [vmem:[%s3634_s11 + $0x18] sm:$0xff]  }
  0xb1   :  { %1937 = vmatpush1.bf16.msra.mxu1 %v2645_v1  ;;  %v2719_v1 = vld [vmem:[%s3634_s11 + $0x10] sm:$0xff]  }
  0xb2   :  { %1922 = vmatpush1.bf16.msra.mxu0 %v2672_v61  ;;  %1938 = vmatprep.subr.bf16.mxu1 %v2653_v3  ;;  %v3446_v8 = vrot.slane %v645_v48, %v2934_v42  ;;  %v2665_v42 = vld [vmem:[%s3629_s6 + $0x434] ss:$8 sps:$4 sm:$0xff]   ;;  %v2714_v61 = vld [vmem:[%s3634_s11 + $0x40] sm:$0xff]   ;;  %v2724_v48 = vld [vmem:[%s3634_s11 + $0x68] sm:$0xff]  }
  0xb3   :  { %1923 = vmatprep.subr.bf16.mxu0 %v2680_v62  ;;  %v2716_v62 = vld [vmem:[%s3634_s11 + $0x48] sm:$0xff]   ;;  %v2720_v3 = vld [vmem:[%s3634_s11 + $0x58] sm:$0xff]  }
  0xb4   :  { %v729_v11 = vcombine.high %v3446_v8, %v3446_v8  ;;  %v748_v40 = vpack.c.bf16 %v3446_v8, %v3446_v8  ;;  %v2727_v8 = vld [vmem:[%s3634_s11 + $0x30] sm:$0xff]  }
  0xb5   :  { %1939 = vmatpush1.bf16.msra.mxu1 %v2651_v4  ;;  %v2725_v4 = vld [vmem:[%s3634_s11 + $0x28] sm:$0xff]  }
  0xb6   :  { %1924 = vmatpush1.bf16.msra.mxu0 %v2678_v59  ;;  %1940 = vmatprep.subr.bf16.mxu1 %v2659_v5  ;;  %v749_v60 = vpack.c.bf16 %v729_v11, %v729_v11  ;;  %v2722_v59 = vld [vmem:[%s3634_s11 + $0x60] sm:$0xff]   ;;  %v2726_v5 = vld [vmem:[%s3634_s11 + $0x70] sm:$0xff]   ;;  %v2729_v11 = vld [vmem:[%s3634_s11 + $0x38] sm:$0xff]  }
  0xb7   :  { %1925 = vmatprep.subr.bf16.mxu0 %v2686_v44  ;;  %v2723_v44 = vld [vmem:[%s3634_s11 + $0x20] sm:$0xff]  }
  0xb8   :  { %1968 = vmatprep.mubr.bf16.mxu1 %v749_v60 }
  0xb9   :  { %1941 = vmatpush1.bf16.msra.mxu1 %v2657_v12 }
  0xba   :  { %1926 = vmatpush1.bf16.msra.mxu0 %v2684_v9  ;;  %1942 = vmatprep.subr.bf16.mxu1 %v2665_v42  ;;  %v2728_v9 = vld [vmem:[%s3634_s11 + $0x78] sm:$0xff]  }
  0xbb   :  { %2449 = vmatprep.subr.bf16.mxu0 %v2714_v61 }
  0xbd   :  { %1928 = vmatmul.mubr.bf16.vlgmr.msra.gmra.mrb[8].mxu0 %v746_v13  ;;  %1943 = vmatpush1.bf16.msra.mxu1 %v2663_v14 }
  0xbe   :  { %1944 = vmatprep.subr.bf16.mxu1 %v2671_v16  ;;  %2450 = vmatpush3.bf16.msra.mxu0 %v2715_v37 }
  0xbf   :  { %2451 = vmatprep.subr.bf16.mxu0 %v2716_v62 }
  0xc1   :  { %1945 = vmatpush1.bf16.msra.mxu1 %v2669_v18 }
  0xc2   :  { %1946 = vmatprep.subr.bf16.mxu1 %v2677_v17  ;;  %2452 = vmatpush3.bf16.msra.mxu0 %v2717_v63 }
  0xc3   :  { %2453 = vmatprep.subr.bf16.mxu0 %v2718_v0 }
  0xc5   :  { %1947 = vmatpush1.bf16.msra.mxu1 %v2675_v25 }
  0xc6   :  { %1948 = vmatprep.subr.bf16.mxu1 %v2683_v33  ;;  %2454 = vmatpush3.bf16.msra.mxu0 %v2719_v1 }
  0xc7   :  { %2455 = vmatprep.subr.bf16.mxu0 %v2720_v3 }
  0xc9   :  { %1949 = vmatpush1.bf16.msra.mxu1 %v2681_v19 }
  0xca   :  { %1950 = vmatprep.subr.bf16.mxu1 %v2689_v20  ;;  %2456 = vmatpush3.bf16.msra.mxu0 %v2721_v10 }
  0xcb   :  { %2457 = vmatprep.subr.bf16.mxu0 %v2722_v59 }
  0xcd   :  { %1951 = vmatpush1.bf16.msra.mxu1 %v2687_v21  ;;  %v1977_v21 = vld [vmem:[%s3631_s8] sm:$0x3] }
  0xce   :  { %1952 = vmatprep.subr.bf16.mxu1 %v2692_v22  ;;  %2458 = vmatpush3.bf16.msra.mxu0 %v2723_v44  ;;  %v1982_v22 = vrot.slane %v1977_v21, %v3055_v6 }
  0xcf   :  { %2459 = vmatprep.subr.bf16.mxu0 %v2724_v48 }
  0xd1   :  { %1953 = vmatpush1.bf16.msra.mxu1 %v2690_v2 }
  0xd2   :  { %1954 = vmatprep.subr.bf16.mxu1 %v2695_v23  ;;  %2460 = vmatpush3.bf16.msra.mxu0 %v2725_v4  ;;  %v1986_v23 = vrot.slane %v1977_v21, %v3058_v7 }
  0xd3   :  { %2461 = vmatprep.subr.bf16.mxu0 %v2726_v5 }
  0xd5   :  { %1955 = vmatpush1.bf16.msra.mxu1 %v2693_v24 }
  0xd6   :  { %1956 = vmatprep.subr.bf16.mxu1 %v2698_v26  ;;  %2462 = vmatpush3.bf16.msra.mxu0 %v2727_v8 }
  0xd7   :  { %2463 = vmatprep.subr.bf16.mxu0 %v2728_v9 }
  0xd9   :  { %1957 = vmatpush1.bf16.msra.mxu1 %v2696_v27 }
  0xda   :  { %1958 = vmatprep.subr.bf16.mxu1 %v2701_v29  ;;  %2464 = vmatpush3.bf16.msra.mxu0 %v2729_v11 }
  0xdd   :  { %1959 = vmatpush1.bf16.msra.mxu1 %v2699_v30 }
  0xde   :  { %1960 = vmatprep.subr.bf16.mxu1 %v2704_v31 }
  0xe1   :  { %1961 = vmatpush1.bf16.msra.mxu1 %v2702_v32 }
  0xe2   :  { %1962 = vmatprep.subr.bf16.mxu1 %v2707_v47 }
  0xe5   :  { %1963 = vmatpush1.bf16.msra.mxu1 %v2705_v15 }
  0xe6   :  { %1964 = vmatprep.subr.bf16.mxu1 %v2710_v35 }
  0xe9   :  { %1965 = vmatpush1.bf16.msra.mxu1 %v2708_v36 }
  0xea   :  { %1966 = vmatprep.subr.bf16.mxu1 %v2713_v38 }
  0xed   :  { %1967 = vmatpush1.bf16.msra.mxu1 %v2711_v39 }
  0xf0   :  { %1969 = vmatmul.mubr.bf16.vlgmr.msra.gmra.mrb[8].mxu1 %v748_v40 }
 0x110   :  { %v965_v41 = vpop.f32.mrb[0].mxu0 }
 0x111   :  { %v967_v43 = vpop.f32.mrb[1].mxu0 }
 0x112   :  { %v969_v45 = vpop.f32.mrb[2].mxu0 }
 0x113   :  { %v970_v46 = vpop.f32.mrb[3].mxu0 }
 0x143   :  { %v1806_v49 = vpop.f32.mrb[0].mxu1 }
 0x144   :  { %v1807_v28 = vadd.f32 %v1806_v49, %v965_v41  ;;  %v1808_v34 = vpop.f32.mrb[1].mxu1 }
 0x145   :  { %v1809_v50 = vadd.f32 %v1808_v34, %v967_v43  ;;  %v1810_v51 = vpop.f32.mrb[2].mxu1 }
 0x146   :  { %v1811_v52 = vpop.f32.mrb[3].mxu1 }
 0x150   :  { %v1847_v53 = vpop.f32.mrb[4].mxu0 }
 0x151   :  { %v1848_v54 = vadd.f32 %v1847_v53, %v1807_v28  ;;  %v1849_v55 = vpop.f32.mrb[5].mxu0 }
 0x152   :  { %v1850_v56 = vadd.f32 %v1849_v55, %v1809_v50  ;;  %v1851_v57 = vpop.f32.mrb[6].mxu0 }
 0x153   :  { %v1852_v58 = vpop.f32.mrb[7].mxu0 }
 0x183   :  { %v1888_v12 = vpop.f32.mrb[4].mxu1 }
 0x184   :  { %v1889_v42 = vadd.f32 %v1888_v12, %v1848_v54  ;;  %v1890_v13 = vpop.f32.mrb[5].mxu1 }
 0x185   :  { %v1891_v60 = vadd.f32 %v1890_v13, %v1850_v56  ;;  %v1892_v14 = vpop.f32.mrb[6].mxu1  ;;  %v1994_v13 = vld [vmem:[%s3633_s10] sm:$0x3] }
 0x186   :  { %v1893_v16 = vpop.f32.mrb[7].mxu1 }
 0x190   :  { %v1929_v18 = vpop.f32.mrb[8].mxu0 }
 0x191   :  { %v1930_v17 = vadd.f32 %v1929_v18, %v1889_v42  ;;  %v1931_v25 = vpop.f32.mrb[9].mxu0  ;;  %v1993_v42 = vld [vmem:[%s3632_s9] sm:$0x3] }
 0x192   :  { %v1932_v33 = vadd.f32 %v1931_v25, %v1891_v60  ;;  %v1933_v19 = vpop.f32.mrb[10].mxu0  ;;  %v2041_v60 = vrot.slane %v1993_v42, %v3055_v6  ;;  %v2045_v16 = vrot.slane %v1993_v42, %v3058_v7  ;;  %v2054_v25 = vrot.slane %v1994_v13, %v3055_v6 }
 0x193   :  { %v1934_v20 = vpop.f32.mrb[11].mxu0  ;;  %v2058_v19 = vrot.slane %v1994_v13, %v3058_v7 }
 0x1c3   :  { %v1970_v2 = vpop.f32.mrb[8].mxu1 }
 0x1c4   :  { %v1971_v24 = vadd.f32 %v1970_v2, %v1930_v17  ;;  %v1972_v26 = vpop.f32.mrb[9].mxu1 }
 0x1c5   :  { %v1973_v27 = vadd.f32 %v1972_v26, %v1932_v33  ;;  %v1974_v29 = vpop.f32.mrb[10].mxu1 }
 0x1c6   :  { %v1989_v30 = vadd.f32 %v1982_v22, %v1971_v24  ;;  %v1975_v31 = vpop.f32.mrb[11].mxu1  ;;  %v2432_v29 = vld [vmem:[%s3635_s12] ss:$0 sm:$0xff]  ;;  %s2259_s12 = sshll.u32 %s2786_s29, 4  ;;  %s2260_s12 = int_to_ptr.vmem [resolvable:$true] %s2259_s12 }
 0x1c7   :  { %v1990_v32 = vadd.f32 %v1986_v23, %v1973_v27  ;;  %s2760_s5 = scalar_lea.vmem %s2260_s12, 32  ;;  %p2765_p1 = scmp.lt.s32.totalorder %s2260_s12, %s2260_s12 }
 0x1c8   :  { %v1991_v47 = vmax.f32 %v1989_v30, 0.0  ;;  %p2761_p0 = scmp.ne.s32.totalorder %s2260_s12, %s2760_s5  ;;  %p2766_p2 = scmp.lt.s32.totalorder %s2760_s5, %s2760_s5 }
 0x1c9   :  { %v1992_v15 = vmax.f32 %v1990_v32, 0.0 }
 0x1ca   :  { %v1995_v35 = vsel %vm110_vm0, %v1991_v47, 0.0  ;;  %p2767_p3 = por %p2766_p2, %p2765_p1 }
 0x1cb   :  { %v1996_v36 = vrot.slane %v1995_v35, 4  ;;  %v2002_v38 = vsel %vm110_vm0, %v1992_v15, 0.0 }
 0x1cc   :  { %v2003_v39 = vrot.slane %v2002_v38, 4  ;;  %p2768_p4 = pnand %p2767_p3, %p2761_p0 }
 0x1cd   :  { %v1997_v40 = vadd.f32 %v1996_v36, %v1995_v35 }
 0x1ce   :  { %v2004_v41 = vadd.f32 %v2003_v39, %v2002_v38 }
 0x1cf   :  { %v1998_v43 = vrot.slane %v1997_v40, 2 }
 0x1d0   :  { %v2005_v45 = vrot.slane %v2004_v41, 2 }
 0x1d1   :  { %v1999_v46 = vadd.f32 %v1998_v43, %v1997_v40 }
 0x1d2   :  { %v2006_v49 = vadd.f32 %v2005_v45, %v2004_v41 }
 0x1d3   :  { %v2000_v28 = vrot.slane %v1999_v46, 1 }
 0x1d4   :  { %v2007_v34 = vrot.slane %v2006_v49, 1 }
 0x1d5   :  { %v2001_v50 = vadd.f32 %v2000_v28, %v1999_v46 }
 0x1d6   :  { %v2008_v51 = vadd.f32 %v2007_v34, %v2006_v49 }
 0x1d7   :  { %v2009_v52 = vmul.f32 0.5, %v2001_v50 }
 0x1d8   :  { %v2010_v53 = vmul.f32 0.5, %v2008_v51 }
 0x1d9   :  { %v2011_v54 = vsub.f32 %v1991_v47, %v2009_v52 }
 0x1da   :  { %v2012_v55 = vsub.f32 %v1992_v15, %v2010_v53 }
 0x1db   :  { %v2013_v56 = vmul.f32 %v2011_v54, %v2011_v54 }
 0x1dc   :  { %v2014_v57 = vmul.f32 %v2012_v55, %v2012_v55 }
 0x1dd   :  { %v2015_v58 = vsel %vm110_vm0, %v2013_v56, 0.0 }
 0x1de   :  { %v2016_v61 = vrot.slane %v2015_v58, 4  ;;  %v2022_v37 = vsel %vm110_vm0, %v2014_v57, 0.0 }
 0x1df   :  { %v2023_v62 = vrot.slane %v2022_v37, 4 }
 0x1e0   :  { %v2017_v63 = vadd.f32 %v2016_v61, %v2015_v58 }
 0x1e1   :  { %v2024_v0 = vadd.f32 %v2023_v62, %v2022_v37 }
 0x1e2   :  { %v2018_v1 = vrot.slane %v2017_v63, 2 }
 0x1e3   :  { %v2025_v3 = vrot.slane %v2024_v0, 2 }
 0x1e4   :  { %v2019_v10 = vadd.f32 %v2018_v1, %v2017_v63 }
 0x1e5   :  { %v2026_v59 = vadd.f32 %v2025_v3, %v2024_v0 }
 0x1e6   :  { %v2020_v44 = vrot.slane %v2019_v10, 1 }
 0x1e7   :  { %v2027_v48 = vrot.slane %v2026_v59, 1 }
 0x1e8   :  { %v2021_v4 = vadd.f32 %v2020_v44, %v2019_v10 }
 0x1e9   :  { %v2028_v5 = vadd.f32 %v2027_v48, %v2026_v59 }
 0x1ea   :  { %v2029_v8 = vmul.f32 0.5, %v2021_v4 }
 0x1eb   :  { %v2030_v9 = vmul.f32 0.5, %v2028_v5 }
 0x1ec   :  { %v2031_v11 = vadd.f32 1e-05, %v2029_v8 }
 0x1ed   :  { %v2032_v12 = vadd.f32 1e-05, %v2030_v9 }
 0x1ee   :  { %2752 = vrsqrt.f32 %v2031_v11 }
 0x1ef   :  { %2754 = vrsqrt.f32 %v2032_v12 }
 0x1f8   :  { %v2753_v14 = vpop.eup %2752 }
 0x1f9   :  { %v2755_v18 = vpop.eup %2754  ;;  %v2035_v17 = vmul.f32 %v2753_v14, %v2011_v54 }
 0x1fa   :  { %v2036_v33 = vmul.f32 %v2755_v18, %v2012_v55 }
 0x1fb   :  { %v2048_v20 = vmul.f32 %v2041_v60, %v2035_v17 }
 0x1fc   :  { %v2049_v21 = vmul.f32 %v2045_v16, %v2036_v33 }
 0x1fd   :  { %v2061_v22 = vadd.f32 %v2054_v25, %v2048_v20 }
 0x1fe   :  { %v2062_v2 = vadd.f32 %v2058_v19, %v2049_v21 }
 0x1ff   :  { %v2063_v24 = vpack.c.bf16 %v2061_v22, %v2061_v22 }
 0x200   :  { %v2064_v23 = vpack.c.bf16 %v2062_v2, %v2062_v2 }
 0x202   :  { %2232 = vmatprep.mubr.bf16.mxu0 %v2064_v23 }
 0x203   :  { %2233 = vmatmul.mubr.bf16.vlgmr.msra.gmra.mrb[12].mxu0 %v2063_v24 }
 0x2d6   :  { %v2465_v26 = vpop.f32.mrb[12].mxu0 }
 0x2d7   :  { %v2466_v27 = vpop.f32.mrb[13].mxu0 }
 0x2d8   :  { %v2467_v30 = vadd.f32 %v2466_v27, %v2465_v26  ;;  %v2468_v31 = vpop.f32.mrb[14].mxu0 }
 0x2d9   :  { %v2469_v6 = vpop.f32.mrb[15].mxu0 }
 0x2da   :  { %v2235_v32 = vadd.f32 %v2467_v30, %v2432_v29 }
 0x2dc   :  { %v2241_v7 = vsel %vm2240_vm3, %v2235_v32, -inf }
 0x2dd   :  { %2242 = vmax.xlane.f32.xlu0 %v2241_v7 }
 0x36a   :  { %v2243_v47 = vpop.xlane.xlu0 %2242 }
 0x36b   :  { %v2244_v15 = vsub.f32 %v2235_v32, %v2243_v47 }
 0x36d   :  { %v2245_v35 = vmul.f32 1.442695, %v2244_v15 }
 0x36f   :  { %2756 = vpow2.f32 %v2245_v35 }
 0x379   :  { %v2757_v36 = vpop.eup %2756 }
 0x37a   :  { %v2247_v38 = vsel %vm2240_vm3, %v2757_v36, 0.0 }
 0x37b   :  { %2248 = vadd.xlane.f32.xlu0 %v2247_v38 }
 0x408   :  { %v2249_v39 = vpop.xlane.xlu0 %2248 }
 0x409   :  { %2758 = vrcp.f32 %v2249_v39 }
 0x413   :  { %v2759_v40 = vpop.eup %2758 }
 0x414   :  { %v2251_v41 = vmul.f32 %v2759_v40, %v2757_v36 }
 0x416   :  { %2252 = vst.msk [vmem:[#allocation2] sm:$0x3] %vm2240_vm3, %v2251_v41 }
 0x417   :  { %2771 = shalt.err (!%p2768_p4)
}
 0x418   :  { %s2772_s30 = scalar_lea.hbm %s3636_s13, 32 }
 0x419   :  { %p2773_p5 = scmp.ne.s32.totalorder %s3636_s13, %s2772_s30  ;;  %p2776_p6 = scmp.lt.u32.totalorder %s2772_s30, %s3636_s13 }
 0x41b   :  { %p2778_p7 = pnand %p2776_p6, %p2773_p5 }
 0x41d   :  { %2781 = shalt.err (!%p2778_p7)
}
 0x41e   :  { %2262 = dma.vmem_to_hbm [thread:$0]  %s2260_s12, 32, %s3636_s13, [#allocation3]  }
 0x41f   :  { %2782 = dma.done.wait [#allocation3], 32  }
 0x420   :  { %2783 = vsyncadd [#allocation3], 4294967264 }
 0x421   :  { %2266 = vsyncpa [#allocation3], 1 }

</bundles_post_ra>
